<compile_context>
chip_gen: v7x
topology: tpu7x:2x2x1
jax: 0.10.0
libtpu: 0.0.40
codegen_flags: <defaults>
</compile_context>

<pallas_src>
import functools

import jax
import jax.numpy as jnp
from jax.experimental import pallas as pl
from jax.experimental.pallas import tpu as pltpu

HIDDEN = {
    "conditional_1": 64,
    "encoder_2": 64,
    "decoder_1": 32,
    "decoder_2": 16,
    "decoder_3": 5,
}
LANE = 128
OUT_DIM = HIDDEN["decoder_3"]


# ---------------------------------------------------------------------------
# Kernel: whole 5-layer MLP for one tile of batch rows, fully in VMEM.
# ---------------------------------------------------------------------------
def _fc_kernel(x_ref, w1_ref, b1_ref, w2_ref, b2_ref, w3_ref, b3_ref,
               w4_ref, b4_ref, w5_ref, b5_ref, o_ref):
    """x_ref: (bm, d_in).  Weights are bf16 at their TRUE fan-in (no K padding);
    only w5's output dim is zero-padded to 128 lanes.  Biases are f32 (1, n).
    o_ref: (bm, OUT_DIM) f32."""
    x = x_ref[...].astype(jnp.bfloat16)

    # linear1: Linear(d_in->64) -> ReLU -> Linear(64->64)
    h = jnp.dot(x, w1_ref[...], preferred_element_type=jnp.float32) + b1_ref[...]
    h = jnp.maximum(h, 0.0).astype(jnp.bfloat16)
    z = jnp.dot(h, w2_ref[...], preferred_element_type=jnp.float32) + b2_ref[...]

    # linear2: Linear(64->32) -> ReLU -> Linear(32->16) -> ReLU -> Linear(16->5)
    h = jnp.dot(z.astype(jnp.bfloat16), w3_ref[...],
                preferred_element_type=jnp.float32) + b3_ref[...]
    h = jnp.maximum(h, 0.0).astype(jnp.bfloat16)
    h = jnp.dot(h, w4_ref[...], preferred_element_type=jnp.float32) + b4_ref[...]
    h = jnp.maximum(h, 0.0).astype(jnp.bfloat16)
    out = jnp.dot(h, w5_ref[...], preferred_element_type=jnp.float32) + b5_ref[...]

    # Real result lives in lanes 0..OUT_DIM-1 (padded w5/b5 columns are zero).
    o_ref[...] = out[:, :OUT_DIM].astype(o_ref.dtype)


# ---------------------------------------------------------------------------
# One-time parameter packing (hoist this out of the per-call path!).
# ---------------------------------------------------------------------------
def pack_params(params):
    """Cast weights to bf16 at their true shapes; lane-pad only the last
    layer's output dim (zeros).  Biases stay f32 (added after f32 accum)."""
    (w1, b1), (w2, b2), (w3, b3), (w4, b4), (w5, b5) = params
    w5p = jnp.pad(w5, ((0, 0), (0, LANE - w5.shape[1])))
    b5p = jnp.pad(b5.reshape(1, -1), ((0, 0), (0, LANE - b5.shape[-1])))

    wq = lambda w: w.astype(jnp.bfloat16)
    bq = lambda b: b.reshape(1, -1).astype(jnp.float32)
    return (wq(w1), bq(b1),
            wq(w2), bq(b2),
            wq(w3), bq(b3),
            wq(w4), bq(b4),
            wq(w5p), bq(b5p))


# ---------------------------------------------------------------------------
# Pallas wrapper
# ---------------------------------------------------------------------------
def _round_up(x, m):
    return ((x + m - 1) // m) * m


def _choose_block_m(batch, requested):
    """Large MXU-friendly tile; grid-step count even and >= 2 (v7x megacore),
    amortizing the ~0.35us per-step overhead."""
    if requested is None:
        requested = 2048
    steps = max(2, _round_up(pl.cdiv(batch, requested), 2))
    return max(8, _round_up(pl.cdiv(batch, steps), 8))


@functools.partial(jax.jit, static_argnames=("block_m",))
def fc_forward_pallas(c, *packed, block_m=None):
    """c: [B, hidden_channels] -> pred: [B, 5] via a single Pallas kernel."""
    B, d_in = c.shape
    bm = _choose_block_m(B, block_m)
    grid = (pl.cdiv(B, bm),)

    resident = lambda arr: pl.BlockSpec(arr.shape, lambda i: (0, 0))
    in_specs = [pl.BlockSpec((bm, d_in), lambda i: (i, 0))]
    in_specs += [resident(a) for a in packed]
    out_spec = pl.BlockSpec((bm, OUT_DIM), lambda i: (i, 0))

    flops = 2 * B * (d_in * 64 + 64 * 64 + 64 * 32 + 32 * 16 + 16 * LANE)
    bytes_accessed = (
        B * d_in * c.dtype.itemsize
        + B * OUT_DIM * 4
        + sum(a.size * a.dtype.itemsize for a in packed))

    return pl.pallas_call(
        _fc_kernel,
        out_shape=jax.ShapeDtypeStruct((B, OUT_DIM), jnp.float32),
        grid_spec=pltpu.PrefetchScalarGridSpec(
            num_scalar_prefetch=0,
            grid=grid,
            in_specs=in_specs,
            out_specs=out_spec),
        compiler_params=pltpu.CompilerParams(
            dimension_semantics=("parallel",),
            vmem_limit_bytes=32 * 1024 * 1024),
        cost_estimate=pl.CostEstimate(
            flops=flops, transcendentals=0, bytes_accessed=bytes_accessed),
    )(c, *packed)


def fc_forward(c, params, packed=None, *, block_m=None, min_pallas_batch=2048):
    """Dispatcher: tiny batches go straight to XLA (kernel launch > work).
    Pass `packed=pack_params(params)` computed ONCE to avoid re-packing."""
    if c.shape[0] < min_pallas_batch:
        return fc_forward_ref(c, params)
    if packed is None:
        packed = pack_params(params)
    return fc_forward_pallas(c, *packed, block_m=block_m)


# ---------------------------------------------------------------------------
# Reference + init
# ---------------------------------------------------------------------------
def init_params(key, hidden_channels):
    """Deterministic synthetic init. Weights stored (in, out); biases (1, out)."""
    dims = [
        (hidden_channels, HIDDEN["conditional_1"]),      # linear1[0]
        (HIDDEN["conditional_1"], HIDDEN["encoder_2"]),  # linear1[2]
        (HIDDEN["encoder_2"], HIDDEN["decoder_1"]),      # linear2[0]
        (HIDDEN["decoder_1"], HIDDEN["decoder_2"]),      # linear2[2]
        (HIDDEN["decoder_2"], HIDDEN["decoder_3"]),      # linear2[4]
    ]
    params = []
    for (din, dout) in dims:
        key, kw, kb = jax.random.split(key, 3)
        scale = 1.0 / jnp.sqrt(jnp.float32(din))
        w = jax.random.uniform(kw, (din, dout), jnp.float32, -scale, scale)
        b = jax.random.uniform(kb, (1, dout), jnp.float32, -scale, scale)
        params.append((w, b))
    return params


def fc_forward_ref(c, params):
    """Pure-JAX f32 reference (also the tiny-batch fast path)."""
    (w1, b1), (w2, b2), (w3, b3), (w4, b4), (w5, b5) = params
    h = jnp.maximum(c @ w1 + b1, 0.0)
    z = h @ w2 + b2
    h = jnp.maximum(z @ w3 + b3, 0.0)
    h = jnp.maximum(h @ w4 + b4, 0.0)
    return h @ w5 + b5


# TODO(synk): NODE_NET.forward references undefined attributes (self.rgcn,
# self.impute, self.cave) and the GCN/RGCN graph path needs torch_geometric;
# only the FC predictor MLP (the compute-dense, well-defined part) is
# implemented here.  The GRU in FC.__init__ is never used in forward.

if __name__ == "__main__":
    key = jax.random.PRNGKey(0)
    batch = 2048          # exercises the Pallas path (2 grid steps at bm=1024)
    hidden_channels = 32  # args.hidden_channels

    key, kc, kp = jax.random.split(key, 3)
    c = jax.random.normal(kc, (batch, hidden_channels), jnp.float32)
    params = init_params(kp, hidden_channels)
    packed = pack_params(params)  # packed ONCE, reused across calls

    pred = fc_forward(c, params, packed)
    pred = jax.block_until_ready(pred)

    ref = fc_forward_ref(c, params)
    assert pred.shape == (batch, OUT_DIM)
    # bf16 matmuls (f32 accumulation) vs f32 reference -> loosened tolerance.
    assert jnp.allclose(pred, ref, atol=2e-2, rtol=2e-2), (
        float(jnp.max(jnp.abs(pred - ref))))

    print("KERNEL_OK")
</pallas_src>

<mosaic_0001>
module attributes {stable_mosaic.version = 11 : i64} {
  func.func @_fc_kernel(%arg0: i32, %arg1: memref<1024x32xf32, #tpu.memory_space<vmem>>, %arg2: memref<32x64xbf16, #tpu.memory_space<vmem>>, %arg3: memref<1x64xf32, #tpu.memory_space<vmem>>, %arg4: memref<64x64xbf16, #tpu.memory_space<vmem>>, %arg5: memref<1x64xf32, #tpu.memory_space<vmem>>, %arg6: memref<64x32xbf16, #tpu.memory_space<vmem>>, %arg7: memref<1x32xf32, #tpu.memory_space<vmem>>, %arg8: memref<32x16xbf16, #tpu.memory_space<vmem>>, %arg9: memref<1x16xf32, #tpu.memory_space<vmem>>, %arg10: memref<16x128xbf16, #tpu.memory_space<vmem>>, %arg11: memref<1x128xf32, #tpu.memory_space<vmem>>, %arg12: memref<1024x5xf32, #tpu.memory_space<vmem>>) attributes {dimension_semantics = [#tpu.dimension_semantics<parallel>], iteration_bounds = array<i64: 2>, scalar_prefetch = 0 : i64, scratch_operands = 0 : i64, tpu.core_type = #tpu.core_type<tc>, window_params = [{transform_indices = @transform_0, window_bounds = array<i64: 1024, 32>}, {pipeline_mode = #tpu.pipeline_mode<synchronous>, transform_indices = @transform_1, window_bounds = array<i64: 32, 64>}, {pipeline_mode = #tpu.pipeline_mode<synchronous>, transform_indices = @transform_2, window_bounds = array<i64: 1, 64>}, {pipeline_mode = #tpu.pipeline_mode<synchronous>, transform_indices = @transform_3, window_bounds = array<i64: 64, 64>}, {pipeline_mode = #tpu.pipeline_mode<synchronous>, transform_indices = @transform_4, window_bounds = array<i64: 1, 64>}, {pipeline_mode = #tpu.pipeline_mode<synchronous>, transform_indices = @transform_5, window_bounds = array<i64: 64, 32>}, {pipeline_mode = #tpu.pipeline_mode<synchronous>, transform_indices = @transform_6, window_bounds = array<i64: 1, 32>}, {pipeline_mode = #tpu.pipeline_mode<synchronous>, transform_indices = @transform_7, window_bounds = array<i64: 32, 16>}, {pipeline_mode = #tpu.pipeline_mode<synchronous>, transform_indices = @transform_8, window_bounds = array<i64: 1, 16>}, {pipeline_mode = #tpu.pipeline_mode<synchronous>, transform_indices = @transform_9, window_bounds = array<i64: 16, 128>}, {pipeline_mode = #tpu.pipeline_mode<synchronous>, transform_indices = @transform_10, window_bounds = array<i64: 1, 128>}, {transform_indices = @transform_11, window_bounds = array<i64: 1024, 5>}]} {
    %c0 = arith.constant 0 : index
    %c0_0 = arith.constant 0 : index
    %0 = vector.load %arg1[%c0, %c0_0] : memref<1024x32xf32, #tpu.memory_space<vmem>>, vector<1024x32xf32>
    %1 = arith.truncf %0 : vector<1024x32xf32> to vector<1024x32xbf16>
    %c0_1 = arith.constant 0 : index
    %c0_2 = arith.constant 0 : index
    %2 = vector.load %arg2[%c0_1, %c0_2] : memref<32x64xbf16, #tpu.memory_space<vmem>>, vector<32x64xbf16>
    %cst = arith.constant dense<0.000000e+00> : vector<1024x64xf32>
    %3 = tpu.matmul %1, %2, %cst {dimension_numbers = #tpu.dot_dimension_numbers<[1], [0], [0], [1], [0, 0, 1, 1], [], []>} : vector<1024x32xbf16>, vector<32x64xbf16>, vector<1024x64xf32> -> vector<1024x64xf32>
    %c0_3 = arith.constant 0 : index
    %c0_4 = arith.constant 0 : index
    %4 = vector.load %arg3[%c0_3, %c0_4] : memref<1x64xf32, #tpu.memory_space<vmem>>, vector<1x64xf32>
    %5 = vector.broadcast %4 : vector<1x64xf32> to vector<1024x64xf32>
    %6 = arith.addf %3, %5 : vector<1024x64xf32>
    %cst_5 = arith.constant 0.000000e+00 : f32
    %7 = vector.broadcast %cst_5 : f32 to vector<1024x64xf32>
    %8 = arith.maximumf %6, %7 : vector<1024x64xf32>
    %9 = arith.truncf %8 : vector<1024x64xf32> to vector<1024x64xbf16>
    %c0_6 = arith.constant 0 : index
    %c0_7 = arith.constant 0 : index
    %10 = vector.load %arg4[%c0_6, %c0_7] : memref<64x64xbf16, #tpu.memory_space<vmem>>, vector<64x64xbf16>
    %cst_8 = arith.constant dense<0.000000e+00> : vector<1024x64xf32>
    %11 = tpu.matmul %9, %10, %cst_8 {dimension_numbers = #tpu.dot_dimension_numbers<[1], [0], [0], [1], [0, 0, 1, 1], [], []>} : vector<1024x64xbf16>, vector<64x64xbf16>, vector<1024x64xf32> -> vector<1024x64xf32>
    %c0_9 = arith.constant 0 : index
    %c0_10 = arith.constant 0 : index
    %12 = vector.load %arg5[%c0_9, %c0_10] : memref<1x64xf32, #tpu.memory_space<vmem>>, vector<1x64xf32>
    %13 = vector.broadcast %12 : vector<1x64xf32> to vector<1024x64xf32>
    %14 = arith.addf %11, %13 : vector<1024x64xf32>
    %15 = arith.truncf %14 : vector<1024x64xf32> to vector<1024x64xbf16>
    %c0_11 = arith.constant 0 : index
    %c0_12 = arith.constant 0 : index
    %16 = vector.load %arg6[%c0_11, %c0_12] : memref<64x32xbf16, #tpu.memory_space<vmem>>, vector<64x32xbf16>
    %cst_13 = arith.constant dense<0.000000e+00> : vector<1024x32xf32>
    %17 = tpu.matmul %15, %16, %cst_13 {dimension_numbers = #tpu.dot_dimension_numbers<[1], [0], [0], [1], [0, 0, 1, 1], [], []>} : vector<1024x64xbf16>, vector<64x32xbf16>, vector<1024x32xf32> -> vector<1024x32xf32>
    %c0_14 = arith.constant 0 : index
    %c0_15 = arith.constant 0 : index
    %18 = vector.load %arg7[%c0_14, %c0_15] : memref<1x32xf32, #tpu.memory_space<vmem>>, vector<1x32xf32>
    %19 = vector.broadcast %18 : vector<1x32xf32> to vector<1024x32xf32>
    %20 = arith.addf %17, %19 : vector<1024x32xf32>
    %cst_16 = arith.constant 0.000000e+00 : f32
    %21 = vector.broadcast %cst_16 : f32 to vector<1024x32xf32>
    %22 = arith.maximumf %20, %21 : vector<1024x32xf32>
    %23 = arith.truncf %22 : vector<1024x32xf32> to vector<1024x32xbf16>
    %c0_17 = arith.constant 0 : index
    %c0_18 = arith.constant 0 : index
    %24 = vector.load %arg8[%c0_17, %c0_18] : memref<32x16xbf16, #tpu.memory_space<vmem>>, vector<32x16xbf16>
    %cst_19 = arith.constant dense<0.000000e+00> : vector<1024x16xf32>
    %25 = tpu.matmul %23, %24, %cst_19 {dimension_numbers = #tpu.dot_dimension_numbers<[1], [0], [0], [1], [0, 0, 1, 1], [], []>} : vector<1024x32xbf16>, vector<32x16xbf16>, vector<1024x16xf32> -> vector<1024x16xf32>
    %c0_20 = arith.constant 0 : index
    %c0_21 = arith.constant 0 : index
    %26 = vector.load %arg9[%c0_20, %c0_21] : memref<1x16xf32, #tpu.memory_space<vmem>>, vector<1x16xf32>
    %27 = vector.broadcast %26 : vector<1x16xf32> to vector<1024x16xf32>
    %28 = arith.addf %25, %27 : vector<1024x16xf32>
    %cst_22 = arith.constant 0.000000e+00 : f32
    %29 = vector.broadcast %cst_22 : f32 to vector<1024x16xf32>
    %30 = arith.maximumf %28, %29 : vector<1024x16xf32>
    %31 = arith.truncf %30 : vector<1024x16xf32> to vector<1024x16xbf16>
    %c0_23 = arith.constant 0 : index
    %c0_24 = arith.constant 0 : index
    %32 = vector.load %arg10[%c0_23, %c0_24] : memref<16x128xbf16, #tpu.memory_space<vmem>>, vector<16x128xbf16>
    %cst_25 = arith.constant dense<0.000000e+00> : vector<1024x128xf32>
    %33 = tpu.matmul %31, %32, %cst_25 {dimension_numbers = #tpu.dot_dimension_numbers<[1], [0], [0], [1], [0, 0, 1, 1], [], []>} : vector<1024x16xbf16>, vector<16x128xbf16>, vector<1024x128xf32> -> vector<1024x128xf32>
    %c0_26 = arith.constant 0 : index
    %c0_27 = arith.constant 0 : index
    %34 = vector.load %arg11[%c0_26, %c0_27] : memref<1x128xf32, #tpu.memory_space<vmem>>, vector<1x128xf32>
    %35 = vector.broadcast %34 : vector<1x128xf32> to vector<1024x128xf32>
    %36 = arith.addf %33, %35 : vector<1024x128xf32>
    %37 = vector.extract_strided_slice %36 {offsets = [0, 0], sizes = [1024, 5], strides = [1, 1]} : vector<1024x128xf32> to vector<1024x5xf32>
    %c0_28 = arith.constant 0 : index
    %c0_29 = arith.constant 0 : index
    %38 = vector.load %arg12[%c0_28, %c0_29] : memref<1024x5xf32, #tpu.memory_space<vmem>>, vector<1024x5xf32>
    tpu.vector_store %arg12[%c0_28, %c0_29], %37 {strides = array<i32>} : memref<1024x5xf32, #tpu.memory_space<vmem>>, vector<1024x5xf32>,
    return
  }
  func.func @transform_0(%arg0: i32) -> (i32, i32) {
    %c0_i32 = arith.constant 0 : i32
    %c0_i32_0 = arith.constant 0 : i32
    return %arg0, %c0_i32 : i32, i32
  }
  func.func @transform_1(%arg0: i32) -> (i32, i32) {
    %c0_i32 = arith.constant 0 : i32
    %c0_i32_0 = arith.constant 0 : i32
    %c0_i32_1 = arith.constant 0 : i32
    return %c0_i32, %c0_i32_0 : i32, i32
  }
  func.func @transform_2(%arg0: i32) -> (i32, i32) {
    %c0_i32 = arith.constant 0 : i32
    %c0_i32_0 = arith.constant 0 : i32
    %c0_i32_1 = arith.constant 0 : i32
    return %c0_i32, %c0_i32_0 : i32, i32
  }
  func.func @transform_3(%arg0: i32) -> (i32, i32) {
    %c0_i32 = arith.constant 0 : i32
    %c0_i32_0 = arith.constant 0 : i32
    %c0_i32_1 = arith.constant 0 : i32
    return %c0_i32, %c0_i32_0 : i32, i32
  }
  func.func @transform_4(%arg0: i32) -> (i32, i32) {
    %c0_i32 = arith.constant 0 : i32
    %c0_i32_0 = arith.constant 0 : i32
    %c0_i32_1 = arith.constant 0 : i32
    return %c0_i32, %c0_i32_0 : i32, i32
  }
  func.func @transform_5(%arg0: i32) -> (i32, i32) {
    %c0_i32 = arith.constant 0 : i32
    %c0_i32_0 = arith.constant 0 : i32
    %c0_i32_1 = arith.constant 0 : i32
    return %c0_i32, %c0_i32_0 : i32, i32
  }
  func.func @transform_6(%arg0: i32) -> (i32, i32) {
    %c0_i32 = arith.constant 0 : i32
    %c0_i32_0 = arith.constant 0 : i32
    %c0_i32_1 = arith.constant 0 : i32
    return %c0_i32, %c0_i32_0 : i32, i32
  }
  func.func @transform_7(%arg0: i32) -> (i32, i32) {
    %c0_i32 = arith.constant 0 : i32
    %c0_i32_0 = arith.constant 0 : i32
    %c0_i32_1 = arith.constant 0 : i32
    return %c0_i32, %c0_i32_0 : i32, i32
  }
  func.func @transform_8(%arg0: i32) -> (i32, i32) {
    %c0_i32 = arith.constant 0 : i32
    %c0_i32_0 = arith.constant 0 : i32
    %c0_i32_1 = arith.constant 0 : i32
    return %c0_i32, %c0_i32_0 : i32, i32
  }
  func.func @transform_9(%arg0: i32) -> (i32, i32) {
    %c0_i32 = arith.constant 0 : i32
    %c0_i32_0 = arith.constant 0 : i32
    %c0_i32_1 = arith.constant 0 : i32
    return %c0_i32, %c0_i32_0 : i32, i32
  }
  func.func @transform_10(%arg0: i32) -> (i32, i32) {
    %c0_i32 = arith.constant 0 : i32
    %c0_i32_0 = arith.constant 0 : i32
    %c0_i32_1 = arith.constant 0 : i32
    return %c0_i32, %c0_i32_0 : i32, i32
  }
  func.func @transform_11(%arg0: i32) -> (i32, i32) {
    %c0_i32 = arith.constant 0 : i32
    %c0_i32_0 = arith.constant 0 : i32
    return %arg0, %c0_i32 : i32, i32
  }
}

</mosaic_0001>

<bundles_post_ra>
// kernel: fc_forward_pallas.1
= control target key start
LH: loop header
LB: loop body
LE: loop exit
PB: predicated region body
PF: predicated region fallthrough
CT: control target
= control target key end

     0   :  { %s6678_s17 = smov 0   ;;  %s8220_s0 = inlined_call_operand.vmem [shape: f32[2048,32], index: 0, kind: input, shape index: {}]   ;;  %s8221_s1 = inlined_call_operand.vmem [shape: bf16[32,64], index: 1, kind: input, shape index: {}]   ;;  %s8222_s2 = inlined_call_operand.vmem [shape: f32[1,64], index: 2, kind: input, shape index: {}]   ;;  %s8223_s3 = inlined_call_operand.vmem [shape: bf16[64,64], index: 3, kind: input, shape index: {}]   ;;  %s8224_s4 = inlined_call_operand.vmem [shape: f32[1,64], index: 4, kind: input, shape index: {}]   ;;  %s8225_s5 = inlined_call_operand.vmem [shape: bf16[64,32], index: 5, kind: input, shape index: {}]   ;;  %s8226_s6 = inlined_call_operand.vmem [shape: f32[1,32], index: 6, kind: input, shape index: {}]   ;;  %s8227_s7 = inlined_call_operand.vmem [shape: bf16[32,16], index: 7, kind: input, shape index: {}]   ;;  %s8228_s8 = inlined_call_operand.vmem [shape: f32[1,16], index: 8, kind: input, shape index: {}]   ;;  %s8229_s9 = inlined_call_operand.vmem [shape: bf16[16,128], index: 9, kind: input, shape index: {}]   ;;  %s8230_s10 = inlined_call_operand.vmem [shape: f32[1,128], index: 10, kind: input, shape index: {}]   ;;  %s8231_s11 = inlined_call_operand.vmem [shape: f32[2048,5], index: 11, kind: output, shape index: {}]  }
   0x1 LB: > { %s5235_s18 = sadd.s32 4294967295, %s6616_s17   ;;  %p5239_p0 = scmp.ge.s32.totalorder %s6616_s17, 1  ;;  %s6616_s17 = sphi %s6678_s17, %s21_s17  }
   0x2   : > { %p338_p1 = scmp.lt.s32.totalorder %s6616_s17, 3 }
   0x4   : > { %p339_p2 = pnand %p5239_p0, %p338_p1 }
   0x5   : > { %v6595_v0 = vld [vmem:[%s8221_s1] sm:$0xff] (!%p339_p2)   ;;  %s5240_s21 = sshll.u32 (!%p339_p2), %s5235_s18, 7  ;;  %v6596_v1 = vld [vmem:[%s8221_s1 + $0x8] sm:$0xff] (!%p339_p2)   ;;  %vm606_vm0 = vcmask (!%p339_p2), 261120   ;;  %v6599_v36 = vld [vmem:[%s8223_s3 + $0x10] sm:$0xff] (!%p339_p2)   ;;  %vm1575_vm1 = vcmask (!%p339_p2), 523264  }
   0x6   : > { %342 = sbr.rel (%p339_p2) target bundleno = 1372 (0x55c), region = 64  ;;  %p379_p3 = scmp.lt.s32.totalorder (!%p339_p2), %s5240_s21, 255  ;;  %5917 = vmatprep.subr.bf16.mxu0 (!%p339_p2), %v6595_v0  ;;  %6583 = vmatprep.subr.bf16.mxu1 (!%p339_p2), %v6595_v0  ;;  %v6597_v2 = vld [vmem:[%s8223_s3] sm:$0xff] (!%p339_p2)   ;;  %v6598_v31 = vld [vmem:[%s8223_s3 + $0x8] sm:$0xff] (!%p339_p2)   ;;  %v6600_v47 = vld [vmem:[%s8223_s3 + $0x18] sm:$0xff] (!%p339_p2)   ;;  %vm4312_vm2 = vcmask (!%p339_p2), 130048  }
   0x7   : > { %5918 = vmatpush3.bf16.msra.mxu0 (!%p339_p2), %v6595_v0  ;;  %6585 = vmatpush3.bf16.msra.mxu1 (!%p339_p2), %v6595_v0  ;;  %vm5050_vm3 = vcmask (!%p339_p2), 39936  }
   0x8   : > { %5919 = vmatprep.subr.bf16.mxu0 (!%p339_p2), %v6596_v1  ;;  %6584 = vmatprep.subr.bf16.mxu1 (!%p339_p2), %v6596_v1 }
   0xb   : > { %5920 = vmatpush3.bf16.msra.mxu0 (!%p339_p2), %v6596_v1  ;;  %6586 = vmatpush3.bf16.msra.mxu1 (!%p339_p2), %v6596_v1 }
   0xc   : > { %6049 = vmatprep.subr.bf16.mxu1 (!%p339_p2), %v6597_v2 }
   0xd   : > { %s8233_s21 = smov (!%p379_p3, %s5240_s21), 255 }
   0xe   : > { %s5241_s26 = sshll.u32 %s8233_s21, 3 }
   0xf   : > { %s6703_s29 = scalar_lea.vmem %s8220_s0, %s5241_s26  ;;  %s7805_s15 = scalar_lea.vmem %s8231_s11, %s5241_s26 }
  0x10   : > { %v391_v3 = vld [vmem:[%s6703_s29] sm:$0xff]  ;;  %v392_v4 = vld [vmem:[%s6703_s29 + $0x8] sm:$0xff]  ;;  %v393_v5 = vld [vmem:[%s6703_s29 + $0x10] sm:$0xff] }
  0x11   : > { %v519_v6 = vpack.c.bf16 %v392_v4, %v391_v3  ;;  %v394_v7 = vld [vmem:[%s6703_s29 + $0x18] sm:$0xff]  ;;  %v395_v8 = vld [vmem:[%s6703_s29 + $0x20] sm:$0xff]  ;;  %v396_v9 = vld [vmem:[%s6703_s29 + $0x28] sm:$0xff] }
  0x12   : > { %v520_v10 = vpack.c.bf16 %v394_v7, %v393_v5  ;;  %v521_v11 = vpack.c.bf16 %v396_v9, %v395_v8  ;;  %v397_v12 = vld [vmem:[%s6703_s29 + $0x30] sm:$0xff]  ;;  %v398_v13 = vld [vmem:[%s6703_s29 + $0x38] sm:$0xff]  ;;  %v399_v14 = vld [vmem:[%s6703_s29 + $0x40] sm:$0xff] }
  0x13   : > { %5921 = vmatprep.mubr.msk.bf16.mxu0 %vm606_vm0, %v519_v6  ;;  %v400_v15 = vld [vmem:[%s6703_s29 + $0x48] sm:$0xff]  ;;  %v522_v16 = vpack.c.bf16 %v398_v13, %v397_v12  ;;  %v401_v18 = vld [vmem:[%s6703_s29 + $0x50] sm:$0xff]  ;;  %v402_v19 = vld [vmem:[%s6703_s29 + $0x58] sm:$0xff] }
  0x14   : > { %5922 = vmatmul.mubr.msk.bf16.vlgmr.msra.gmra.mrb[0].mxu0 %vm606_vm0, %v520_v10  ;;  %v523_v17 = vpack.c.bf16 %v400_v15, %v399_v14  ;;  %v403_v20 = vld [vmem:[%s6703_s29 + $0x60] sm:$0xff]  ;;  %v404_v21 = vld [vmem:[%s6703_s29 + $0x68] sm:$0xff]  ;;  %v524_v22 = vpack.c.bf16 %v402_v19, %v401_v18  ;;  %v457_v25 = vld [vmem:[%s6703_s29 + $0x210] sm:$0xff] }
  0x15   : > { %5925 = vmatprep.mubr.msk.bf16.mxu0 %vm606_vm0, %v521_v11  ;;  %v455_v23 = vld [vmem:[%s6703_s29 + $0x200] sm:$0xff]  ;;  %v456_v24 = vld [vmem:[%s6703_s29 + $0x208] sm:$0xff]  ;;  %v525_v26 = vpack.c.bf16 %v404_v21, %v403_v20  ;;  %v458_v28 = vld [vmem:[%s6703_s29 + $0x218] sm:$0xff] }
  0x16   : > { %v551_v27 = vpack.c.bf16 %v456_v24, %v455_v23  ;;  %v552_v29 = vpack.c.bf16 %v458_v28, %v457_v25  ;;  %v459_v30 = vld [vmem:[%s6703_s29 + $0x220] sm:$0xff]  ;;  %v460_v32 = vld [vmem:[%s6703_s29 + $0x228] sm:$0xff]  ;;  %v405_v33 = vld [vmem:[%s6703_s29 + $0x70] sm:$0xff] }
  0x17   : > { %v406_v34 = vld [vmem:[%s6703_s29 + $0x78] sm:$0xff]  ;;  %v553_v35 = vpack.c.bf16 %v460_v32, %v459_v30  ;;  %v407_v37 = vld [vmem:[%s6703_s29 + $0x80] sm:$0xff]  ;;  %v461_v38 = vld [vmem:[%s6703_s29 + $0x230] sm:$0xff] }
  0x18   : > { %5985 = vmatprep.mubr.msk.bf16.mxu1 %vm606_vm0, %v551_v27  ;;  %v462_v39 = vld [vmem:[%s6703_s29 + $0x238] sm:$0xff]  ;;  %v408_v40 = vld [vmem:[%s6703_s29 + $0x88] sm:$0xff]  ;;  %v463_v41 = vld [vmem:[%s6703_s29 + $0x240] sm:$0xff]  ;;  %v526_v43 = vpack.c.bf16 %v406_v34, %v405_v33 }
  0x19   : > { %5986 = vmatmul.mubr.msk.bf16.vlgmr.msra.gmra.mrb[0].mxu1 %vm606_vm0, %v552_v29  ;;  %v464_v42 = vld [vmem:[%s6703_s29 + $0x248] sm:$0xff]  ;;  %v554_v44 = vpack.c.bf16 %v462_v39, %v461_v38  ;;  %v527_v45 = vpack.c.bf16 %v408_v40, %v407_v37  ;;  %v409_v48 = vld [vmem:[%s6703_s29 + $0x90] sm:$0xff]  ;;  %v410_v49 = vld [vmem:[%s6703_s29 + $0x98] sm:$0xff] }
  0x1a   : > { %6050 = vmatpush3.bf16.msra.mxu1 %v6597_v2  ;;  %5989 = vmatprep.mubr.msk.bf16.mxu1 %vm606_vm0, %v553_v35  ;;  %v555_v46 = vpack.c.bf16 %v464_v42, %v463_v41  ;;  %v411_v50 = vld [vmem:[%s6703_s29 + $0xa0] sm:$0xff]  ;;  %v465_v51 = vld [vmem:[%s6703_s29 + $0x250] sm:$0xff]  ;;  %v466_v52 = vld [vmem:[%s6703_s29 + $0x258] sm:$0xff]  ;;  %v528_v56 = vpack.c.bf16 %v410_v49, %v409_v48 }
  0x1b   : > { %6051 = vmatprep.subr.bf16.mxu1 %v6598_v31  ;;  %v412_v53 = vld [vmem:[%s6703_s29 + $0xa8] sm:$0xff]  ;;  %v467_v54 = vld [vmem:[%s6703_s29 + $0x260] sm:$0xff]  ;;  %v556_v57 = vpack.c.bf16 %v466_v52, %v465_v51  ;;  %v413_v60 = vld [vmem:[%s6703_s29 + $0xb0] sm:$0xff] }
  0x1c   : > { %5926 = vmatmul.mubr.msk.bf16.gmra.mrb[4].mxu0 %vm606_vm0, %v522_v16  ;;  %v468_v55 = vld [vmem:[%s6703_s29 + $0x268] sm:$0xff]  ;;  %v529_v58 = vpack.c.bf16 %v412_v53, %v411_v50  ;;  %v414_v61 = vld [vmem:[%s6703_s29 + $0xb8] sm:$0xff]  ;;  %v415_v62 = vld [vmem:[%s6703_s29 + $0xc0] sm:$0xff] }
  0x1d   : > { %5929 = vmatprep.mubr.msk.bf16.mxu0 %vm606_vm0, %v523_v17  ;;  %v557_v59 = vpack.c.bf16 %v468_v55, %v467_v54  ;;  %v469_v63 = vld [vmem:[%s6703_s29 + $0x270] sm:$0xff]  ;;  %v470_v0 = vld [vmem:[%s6703_s29 + $0x278] sm:$0xff]  ;;  %v416_v1 = vld [vmem:[%s6703_s29 + $0xc8] sm:$0xff]  ;;  %v530_v4 = vpack.c.bf16 %v414_v61, %v413_v60 }
  0x1e   : > { %6052 = vmatpush3.bf16.msra.mxu1 %v6598_v31  ;;  %v471_v2 = vld [vmem:[%s6703_s29 + $0x280] sm:$0xff]  ;;  %v472_v3 = vld [vmem:[%s6703_s29 + $0x288] sm:$0xff]  ;;  %v558_v5 = vpack.c.bf16 %v470_v0, %v469_v63  ;;  %v531_v6 = vpack.c.bf16 %v416_v1, %v415_v62  ;;  %v417_v8 = vld [vmem:[%s6703_s29 + $0xd0] sm:$0xff] }
  0x1f   : > { %6053 = vmatprep.subr.bf16.mxu1 %v6599_v36  ;;  %v559_v7 = vpack.c.bf16 %v472_v3, %v471_v2  ;;  %v418_v9 = vld [vmem:[%s6703_s29 + $0xd8] sm:$0xff]  ;;  %v473_v10 = vld [vmem:[%s6703_s29 + $0x290] sm:$0xff]  ;;  %v419_v11 = vld [vmem:[%s6703_s29 + $0xe0] sm:$0xff] }
  0x20   : > { %v474_v12 = vld [vmem:[%s6703_s29 + $0x298] sm:$0xff]  ;;  %v420_v13 = vld [vmem:[%s6703_s29 + $0xe8] sm:$0xff]  ;;  %v475_v14 = vld [vmem:[%s6703_s29 + $0x2a0] sm:$0xff]  ;;  %v532_v16 = vpack.c.bf16 %v418_v9, %v417_v8 }
  0x21   : > { %5990 = vmatmul.mubr.msk.bf16.gmra.mrb[4].mxu1 %vm606_vm0, %v554_v44  ;;  %v476_v15 = vld [vmem:[%s6703_s29 + $0x2a8] sm:$0xff]  ;;  %v560_v17 = vpack.c.bf16 %v474_v12, %v473_v10  ;;  %v533_v18 = vpack.c.bf16 %v420_v13, %v419_v11  ;;  %v421_v20 = vld [vmem:[%s6703_s29 + $0xf0] sm:$0xff]  ;;  %v422_v21 = vld [vmem:[%s6703_s29 + $0xf8] sm:$0xff] }
  0x22   : > { %5993 = vmatprep.mubr.msk.bf16.mxu1 %vm606_vm0, %v555_v46  ;;  %6054 = vmatpush3.bf16.msra.mxu1 %v6599_v36  ;;  %v561_v19 = vpack.c.bf16 %v476_v15, %v475_v14  ;;  %v477_v23 = vld [vmem:[%s6703_s29 + $0x2b0] sm:$0xff]  ;;  %v478_v24 = vld [vmem:[%s6703_s29 + $0x2b8] sm:$0xff]  ;;  %v424_v25 = vld [vmem:[%s6703_s29 + $0x108] sm:$0xff]  ;;  %v534_v28 = vpack.c.bf16 %v422_v21, %v421_v20 }
  0x23   : > { %6055 = vmatprep.subr.bf16.mxu1 %v6600_v47  ;;  %v480_v27 = vld [vmem:[%s6703_s29 + $0x2c8] sm:$0xff]  ;;  %v562_v29 = vpack.c.bf16 %v478_v24, %v477_v23  ;;  %v425_v32 = vld [vmem:[%s6703_s29 + $0x110] sm:$0xff]  ;;  %v426_v33 = vld [vmem:[%s6703_s29 + $0x118] sm:$0xff] }
  0x24   : > { %5930 = vmatmul.mubr.msk.bf16.gmra.mrb[8].mxu0 %vm606_vm0, %v524_v22  ;;  %v423_v22 = vld [vmem:[%s6703_s29 + $0x100] sm:$0xff]  ;;  %v481_v35 = vld [vmem:[%s6703_s29 + $0x2d0] sm:$0xff]  ;;  %v482_v36 = vld [vmem:[%s6703_s29 + $0x2d8] sm:$0xff]  ;;  %v536_v40 = vpack.c.bf16 %v426_v33, %v425_v32 }
  0x25   : > { %5933 = vmatprep.mubr.msk.bf16.mxu0 %vm606_vm0, %v525_v26  ;;  %v479_v26 = vld [vmem:[%s6703_s29 + $0x2c0] sm:$0xff]  ;;  %v535_v30 = vpack.c.bf16 %v424_v25, %v423_v22  ;;  %v428_v37 = vld [vmem:[%s6703_s29 + $0x128] sm:$0xff]  ;;  %v564_v41 = vpack.c.bf16 %v482_v36, %v481_v35  ;;  %v429_v44 = vld [vmem:[%s6703_s29 + $0x130] sm:$0xff] }
  0x26   : > { %6056 = vmatpush3.bf16.msra.mxu1 %v6600_v47  ;;  %v563_v31 = vpack.c.bf16 %v480_v27, %v479_v26  ;;  %v427_v34 = vld [vmem:[%s6703_s29 + $0x120] sm:$0xff]  ;;  %v484_v39 = vld [vmem:[%s6703_s29 + $0x2e8] sm:$0xff]  ;;  %v485_v47 = vld [vmem:[%s6703_s29 + $0x2f0] sm:$0xff] }
  0x27   : > { %v483_v38 = vld [vmem:[%s6703_s29 + $0x2e0] sm:$0xff]  ;;  %v537_v42 = vpack.c.bf16 %v428_v37, %v427_v34  ;;  %v486_v48 = vld [vmem:[%s6703_s29 + $0x2f8] sm:$0xff]  ;;  %v432_v49 = vld [vmem:[%s6703_s29 + $0x148] sm:$0xff] }
  0x28   : > { %v431_v46 = vld [vmem:[%s6703_s29 + $0x140] sm:$0xff]  ;;  %v488_v51 = vld [vmem:[%s6703_s29 + $0x308] sm:$0xff]  ;;  %v566_v53 = vpack.c.bf16 %v486_v48, %v485_v47  ;;  %v490_v60 = vld [vmem:[%s6703_s29 + $0x318] sm:$0xff] }
  0x29   : > { %5994 = vmatmul.mubr.msk.bf16.gmra.mrb[8].mxu1 %vm606_vm0, %v556_v57  ;;  %v487_v50 = vld [vmem:[%s6703_s29 + $0x300] sm:$0xff]  ;;  %v539_v54 = vpack.c.bf16 %v432_v49, %v431_v46  ;;  %v434_v57 = vld [vmem:[%s6703_s29 + $0x158] sm:$0xff]  ;;  %v436_v61 = vld [vmem:[%s6703_s29 + $0x168] sm:$0xff] }
  0x2a   : > { %5997 = vmatprep.mubr.msk.bf16.mxu1 %vm606_vm0, %v557_v59  ;;  %v567_v55 = vpack.c.bf16 %v488_v51, %v487_v50  ;;  %v489_v59 = vld [vmem:[%s6703_s29 + $0x310] sm:$0xff]  ;;  %v491_v62 = vld [vmem:[%s6703_s29 + $0x320] sm:$0xff]  ;;  %v492_v63 = vld [vmem:[%s6703_s29 + $0x328] sm:$0xff] }
  0x2b   : > { %v568_v1 = vpack.c.bf16 %v490_v60, %v489_v59  ;;  %v569_v3 = vpack.c.bf16 %v492_v63, %v491_v62  ;;  %v494_v8 = vld [vmem:[%s6703_s29 + $0x338] sm:$0xff]  ;;  %v440_v9 = vld [vmem:[%s6703_s29 + $0x188] sm:$0xff]  ;;  %v495_v10 = vld [vmem:[%s6703_s29 + $0x340] sm:$0xff] }
  0x2c   : > { %5934 = vmatmul.mubr.msk.bf16.gmra.mrb[12].mxu0 %vm606_vm0, %v526_v43  ;;  %v565_v43 = vpack.c.bf16 %v484_v39, %v483_v38  ;;  %v496_v11 = vld [vmem:[%s6703_s29 + $0x348] sm:$0xff]  ;;  %v498_v20 = vld [vmem:[%s6703_s29 + $0x358] sm:$0xff]  ;;  %v499_v22 = vld [vmem:[%s6703_s29 + $0x360] sm:$0xff] }
  0x2d   : > { %5937 = vmatprep.mubr.msk.bf16.mxu0 %vm606_vm0, %v527_v45  ;;  %v430_v45 = vld [vmem:[%s6703_s29 + $0x138] sm:$0xff]  ;;  %v571_v15 = vpack.c.bf16 %v496_v11, %v495_v10  ;;  %v444_v21 = vld [vmem:[%s6703_s29 + $0x1a8] sm:$0xff]  ;;  %v503_v34 = vld [vmem:[%s6703_s29 + $0x380] sm:$0xff] }
  0x2e   : > { %v538_v52 = vpack.c.bf16 %v430_v45, %v429_v44  ;;  %v500_v23 = vld [vmem:[%s6703_s29 + $0x368] sm:$0xff]  ;;  %v502_v32 = vld [vmem:[%s6703_s29 + $0x378] sm:$0xff]  ;;  %v507_v46 = vld [vmem:[%s6703_s29 + $0x3a0] sm:$0xff] }
  0x2f   : > { %v573_v27 = vpack.c.bf16 %v500_v23, %v499_v22  ;;  %v448_v33 = vld [vmem:[%s6703_s29 + $0x1c8] sm:$0xff]  ;;  %v506_v44 = vld [vmem:[%s6703_s29 + $0x398] sm:$0xff]  ;;  %v515_v63 = vld [vmem:[%s6703_s29 + $0x3e0] sm:$0xff] }
  0x30   : > { %v504_v35 = vld [vmem:[%s6703_s29 + $0x388] sm:$0xff]  ;;  %v514_v62 = vld [vmem:[%s6703_s29 + $0x3d8] sm:$0xff] }
  0x31   : > { %5998 = vmatmul.mubr.msk.bf16.gmra.mrb[12].mxu1 %vm606_vm0, %v558_v5  ;;  %v438_v5 = vld [vmem:[%s6703_s29 + $0x178] sm:$0xff]  ;;  %v575_v39 = vpack.c.bf16 %v504_v35, %v503_v34  ;;  %v452_v45 = vld [vmem:[%s6703_s29 + $0x1e8] sm:$0xff] }
  0x32   : > { %6001 = vmatprep.mubr.msk.bf16.mxu1 %vm606_vm0, %v559_v7  ;;  %v493_v7 = vld [vmem:[%s6703_s29 + $0x330] sm:$0xff]  ;;  %v508_v47 = vld [vmem:[%s6703_s29 + $0x3a8] sm:$0xff] }
  0x33   : > { %v570_v13 = vpack.c.bf16 %v494_v8, %v493_v7  ;;  %v577_v51 = vpack.c.bf16 %v508_v47, %v507_v46  ;;  %v6912_v7 = vld [vmem:[%s8222_s2] ss:$0 sm:$0xff] }
  0x34   : > { %5938 = vmatmul.mubr.msk.bf16.gmra.mrb[16].mxu0 %vm606_vm0, %v528_v56  ;;  %v433_v56 = vld [vmem:[%s6703_s29 + $0x150] sm:$0xff] }
  0x35   : > { %5941 = vmatprep.mubr.msk.bf16.mxu0 %vm606_vm0, %v529_v58  ;;  %v435_v58 = vld [vmem:[%s6703_s29 + $0x160] sm:$0xff]  ;;  %v540_v0 = vpack.c.bf16 %v434_v57, %v433_v56  ;;  %v512_v57 = vld [vmem:[%s6703_s29 + $0x3c8] sm:$0xff] }
  0x36   : > { %v541_v2 = vpack.c.bf16 %v436_v61, %v435_v58  ;;  %v511_v56 = vld [vmem:[%s6703_s29 + $0x3c0] sm:$0xff]  ;;  %v513_v61 = vld [vmem:[%s6703_s29 + $0x3d0] sm:$0xff] }
  0x37   : > { %v579_v60 = vpack.c.bf16 %v512_v57, %v511_v56 }
  0x39   : > { %6002 = vmatmul.mubr.msk.bf16.gmra.mrb[16].mxu1 %vm606_vm0, %v560_v17  ;;  %v442_v17 = vld [vmem:[%s6703_s29 + $0x198] sm:$0xff] }
  0x3a   : > { %6005 = vmatprep.mubr.msk.bf16.mxu1 %vm606_vm0, %v561_v19  ;;  %v497_v19 = vld [vmem:[%s6703_s29 + $0x350] sm:$0xff] }
  0x3b   : > { %v572_v25 = vpack.c.bf16 %v498_v20, %v497_v19 }
  0x3c   : > { %5942 = vmatmul.mubr.msk.bf16.gmra.mrb[20].mxu0 %vm606_vm0, %v530_v4  ;;  %v437_v4 = vld [vmem:[%s6703_s29 + $0x170] sm:$0xff] }
  0x3d   : > { %5945 = vmatprep.mubr.msk.bf16.mxu0 %vm606_vm0, %v531_v6  ;;  %v439_v6 = vld [vmem:[%s6703_s29 + $0x180] sm:$0xff]  ;;  %v542_v12 = vpack.c.bf16 %v438_v5, %v437_v4  ;;  %v518_v4 = vld [vmem:[%s6703_s29 + $0x3f8] sm:$0xff] }
  0x3e   : > { %v543_v14 = vpack.c.bf16 %v440_v9, %v439_v6  ;;  %v6601_v6 = vld [vmem:[%s8225_s5] sm:$0xff]  }
  0x3f   : > { %6185 = vmatprep.subr.bf16.mxu0 %v6601_v6 }
  0x40   : > { %6186 = vmatpush3.bf16.msra.mxu0 %v6601_v6 }
  0x41   : > { %6006 = vmatmul.mubr.msk.bf16.gmra.mrb[20].mxu1 %vm606_vm0, %v562_v29  ;;  %v446_v29 = vld [vmem:[%s6703_s29 + $0x1b8] sm:$0xff] }
  0x42   : > { %6009 = vmatprep.mubr.msk.bf16.mxu1 %vm606_vm0, %v563_v31  ;;  %v501_v31 = vld [vmem:[%s6703_s29 + $0x370] sm:$0xff] }
  0x43   : > { %v574_v37 = vpack.c.bf16 %v502_v32, %v501_v31 }
  0x44   : > { %5946 = vmatmul.mubr.msk.bf16.gmra.mrb[24].mxu0 %vm606_vm0, %v532_v16  ;;  %v441_v16 = vld [vmem:[%s6703_s29 + $0x190] sm:$0xff] }
  0x45   : > { %5949 = vmatprep.mubr.msk.bf16.mxu0 %vm606_vm0, %v533_v18  ;;  %v443_v18 = vld [vmem:[%s6703_s29 + $0x1a0] sm:$0xff]  ;;  %v544_v24 = vpack.c.bf16 %v442_v17, %v441_v16  ;;  %v6602_v16 = vld [vmem:[%s8225_s5 + $0x8] sm:$0xff]  }
  0x46   : > { %v545_v26 = vpack.c.bf16 %v444_v21, %v443_v18  ;;  %6187 = vmatprep.subr.bf16.mxu0 %v6602_v16 }
  0x47   : > { %6188 = vmatpush3.bf16.msra.mxu0 %v6602_v16 }
  0x49   : > { %6010 = vmatmul.mubr.msk.bf16.gmra.mrb[24].mxu1 %vm606_vm0, %v564_v41  ;;  %v450_v41 = vld [vmem:[%s6703_s29 + $0x1d8] sm:$0xff] }
  0x4a   : > { %6013 = vmatprep.mubr.msk.bf16.mxu1 %vm606_vm0, %v565_v43  ;;  %v505_v43 = vld [vmem:[%s6703_s29 + $0x390] sm:$0xff] }
  0x4b   : > { %v576_v49 = vpack.c.bf16 %v506_v44, %v505_v43 }
  0x4c   : > { %5950 = vmatmul.mubr.msk.bf16.gmra.mrb[28].mxu0 %vm606_vm0, %v534_v28  ;;  %v445_v28 = vld [vmem:[%s6703_s29 + $0x1b0] sm:$0xff] }
  0x4d   : > { %5953 = vmatprep.mubr.msk.bf16.mxu0 %vm606_vm0, %v535_v30  ;;  %v447_v30 = vld [vmem:[%s6703_s29 + $0x1c0] sm:$0xff]  ;;  %v546_v36 = vpack.c.bf16 %v446_v29, %v445_v28 }
  0x4e   : > { %v547_v38 = vpack.c.bf16 %v448_v33, %v447_v30 }
  0x51   : > { %6014 = vmatmul.mubr.msk.bf16.gmra.mrb[28].mxu1 %vm606_vm0, %v566_v53  ;;  %v454_v53 = vld [vmem:[%s6703_s29 + $0x1f8] sm:$0xff] }
  0x52   : > { %6017 = vmatprep.mubr.msk.bf16.mxu1 %vm606_vm0, %v567_v55  ;;  %v510_v55 = vld [vmem:[%s6703_s29 + $0x3b8] sm:$0xff] }
  0x54   : > { %5954 = vmatmul.mubr.msk.bf16.gmra.mrb[32].mxu0 %vm606_vm0, %v536_v40  ;;  %v449_v40 = vld [vmem:[%s6703_s29 + $0x1d0] sm:$0xff] }
  0x55   : > { %5957 = vmatprep.mubr.msk.bf16.mxu0 %vm606_vm0, %v537_v42  ;;  %v451_v42 = vld [vmem:[%s6703_s29 + $0x1e0] sm:$0xff]  ;;  %v548_v48 = vpack.c.bf16 %v450_v41, %v449_v40 }
  0x56   : > { %v549_v50 = vpack.c.bf16 %v452_v45, %v451_v42 }
  0x59   : > { %6018 = vmatmul.mubr.msk.bf16.gmra.mrb[32].mxu1 %vm606_vm0, %v568_v1  ;;  %v580_v1 = vpack.c.bf16 %v514_v62, %v513_v61 }
  0x5a   : > { %6021 = vmatprep.mubr.msk.bf16.mxu1 %vm606_vm0, %v569_v3  ;;  %v517_v3 = vld [vmem:[%s6703_s29 + $0x3f0] sm:$0xff] }
  0x5b   : > { %v582_v5 = vpack.c.bf16 %v518_v4, %v517_v3 }
  0x5c   : > { %5958 = vmatmul.mubr.msk.bf16.gmra.mrb[36].mxu0 %vm606_vm0, %v538_v52  ;;  %v453_v52 = vld [vmem:[%s6703_s29 + $0x1f0] sm:$0xff] }
  0x5d   : > { %5961 = vmatprep.mubr.msk.bf16.mxu0 %vm606_vm0, %v539_v54  ;;  %v509_v54 = vld [vmem:[%s6703_s29 + $0x3b0] sm:$0xff]  ;;  %v550_v58 = vpack.c.bf16 %v454_v53, %v453_v52 }
  0x5e   : > { %v578_v59 = vpack.c.bf16 %v510_v55, %v509_v54 }
  0x61   : > { %6022 = vmatmul.mubr.msk.bf16.gmra.mrb[36].mxu1 %vm606_vm0, %v570_v13 }
  0x62   : > { %6025 = vmatprep.mubr.msk.bf16.mxu1 %vm606_vm0, %v571_v15 }
  0x64   : > { %5962 = vmatmul.mubr.msk.bf16.gmra.mrb[40].mxu0 %vm606_vm0, %v540_v0  ;;  %v516_v0 = vld [vmem:[%s6703_s29 + $0x3e8] sm:$0xff] }
  0x65   : > { %5965 = vmatprep.mubr.msk.bf16.mxu0 %vm606_vm0, %v541_v2  ;;  %v581_v2 = vpack.c.bf16 %v516_v0, %v515_v63 }
  0x69   : > { %6026 = vmatmul.mubr.msk.bf16.gmra.mrb[40].mxu1 %vm606_vm0, %v572_v25 }
  0x6a   : > { %6029 = vmatprep.mubr.msk.bf16.mxu1 %vm606_vm0, %v573_v27 }
  0x6c   : > { %5966 = vmatmul.mubr.msk.bf16.gmra.mrb[44].mxu0 %vm606_vm0, %v542_v12 }
  0x6d   : > { %5969 = vmatprep.mubr.msk.bf16.mxu0 %vm606_vm0, %v543_v14 }
  0x71   : > { %6030 = vmatmul.mubr.msk.bf16.gmra.mrb[44].mxu1 %vm606_vm0, %v574_v37 }
  0x72   : > { %6033 = vmatprep.mubr.msk.bf16.mxu1 %vm606_vm0, %v575_v39 }
  0x74   : > { %5970 = vmatmul.mubr.msk.bf16.gmra.mrb[48].mxu0 %vm606_vm0, %v544_v24 }
  0x75   : > { %5973 = vmatprep.mubr.msk.bf16.mxu0 %vm606_vm0, %v545_v26 }
  0x79   : > { %6034 = vmatmul.mubr.msk.bf16.gmra.mrb[48].mxu1 %vm606_vm0, %v576_v49 }
  0x7a   : > { %6037 = vmatprep.mubr.msk.bf16.mxu1 %vm606_vm0, %v577_v51 }
  0x7c   : > { %5974 = vmatmul.mubr.msk.bf16.gmra.mrb[52].mxu0 %vm606_vm0, %v546_v36 }
  0x7d   : > { %5977 = vmatprep.mubr.msk.bf16.mxu0 %vm606_vm0, %v547_v38 }
  0x81   : > { %6038 = vmatmul.mubr.msk.bf16.gmra.mrb[52].mxu1 %vm606_vm0, %v578_v59 }
  0x82   : > { %6041 = vmatprep.mubr.msk.bf16.mxu1 %vm606_vm0, %v579_v60 }
  0x84   : > { %5978 = vmatmul.mubr.msk.bf16.gmra.mrb[56].mxu0 %vm606_vm0, %v548_v48 }
  0x85   : > { %5981 = vmatprep.mubr.msk.bf16.mxu0 %vm606_vm0, %v549_v50 }
  0x89   : > { %6042 = vmatmul.mubr.msk.bf16.gmra.mrb[56].mxu1 %vm606_vm0, %v580_v1 }
  0x8a   : > { %6045 = vmatprep.mubr.msk.bf16.mxu1 %vm606_vm0, %v581_v2 }
  0x8c   : > { %5982 = vmatmul.mubr.msk.bf16.gmra.mrb[60].mxu0 %vm606_vm0, %v550_v58 }
  0x91   : > { %6046 = vmatmul.mubr.msk.bf16.gmra.mrb[60].mxu1 %vm606_vm0, %v582_v5 }
  0xe7   : > { %v5923_v8 = vpop.f32.mrb[0].mxu0 }
  0xe8   : > { %v842_v9 = vadd.f32 %v5923_v8, %v6912_v7  ;;  %v833_v10 = vpop.f32.mrb[1].mxu0 }
  0xe9   : > { %v834_v11 = vadd.f32 %v6912_v7, %v833_v10  ;;  %v5924_v12 = vpop.f32.mrb[2].mxu0 }
  0xea   : > { %v845_v13 = vadd.f32 %v5924_v12, %v6912_v7  ;;  %v836_v14 = vpop.f32.mrb[3].mxu0  ;;  %v1346_v17 = vmax.f32 %v842_v9, 0.0 }
  0xeb   : > { %v837_v15 = vadd.f32 %v6912_v7, %v836_v14  ;;  %v1344_v19 = vmax.f32 %v834_v11, 0.0 }
  0xec   : > { %v1347_v18 = vmax.f32 %v845_v13, 0.0  ;;  %v5987_v38 = vpop.f32.mrb[0].mxu1 }
  0xed   : > { %v1345_v20 = vmax.f32 %v837_v15, 0.0  ;;  %v1098_v41 = vadd.f32 %v5987_v38, %v6912_v7  ;;  %v1089_v42 = vpop.f32.mrb[1].mxu1 }
  0xee   : > { %v1473_v21 = vpack.c.bf16 %v1347_v18, %v1346_v17  ;;  %v1090_v45 = vadd.f32 %v6912_v7, %v1089_v42  ;;  %v5988_v46 = vpop.f32.mrb[2].mxu1 }
  0xef   : > { %v1472_v22 = vpack.c.bf16 %v1345_v20, %v1344_v19  ;;  %v5927_v23 = vpop.f32.mrb[4].mxu0  ;;  %v1410_v49 = vmax.f32 %v1098_v41, 0.0  ;;  %v1101_v50 = vadd.f32 %v5988_v46, %v6912_v7  ;;  %v1092_v51 = vpop.f32.mrb[3].mxu1 }
  0xf0   : > { %v858_v24 = vadd.f32 %v5927_v23, %v6912_v7  ;;  %v849_v25 = vpop.f32.mrb[5].mxu0  ;;  %v1408_v53 = vmax.f32 %v1090_v45, 0.0  ;;  %v1093_v54 = vadd.f32 %v6912_v7, %v1092_v51 }
  0xf1   : > { %v850_v26 = vadd.f32 %v6912_v7, %v849_v25  ;;  %v5928_v27 = vpop.f32.mrb[6].mxu0  ;;  %6057 = vmatprep.mubr.msk.bf16.mxu1 %vm1575_vm1, %v1472_v22  ;;  %v1411_v57 = vmax.f32 %v1101_v50, 0.0 }
  0xf2   : > { %v861_v28 = vadd.f32 %v5928_v27, %v6912_v7  ;;  %v852_v29 = vpop.f32.mrb[7].mxu0  ;;  %6058 = vmatmul.mubr.msk.bf16.vlgmr.msra.gmra.mrb[64].mxu1 %vm1575_vm1, %v1473_v21  ;;  %v1350_v31 = vmax.f32 %v858_v24, 0.0  ;;  %v1409_v60 = vmax.f32 %v1093_v54, 0.0 }
  0xf3   : > { %v853_v30 = vadd.f32 %v6912_v7, %v852_v29  ;;  %v1348_v33 = vmax.f32 %v850_v26, 0.0  ;;  %v6937_v62 = vpack.c.bf16 %v1411_v57, %v1410_v49 }
  0xf4   : > { %v1351_v32 = vmax.f32 %v861_v28, 0.0  ;;  %v6939_v1 = vpack.c.bf16 %v1409_v60, %v1408_v53  ;;  %v5991_v2 = vpop.f32.mrb[4].mxu1 }
  0xf5   : > { %v1349_v34 = vmax.f32 %v853_v30, 0.0  ;;  %v1114_v5 = vadd.f32 %v5991_v2, %v6912_v7  ;;  %v1105_v6 = vpop.f32.mrb[5].mxu1 }
  0xf6   : > { %v1475_v35 = vpack.c.bf16 %v1351_v32, %v1350_v31  ;;  %v1106_v10 = vadd.f32 %v6912_v7, %v1105_v6  ;;  %v5992_v11 = vpop.f32.mrb[6].mxu1 }
  0xf7   : > { %v1474_v36 = vpack.c.bf16 %v1349_v34, %v1348_v33  ;;  %v5931_v37 = vpop.f32.mrb[8].mxu0  ;;  %v1414_v14 = vmax.f32 %v1114_v5, 0.0  ;;  %v1117_v15 = vadd.f32 %v5992_v11, %v6912_v7  ;;  %v1108_v16 = vpop.f32.mrb[7].mxu1 }
  0xf8   : > { %v874_v39 = vadd.f32 %v5931_v37, %v6912_v7  ;;  %v865_v40 = vpop.f32.mrb[9].mxu0  ;;  %v1412_v18 = vmax.f32 %v1106_v10, 0.0  ;;  %v1109_v19 = vadd.f32 %v6912_v7, %v1108_v16 }
  0xf9   : > { %v866_v43 = vadd.f32 %v6912_v7, %v865_v40  ;;  %v5932_v44 = vpop.f32.mrb[10].mxu0  ;;  %6061 = vmatprep.mubr.msk.bf16.mxu1 %vm1575_vm1, %v1474_v36  ;;  %v1415_v22 = vmax.f32 %v1117_v15, 0.0 }
  0xfa   : > { %v877_v47 = vadd.f32 %v5932_v44, %v6912_v7  ;;  %v868_v48 = vpop.f32.mrb[11].mxu0  ;;  %6062 = vmatmul.mubr.msk.bf16.gmra.mrb[68].mxu1 %vm1575_vm1, %v1475_v35  ;;  %v1354_v55 = vmax.f32 %v874_v39, 0.0  ;;  %v1413_v25 = vmax.f32 %v1109_v19, 0.0 }
  0xfb   : > { %v869_v52 = vadd.f32 %v6912_v7, %v868_v48  ;;  %v1352_v58 = vmax.f32 %v866_v43, 0.0  ;;  %v6951_v27 = vpack.c.bf16 %v1415_v22, %v1414_v14  ;;  %v6603_v48 = vld [vmem:[%s8225_s5 + $0x10] sm:$0xff]  }
  0xfc   : > { %v1355_v56 = vmax.f32 %v877_v47, 0.0  ;;  %v6953_v30 = vpack.c.bf16 %v1413_v25, %v1412_v18  ;;  %v5995_v31 = vpop.f32.mrb[8].mxu1  ;;  %6189 = vmatprep.subr.bf16.mxu0 %v6603_v48 }
  0xfd   : > { %v1353_v59 = vmax.f32 %v869_v52, 0.0  ;;  %v1130_v34 = vadd.f32 %v5995_v31, %v6912_v7  ;;  %v1121_v35 = vpop.f32.mrb[9].mxu1  ;;  %6190 = vmatpush3.bf16.msra.mxu0 %v6603_v48 }
  0xfe   : > { %v1477_v61 = vpack.c.bf16 %v1355_v56, %v1354_v55  ;;  %v1122_v38 = vadd.f32 %v6912_v7, %v1121_v35  ;;  %v5996_v39 = vpop.f32.mrb[10].mxu1 }
  0xff   : > { %v1476_v63 = vpack.c.bf16 %v1353_v59, %v1352_v58  ;;  %v5935_v0 = vpop.f32.mrb[12].mxu0  ;;  %v1418_v42 = vmax.f32 %v1130_v34, 0.0  ;;  %v1133_v43 = vadd.f32 %v5996_v39, %v6912_v7  ;;  %v1124_v44 = vpop.f32.mrb[11].mxu1 }
 0x100   : > { %v890_v3 = vadd.f32 %v5935_v0, %v6912_v7  ;;  %v881_v4 = vpop.f32.mrb[13].mxu0  ;;  %v1416_v46 = vmax.f32 %v1122_v38, 0.0  ;;  %v1125_v47 = vadd.f32 %v6912_v7, %v1124_v44 }
 0x101   : > { %v882_v8 = vadd.f32 %v6912_v7, %v881_v4  ;;  %v5936_v9 = vpop.f32.mrb[14].mxu0  ;;  %6065 = vmatprep.mubr.msk.bf16.mxu1 %vm1575_vm1, %v1476_v63  ;;  %v1419_v51 = vmax.f32 %v1133_v43, 0.0 }
 0x102   : > { %v893_v12 = vadd.f32 %v5936_v9, %v6912_v7  ;;  %v884_v13 = vpop.f32.mrb[15].mxu0  ;;  %6066 = vmatmul.mubr.msk.bf16.gmra.mrb[72].mxu1 %vm1575_vm1, %v1477_v61  ;;  %v1358_v20 = vmax.f32 %v890_v3, 0.0  ;;  %v1417_v54 = vmax.f32 %v1125_v47, 0.0 }
 0x103   : > { %v885_v17 = vadd.f32 %v6912_v7, %v884_v13  ;;  %v1356_v23 = vmax.f32 %v882_v8, 0.0  ;;  %v6968_v56 = vpack.c.bf16 %v1419_v51, %v1418_v42 }
 0x104   : > { %v1359_v21 = vmax.f32 %v893_v12, 0.0  ;;  %v6970_v59 = vpack.c.bf16 %v1417_v54, %v1416_v46  ;;  %v5999_v60 = vpop.f32.mrb[12].mxu1 }
 0x105   : > { %v1357_v24 = vmax.f32 %v885_v17, 0.0  ;;  %v1146_v0 = vadd.f32 %v5999_v60, %v6912_v7  ;;  %v1137_v2 = vpop.f32.mrb[13].mxu1 }
 0x106   : > { %v1479_v26 = vpack.c.bf16 %v1359_v21, %v1358_v20  ;;  %v1138_v5 = vadd.f32 %v6912_v7, %v1137_v2  ;;  %v6000_v6 = vpop.f32.mrb[14].mxu1 }
 0x107   : > { %v1478_v28 = vpack.c.bf16 %v1357_v24, %v1356_v23  ;;  %v5939_v29 = vpop.f32.mrb[16].mxu0  ;;  %v1422_v10 = vmax.f32 %v1146_v0, 0.0  ;;  %v1149_v11 = vadd.f32 %v6000_v6, %v6912_v7  ;;  %v1140_v12 = vpop.f32.mrb[15].mxu1 }
 0x108   : > { %v906_v32 = vadd.f32 %v5939_v29, %v6912_v7  ;;  %v897_v33 = vpop.f32.mrb[17].mxu0  ;;  %v1420_v14 = vmax.f32 %v1138_v5, 0.0  ;;  %v1141_v15 = vadd.f32 %v6912_v7, %v1140_v12 }
 0x109   : > { %v898_v36 = vadd.f32 %v6912_v7, %v897_v33  ;;  %v5940_v37 = vpop.f32.mrb[18].mxu0  ;;  %6069 = vmatprep.mubr.msk.bf16.mxu1 %vm1575_vm1, %v1478_v28  ;;  %v1423_v18 = vmax.f32 %v1149_v11, 0.0 }
 0x10a   : > { %v909_v40 = vadd.f32 %v5940_v37, %v6912_v7  ;;  %v900_v41 = vpop.f32.mrb[19].mxu0  ;;  %6070 = vmatmul.mubr.msk.bf16.gmra.mrb[76].mxu1 %vm1575_vm1, %v1479_v26  ;;  %v1362_v49 = vmax.f32 %v906_v32, 0.0  ;;  %v1421_v21 = vmax.f32 %v1141_v15, 0.0 }
 0x10b   : > { %v901_v45 = vadd.f32 %v6912_v7, %v900_v41  ;;  %v1360_v52 = vmax.f32 %v898_v36, 0.0  ;;  %v6982_v23 = vpack.c.bf16 %v1423_v18, %v1422_v10 }
 0x10c   : > { %v1363_v50 = vmax.f32 %v909_v40, 0.0  ;;  %v6984_v26 = vpack.c.bf16 %v1421_v21, %v1420_v14  ;;  %v6003_v28 = vpop.f32.mrb[16].mxu1 }
 0x10d   : > { %v1361_v53 = vmax.f32 %v901_v45, 0.0  ;;  %v1162_v32 = vadd.f32 %v6003_v28, %v6912_v7  ;;  %v1153_v33 = vpop.f32.mrb[17].mxu1 }
 0x10e   : > { %v1481_v55 = vpack.c.bf16 %v1363_v50, %v1362_v49  ;;  %v1154_v36 = vadd.f32 %v6912_v7, %v1153_v33  ;;  %v6004_v37 = vpop.f32.mrb[18].mxu1 }
 0x10f   : > { %v1480_v57 = vpack.c.bf16 %v1361_v53, %v1360_v52  ;;  %v5943_v58 = vpop.f32.mrb[20].mxu0  ;;  %v1426_v40 = vmax.f32 %v1162_v32, 0.0  ;;  %v1165_v41 = vadd.f32 %v6004_v37, %v6912_v7  ;;  %v1156_v42 = vpop.f32.mrb[19].mxu1 }
 0x110   : > { %v922_v61 = vadd.f32 %v5943_v58, %v6912_v7  ;;  %v913_v63 = vpop.f32.mrb[21].mxu0  ;;  %v1424_v44 = vmax.f32 %v1154_v36, 0.0  ;;  %v1157_v45 = vadd.f32 %v6912_v7, %v1156_v42 }
 0x111   : > { %v914_v3 = vadd.f32 %v6912_v7, %v913_v63  ;;  %v5944_v4 = vpop.f32.mrb[22].mxu0  ;;  %6073 = vmatprep.mubr.msk.bf16.mxu1 %vm1575_vm1, %v1480_v57  ;;  %v1427_v48 = vmax.f32 %v1165_v41, 0.0 }
 0x112   : > { %v925_v8 = vadd.f32 %v5944_v4, %v6912_v7  ;;  %v916_v9 = vpop.f32.mrb[23].mxu0  ;;  %6074 = vmatmul.mubr.msk.bf16.gmra.mrb[80].mxu1 %vm1575_vm1, %v1481_v55  ;;  %v1366_v16 = vmax.f32 %v922_v61, 0.0  ;;  %v1425_v51 = vmax.f32 %v1157_v45, 0.0 }
 0x113   : > { %v917_v13 = vadd.f32 %v6912_v7, %v916_v9  ;;  %v1364_v19 = vmax.f32 %v914_v3, 0.0  ;;  %v6996_v53 = vpack.c.bf16 %v1427_v48, %v1426_v40  ;;  %v6605_v48 = vld [vmem:[%s8225_s5 + $0x18] sm:$0xff]  }
 0x114   : > { %v1367_v17 = vmax.f32 %v925_v8, 0.0  ;;  %v6998_v57 = vpack.c.bf16 %v1425_v51, %v1424_v44  ;;  %v6007_v58 = vpop.f32.mrb[20].mxu1  ;;  %6191 = vmatprep.subr.bf16.mxu0 %v6605_v48 }
 0x115   : > { %v1365_v20 = vmax.f32 %v917_v13, 0.0  ;;  %v1178_v63 = vadd.f32 %v6007_v58, %v6912_v7  ;;  %v1169_v0 = vpop.f32.mrb[21].mxu1  ;;  %6192 = vmatpush3.bf16.msra.mxu0 %v6605_v48 }
 0x116   : > { %v1483_v22 = vpack.c.bf16 %v1367_v17, %v1366_v16  ;;  %v1170_v4 = vadd.f32 %v6912_v7, %v1169_v0  ;;  %v6008_v5 = vpop.f32.mrb[22].mxu1 }
 0x117   : > { %v1482_v24 = vpack.c.bf16 %v1365_v20, %v1364_v19  ;;  %v5947_v25 = vpop.f32.mrb[24].mxu0  ;;  %v1430_v9 = vmax.f32 %v1178_v63, 0.0  ;;  %v1181_v10 = vadd.f32 %v6008_v5, %v6912_v7  ;;  %v1172_v11 = vpop.f32.mrb[23].mxu1 }
 0x118   : > { %v938_v29 = vadd.f32 %v5947_v25, %v6912_v7  ;;  %v929_v31 = vpop.f32.mrb[25].mxu0  ;;  %v1428_v13 = vmax.f32 %v1170_v4, 0.0  ;;  %v1173_v14 = vadd.f32 %v6912_v7, %v1172_v11 }
 0x119   : > { %v930_v34 = vadd.f32 %v6912_v7, %v929_v31  ;;  %v5948_v35 = vpop.f32.mrb[26].mxu0  ;;  %6077 = vmatprep.mubr.msk.bf16.mxu1 %vm1575_vm1, %v1482_v24  ;;  %v1431_v17 = vmax.f32 %v1181_v10, 0.0 }
 0x11a   : > { %v941_v38 = vadd.f32 %v5948_v35, %v6912_v7  ;;  %v932_v39 = vpop.f32.mrb[27].mxu0  ;;  %6078 = vmatmul.mubr.msk.bf16.gmra.mrb[84].mxu1 %vm1575_vm1, %v1483_v22  ;;  %v1370_v46 = vmax.f32 %v938_v29, 0.0  ;;  %v1429_v20 = vmax.f32 %v1173_v14, 0.0 }
 0x11b   : > { %v933_v43 = vadd.f32 %v6912_v7, %v932_v39  ;;  %v1368_v49 = vmax.f32 %v930_v34, 0.0  ;;  %v7010_v22 = vpack.c.bf16 %v1431_v17, %v1430_v9 }
 0x11c   : > { %v1371_v47 = vmax.f32 %v941_v38, 0.0  ;;  %v7012_v28 = vpack.c.bf16 %v1429_v20, %v1428_v13  ;;  %v6011_v29 = vpop.f32.mrb[24].mxu1 }
 0x11d   : > { %v1369_v50 = vmax.f32 %v933_v43, 0.0  ;;  %v1194_v33 = vadd.f32 %v6011_v29, %v6912_v7  ;;  %v1185_v34 = vpop.f32.mrb[25].mxu1 }
 0x11e   : > { %v1485_v52 = vpack.c.bf16 %v1371_v47, %v1370_v46  ;;  %v1186_v37 = vadd.f32 %v6912_v7, %v1185_v34  ;;  %v6012_v38 = vpop.f32.mrb[26].mxu1  ;;  %v6604_v47 = vld [vmem:[%s8227_s7] sm:$0xff]  }
 0x11f   : > { %v1484_v54 = vpack.c.bf16 %v1369_v50, %v1368_v49  ;;  %v5951_v55 = vpop.f32.mrb[28].mxu0  ;;  %v1434_v41 = vmax.f32 %v1194_v33, 0.0  ;;  %v1197_v42 = vadd.f32 %v6012_v38, %v6912_v7  ;;  %v1188_v43 = vpop.f32.mrb[27].mxu1  ;;  %6321 = vmatprep.subr.bf16.mxu1 %v6604_v47 }
 0x120   : > { %v954_v60 = vadd.f32 %v5951_v55, %v6912_v7  ;;  %v945_v61 = vpop.f32.mrb[29].mxu0  ;;  %v1432_v45 = vmax.f32 %v1186_v37, 0.0  ;;  %v1189_v46 = vadd.f32 %v6912_v7, %v1188_v43  ;;  %6322 = vmatpush3.bf16.msra.mxu1 %v6604_v47 }
 0x121   : > { %v946_v2 = vadd.f32 %v6912_v7, %v945_v61  ;;  %v5952_v3 = vpop.f32.mrb[30].mxu0  ;;  %6081 = vmatprep.mubr.msk.bf16.mxu1 %vm1575_vm1, %v1484_v54  ;;  %v1435_v51 = vmax.f32 %v1197_v42, 0.0 }
 0x122   : > { %v957_v6 = vadd.f32 %v5952_v3, %v6912_v7  ;;  %v948_v8 = vpop.f32.mrb[31].mxu0  ;;  %6082 = vmatmul.mubr.msk.bf16.gmra.mrb[88].mxu1 %vm1575_vm1, %v1485_v52  ;;  %v1374_v15 = vmax.f32 %v954_v60, 0.0  ;;  %v1433_v55 = vmax.f32 %v1189_v46, 0.0 }
 0x123   : > { %v949_v12 = vadd.f32 %v6912_v7, %v948_v8  ;;  %v1372_v18 = vmax.f32 %v946_v2, 0.0  ;;  %v7030_v60 = vpack.c.bf16 %v1435_v51, %v1434_v41 }
 0x124   : > { %v1375_v16 = vmax.f32 %v957_v6, 0.0  ;;  %v7032_v0 = vpack.c.bf16 %v1433_v55, %v1432_v45  ;;  %v6015_v2 = vpop.f32.mrb[28].mxu1 }
 0x125   : > { %v1373_v19 = vmax.f32 %v949_v12, 0.0  ;;  %v1210_v5 = vadd.f32 %v6015_v2, %v6912_v7  ;;  %v1201_v6 = vpop.f32.mrb[29].mxu1 }
 0x126   : > { %v1487_v21 = vpack.c.bf16 %v1375_v16, %v1374_v15  ;;  %v1202_v10 = vadd.f32 %v6912_v7, %v1201_v6  ;;  %v6016_v11 = vpop.f32.mrb[30].mxu1 }
 0x127   : > { %v1486_v24 = vpack.c.bf16 %v1373_v19, %v1372_v18  ;;  %v5955_v25 = vpop.f32.mrb[32].mxu0  ;;  %v1438_v14 = vmax.f32 %v1210_v5, 0.0  ;;  %v1213_v15 = vadd.f32 %v6016_v11, %v6912_v7  ;;  %v1204_v16 = vpop.f32.mrb[31].mxu1 }
 0x128   : > { %v970_v31 = vadd.f32 %v5955_v25, %v6912_v7  ;;  %v961_v32 = vpop.f32.mrb[33].mxu0  ;;  %v1436_v18 = vmax.f32 %v1202_v10, 0.0  ;;  %v1205_v19 = vadd.f32 %v6912_v7, %v1204_v16 }
 0x129   : > { %v962_v35 = vadd.f32 %v6912_v7, %v961_v32  ;;  %v5956_v36 = vpop.f32.mrb[34].mxu0  ;;  %6085 = vmatprep.mubr.msk.bf16.mxu1 %vm1575_vm1, %v1486_v24  ;;  %v1439_v24 = vmax.f32 %v1213_v15, 0.0 }
 0x12a   : > { %v973_v39 = vadd.f32 %v5956_v36, %v6912_v7  ;;  %v964_v40 = vpop.f32.mrb[35].mxu0  ;;  %6086 = vmatmul.mubr.msk.bf16.gmra.mrb[92].mxu1 %vm1575_vm1, %v1487_v21  ;;  %v1378_v49 = vmax.f32 %v970_v31, 0.0  ;;  %v1437_v31 = vmax.f32 %v1205_v19, 0.0 }
 0x12b   : > { %v965_v44 = vadd.f32 %v6912_v7, %v964_v40  ;;  %v1376_v52 = vmax.f32 %v962_v35, 0.0  ;;  %v7044_v33 = vpack.c.bf16 %v1439_v24, %v1438_v14 }
 0x12c   : > { %v1379_v50 = vmax.f32 %v973_v39, 0.0  ;;  %v7046_v36 = vpack.c.bf16 %v1437_v31, %v1436_v18  ;;  %v6019_v37 = vpop.f32.mrb[32].mxu1 }
 0x12d   : > { %v1377_v54 = vmax.f32 %v965_v44, 0.0  ;;  %v1226_v40 = vadd.f32 %v6019_v37, %v6912_v7  ;;  %v1217_v41 = vpop.f32.mrb[33].mxu1 }
 0x12e   : > { %v1489_v58 = vpack.c.bf16 %v1379_v50, %v1378_v49  ;;  %v1218_v44 = vadd.f32 %v6912_v7, %v1217_v41  ;;  %v6020_v45 = vpop.f32.mrb[34].mxu1 }
 0x12f   : > { %v1488_v61 = vpack.c.bf16 %v1377_v54, %v1376_v52  ;;  %v5959_v63 = vpop.f32.mrb[36].mxu0  ;;  %v1442_v48 = vmax.f32 %v1226_v40, 0.0  ;;  %v1229_v49 = vadd.f32 %v6020_v45, %v6912_v7  ;;  %v1220_v50 = vpop.f32.mrb[35].mxu1 }
 0x130   : > { %v986_v3 = vadd.f32 %v5959_v63, %v6912_v7  ;;  %v977_v4 = vpop.f32.mrb[37].mxu0  ;;  %v1440_v52 = vmax.f32 %v1218_v44, 0.0  ;;  %v1221_v54 = vadd.f32 %v6912_v7, %v1220_v50 }
 0x131   : > { %v978_v8 = vadd.f32 %v6912_v7, %v977_v4  ;;  %v5960_v9 = vpop.f32.mrb[38].mxu0  ;;  %6089 = vmatprep.mubr.msk.bf16.mxu1 %vm1575_vm1, %v1488_v61  ;;  %v1443_v61 = vmax.f32 %v1229_v49, 0.0 }
 0x132   : > { %v989_v12 = vadd.f32 %v5960_v9, %v6912_v7  ;;  %v980_v13 = vpop.f32.mrb[39].mxu0  ;;  %6090 = vmatmul.mubr.msk.bf16.gmra.mrb[96].mxu1 %vm1575_vm1, %v1489_v58  ;;  %v1382_v20 = vmax.f32 %v986_v3, 0.0  ;;  %v1441_v3 = vmax.f32 %v1221_v54, 0.0 }
 0x133   : > { %v981_v17 = vadd.f32 %v6912_v7, %v980_v13  ;;  %v1380_v25 = vmax.f32 %v978_v8, 0.0  ;;  %v7058_v5 = vpack.c.bf16 %v1443_v61, %v1442_v48 }
 0x134   : > { %v1383_v21 = vmax.f32 %v989_v12, 0.0  ;;  %v7060_v9 = vpack.c.bf16 %v1441_v3, %v1440_v52  ;;  %v6023_v10 = vpop.f32.mrb[36].mxu1 }
 0x135   : > { %v1381_v29 = vmax.f32 %v981_v17, 0.0  ;;  %v1242_v13 = vadd.f32 %v6023_v10, %v6912_v7  ;;  %v1233_v14 = vpop.f32.mrb[37].mxu1 }
 0x136   : > { %v1491_v32 = vpack.c.bf16 %v1383_v21, %v1382_v20  ;;  %v1234_v17 = vadd.f32 %v6912_v7, %v1233_v14  ;;  %v6024_v18 = vpop.f32.mrb[38].mxu1 }
 0x137   : > { %v1490_v34 = vpack.c.bf16 %v1381_v29, %v1380_v25  ;;  %v5963_v35 = vpop.f32.mrb[40].mxu0  ;;  %v1446_v21 = vmax.f32 %v1242_v13, 0.0  ;;  %v1245_v24 = vadd.f32 %v6024_v18, %v6912_v7  ;;  %v1236_v25 = vpop.f32.mrb[39].mxu1 }
 0x138   : > { %v1002_v38 = vadd.f32 %v5963_v35, %v6912_v7  ;;  %v993_v39 = vpop.f32.mrb[41].mxu0  ;;  %v1444_v31 = vmax.f32 %v1234_v17, 0.0 }
 0x139   : > { %v994_v42 = vadd.f32 %v6912_v7, %v993_v39  ;;  %v5964_v43 = vpop.f32.mrb[42].mxu0  ;;  %6093 = vmatprep.mubr.msk.bf16.mxu1 %vm1575_vm1, %v1490_v34  ;;  %v1447_v37 = vmax.f32 %v1245_v24, 0.0 }
 0x13a   : > { %v1005_v46 = vadd.f32 %v5964_v43, %v6912_v7  ;;  %v996_v47 = vpop.f32.mrb[43].mxu0  ;;  %6094 = vmatmul.mubr.msk.bf16.gmra.mrb[100].mxu1 %vm1575_vm1, %v1491_v32  ;;  %v1386_v55 = vmax.f32 %v1002_v38, 0.0  ;;  %v1237_v32 = vadd.f32 %v6912_v7, %v1236_v25 }
 0x13b   : > { %v997_v51 = vadd.f32 %v6912_v7, %v996_v47  ;;  %v1384_v63 = vmax.f32 %v994_v42, 0.0  ;;  %v7072_v42 = vpack.c.bf16 %v1447_v37, %v1446_v21 }
 0x13c   : > { %v1387_v58 = vmax.f32 %v1005_v46, 0.0  ;;  %v1445_v40 = vmax.f32 %v1237_v32, 0.0  ;;  %v6027_v46 = vpop.f32.mrb[40].mxu1 }
 0x13d   : > { %v1385_v2 = vmax.f32 %v997_v51, 0.0  ;;  %v1258_v49 = vadd.f32 %v6027_v46, %v6912_v7  ;;  %v1249_v50 = vpop.f32.mrb[41].mxu1 }
 0x13e   : > { %v1493_v4 = vpack.c.bf16 %v1387_v58, %v1386_v55  ;;  %v7074_v45 = vpack.c.bf16 %v1445_v40, %v1444_v31  ;;  %v1250_v54 = vadd.f32 %v6912_v7, %v1249_v50  ;;  %v6028_v55 = vpop.f32.mrb[42].mxu1 }
 0x13f   : > { %v1492_v6 = vpack.c.bf16 %v1385_v2, %v1384_v63  ;;  %v5967_v8 = vpop.f32.mrb[44].mxu0  ;;  %v1450_v63 = vmax.f32 %v1258_v49, 0.0  ;;  %v1261_v2 = vadd.f32 %v6028_v55, %v6912_v7  ;;  %v1252_v3 = vpop.f32.mrb[43].mxu1 }
 0x140   : > { %v1018_v11 = vadd.f32 %v5967_v8, %v6912_v7  ;;  %v1009_v12 = vpop.f32.mrb[45].mxu0  ;;  %v1253_v8 = vadd.f32 %v6912_v7, %v1252_v3 }
 0x141   : > { %v1010_v15 = vadd.f32 %v6912_v7, %v1009_v12  ;;  %v5968_v16 = vpop.f32.mrb[46].mxu0  ;;  %6097 = vmatprep.mubr.msk.bf16.mxu1 %vm1575_vm1, %v1492_v6  ;;  %v1448_v6 = vmax.f32 %v1250_v54, 0.0  ;;  %v1451_v12 = vmax.f32 %v1261_v2, 0.0 }
 0x142   : > { %v1021_v19 = vadd.f32 %v5968_v16, %v6912_v7  ;;  %v1012_v20 = vpop.f32.mrb[47].mxu0  ;;  %6098 = vmatmul.mubr.msk.bf16.gmra.mrb[104].mxu1 %vm1575_vm1, %v1493_v4  ;;  %v1390_v34 = vmax.f32 %v1018_v11, 0.0 }
 0x143   : > { %v1013_v29 = vadd.f32 %v6912_v7, %v1012_v20  ;;  %v1388_v38 = vmax.f32 %v1010_v15, 0.0  ;;  %v1449_v15 = vmax.f32 %v1253_v8, 0.0  ;;  %v7086_v17 = vpack.c.bf16 %v1451_v12, %v1450_v63 }
 0x144   : > { %v1391_v35 = vmax.f32 %v1021_v19, 0.0  ;;  %v6031_v21 = vpop.f32.mrb[44].mxu1 }
 0x145   : > { %v1389_v39 = vmax.f32 %v1013_v29, 0.0  ;;  %v7088_v20 = vpack.c.bf16 %v1449_v15, %v1448_v6  ;;  %v1274_v29 = vadd.f32 %v6031_v21, %v6912_v7  ;;  %v1265_v31 = vpop.f32.mrb[45].mxu1 }
 0x146   : > { %v1495_v41 = vpack.c.bf16 %v1391_v35, %v1390_v34  ;;  %v1266_v35 = vadd.f32 %v6912_v7, %v1265_v31  ;;  %v6032_v37 = vpop.f32.mrb[46].mxu1 }
 0x147   : > { %v1494_v43 = vpack.c.bf16 %v1389_v39, %v1388_v38  ;;  %v5971_v44 = vpop.f32.mrb[48].mxu0  ;;  %v1454_v40 = vmax.f32 %v1274_v29, 0.0 }
 0x148   : > { %v1034_v47 = vadd.f32 %v5971_v44, %v6912_v7  ;;  %v1025_v48 = vpop.f32.mrb[49].mxu0  ;;  %v1452_v46 = vmax.f32 %v1266_v35, 0.0 }
 0x149   : > { %v1026_v51 = vadd.f32 %v6912_v7, %v1025_v48  ;;  %v5972_v52 = vpop.f32.mrb[50].mxu0  ;;  %6101 = vmatprep.mubr.msk.bf16.mxu1 %vm1575_vm1, %v1494_v43  ;;  %v1268_v43 = vpop.f32.mrb[47].mxu1 }
 0x14a   : > { %v1037_v58 = vadd.f32 %v5972_v52, %v6912_v7  ;;  %v1028_v61 = vpop.f32.mrb[51].mxu0  ;;  %6102 = vmatmul.mubr.msk.bf16.gmra.mrb[108].mxu1 %vm1575_vm1, %v1495_v41  ;;  %v1394_v10 = vmax.f32 %v1034_v47, 0.0  ;;  %v1277_v41 = vadd.f32 %v6032_v37, %v6912_v7  ;;  %v1269_v47 = vadd.f32 %v6912_v7, %v1268_v43 }
 0x14b   : > { %v1029_v4 = vadd.f32 %v6912_v7, %v1028_v61  ;;  %v1392_v13 = vmax.f32 %v1026_v51, 0.0 }
 0x14c   : > { %v1395_v11 = vmax.f32 %v1037_v58, 0.0  ;;  %v1455_v50 = vmax.f32 %v1277_v41, 0.0  ;;  %v1453_v54 = vmax.f32 %v1269_v47, 0.0  ;;  %v6035_v3 = vpop.f32.mrb[48].mxu1 }
 0x14d   : > { %v1393_v14 = vmax.f32 %v1029_v4, 0.0  ;;  %v1290_v8 = vadd.f32 %v6035_v3, %v6912_v7 }
 0x14e   : > { %v1497_v16 = vpack.c.bf16 %v1395_v11, %v1394_v10  ;;  %v7100_v58 = vpack.c.bf16 %v1455_v50, %v1454_v40  ;;  %v7102_v2 = vpack.c.bf16 %v1453_v54, %v1452_v46  ;;  %v1281_v10 = vpop.f32.mrb[49].mxu1 }
 0x14f   : > { %v1496_v18 = vpack.c.bf16 %v1393_v14, %v1392_v13  ;;  %v5975_v19 = vpop.f32.mrb[52].mxu0  ;;  %v1282_v13 = vadd.f32 %v6912_v7, %v1281_v10  ;;  %v6036_v14 = vpop.f32.mrb[50].mxu1 }
 0x150   : > { %v1050_v24 = vadd.f32 %v5975_v19, %v6912_v7  ;;  %v1041_v25 = vpop.f32.mrb[53].mxu0  ;;  %v1293_v19 = vadd.f32 %v6036_v14, %v6912_v7  ;;  %v1284_v21 = vpop.f32.mrb[51].mxu1 }
 0x151   : > { %v1042_v32 = vadd.f32 %v6912_v7, %v1041_v25  ;;  %v5976_v34 = vpop.f32.mrb[54].mxu0  ;;  %6105 = vmatprep.mubr.msk.bf16.mxu1 %vm1575_vm1, %v1496_v18  ;;  %v1458_v18 = vmax.f32 %v1290_v8, 0.0  ;;  %v1456_v25 = vmax.f32 %v1282_v13, 0.0  ;;  %v1285_v29 = vadd.f32 %v6912_v7, %v1284_v21 }
 0x152   : > { %v1053_v38 = vadd.f32 %v5976_v34, %v6912_v7  ;;  %v1044_v39 = vpop.f32.mrb[55].mxu0  ;;  %6106 = vmatmul.mubr.msk.bf16.gmra.mrb[112].mxu1 %vm1575_vm1, %v1497_v16  ;;  %v1398_v48 = vmax.f32 %v1050_v24, 0.0  ;;  %v1459_v34 = vmax.f32 %v1293_v19, 0.0 }
 0x153   : > { %v1045_v44 = vadd.f32 %v6912_v7, %v1044_v39  ;;  %v1396_v51 = vmax.f32 %v1042_v32, 0.0 }
 0x154   : > { %v1399_v49 = vmax.f32 %v1053_v38, 0.0  ;;  %v1457_v38 = vmax.f32 %v1285_v29, 0.0  ;;  %v7114_v40 = vpack.c.bf16 %v1459_v34, %v1458_v18  ;;  %v6039_v46 = vpop.f32.mrb[52].mxu1 }
 0x155   : > { %v1397_v52 = vmax.f32 %v1045_v44, 0.0  ;;  %v1297_v50 = vpop.f32.mrb[53].mxu1 }
 0x156   : > { %v1499_v55 = vpack.c.bf16 %v1399_v49, %v1398_v48  ;;  %v7116_v44 = vpack.c.bf16 %v1457_v38, %v1456_v25  ;;  %v1306_v49 = vadd.f32 %v6039_v46, %v6912_v7  ;;  %v1298_v54 = vadd.f32 %v6912_v7, %v1297_v50 }
 0x157   : > { %v1498_v61 = vpack.c.bf16 %v1397_v52, %v1396_v51  ;;  %v5979_v63 = vpop.f32.mrb[56].mxu0 }
 0x158   : > { %v1066_v4 = vadd.f32 %v5979_v63, %v6912_v7  ;;  %v1057_v6 = vpop.f32.mrb[57].mxu0  ;;  %v1462_v3 = vmax.f32 %v1306_v49, 0.0  ;;  %v1460_v10 = vmax.f32 %v1298_v54, 0.0 }
 0x159   : > { %v1058_v11 = vadd.f32 %v6912_v7, %v1057_v6  ;;  %v5980_v12 = vpop.f32.mrb[58].mxu0  ;;  %6109 = vmatprep.mubr.msk.bf16.mxu1 %vm1575_vm1, %v1498_v61 }
 0x15a   : > { %v1069_v15 = vadd.f32 %v5980_v12, %v6912_v7  ;;  %v1060_v16 = vpop.f32.mrb[59].mxu0  ;;  %6110 = vmatmul.mubr.msk.bf16.gmra.mrb[116].mxu1 %vm1575_vm1, %v1499_v55  ;;  %v1402_v31 = vmax.f32 %v1066_v4, 0.0  ;;  %v6040_v55 = vpop.f32.mrb[54].mxu1 }
 0x15b   : > { %v1061_v24 = vadd.f32 %v6912_v7, %v1060_v16  ;;  %v1400_v35 = vmax.f32 %v1058_v11, 0.0  ;;  %v1309_v4 = vadd.f32 %v6040_v55, %v6912_v7  ;;  %v1300_v6 = vpop.f32.mrb[55].mxu1 }
 0x15c   : > { %v1403_v32 = vmax.f32 %v1069_v15, 0.0  ;;  %v1301_v11 = vadd.f32 %v6912_v7, %v1300_v6  ;;  %v6043_v29 = vpop.f32.mrb[56].mxu1 }
 0x15d   : > { %v1401_v37 = vmax.f32 %v1061_v24, 0.0  ;;  %v1463_v14 = vmax.f32 %v1309_v4, 0.0 }
 0x15e   : > { %v1501_v39 = vpack.c.bf16 %v1403_v32, %v1402_v31  ;;  %v1461_v18 = vmax.f32 %v1301_v11, 0.0  ;;  %v1322_v31 = vadd.f32 %v6043_v29, %v6912_v7  ;;  %v1313_v32 = vpop.f32.mrb[57].mxu1 }
 0x15f   : > { %v1500_v41 = vpack.c.bf16 %v1401_v37, %v1400_v35  ;;  %v5983_v43 = vpop.f32.mrb[60].mxu0  ;;  %v7128_v21 = vpack.c.bf16 %v1463_v14, %v1462_v3  ;;  %v1314_v34 = vadd.f32 %v6912_v7, %v1313_v32  ;;  %v6044_v35 = vpop.f32.mrb[58].mxu1 }
 0x160   : > { %v1082_v47 = vadd.f32 %v5983_v43, %v6912_v7  ;;  %v1073_v48 = vpop.f32.mrb[61].mxu0  ;;  %v7130_v25 = vpack.c.bf16 %v1461_v18, %v1460_v10  ;;  %v1466_v37 = vmax.f32 %v1322_v31, 0.0  ;;  %v1325_v38 = vadd.f32 %v6044_v35, %v6912_v7 }
 0x161   : > { %v1074_v51 = vadd.f32 %v6912_v7, %v1073_v48  ;;  %v5984_v52 = vpop.f32.mrb[62].mxu0  ;;  %6113 = vmatprep.mubr.msk.bf16.mxu1 %vm1575_vm1, %v1500_v41  ;;  %v1464_v41 = vmax.f32 %v1314_v34, 0.0 }
 0x162   : > { %v1085_v61 = vadd.f32 %v5984_v52, %v6912_v7  ;;  %v1076_v63 = vpop.f32.mrb[63].mxu0  ;;  %6114 = vmatmul.mubr.msk.bf16.gmra.mrb[120].mxu1 %vm1575_vm1, %v1501_v39  ;;  %v1406_v12 = vmax.f32 %v1082_v47, 0.0  ;;  %v1316_v39 = vpop.f32.mrb[59].mxu1  ;;  %v1467_v46 = vmax.f32 %v1325_v38, 0.0 }
 0x163   : > { %v1077_v8 = vadd.f32 %v6912_v7, %v1076_v63  ;;  %v1404_v15 = vmax.f32 %v1074_v51, 0.0  ;;  %v1317_v43 = vadd.f32 %v6912_v7, %v1316_v39 }
 0x164   : > { %v1407_v13 = vmax.f32 %v1085_v61, 0.0  ;;  %v7140_v48 = vpack.c.bf16 %v1467_v46, %v1466_v37  ;;  %v6047_v50 = vpop.f32.mrb[60].mxu1 }
 0x165   : > { %v1405_v16 = vmax.f32 %v1077_v8, 0.0  ;;  %v1465_v47 = vmax.f32 %v1317_v43, 0.0  ;;  %v1338_v51 = vadd.f32 %v6047_v50, %v6912_v7  ;;  %v1329_v52 = vpop.f32.mrb[61].mxu1 }
 0x166   : > { %v1503_v19 = vpack.c.bf16 %v1407_v13, %v1406_v12  ;;  %v1330_v54 = vadd.f32 %v6912_v7, %v1329_v52  ;;  %v6048_v55 = vpop.f32.mrb[62].mxu1 }
 0x167   : > { %v1502_v24 = vpack.c.bf16 %v1405_v16, %v1404_v15  ;;  %v7142_v49 = vpack.c.bf16 %v1465_v47, %v1464_v41  ;;  %v1341_v61 = vadd.f32 %v6048_v55, %v6912_v7  ;;  %v1332_v63 = vpop.f32.mrb[63].mxu1 }
 0x168   : > { %v1468_v3 = vmax.f32 %v1330_v54, 0.0  ;;  %v1333_v4 = vadd.f32 %v6912_v7, %v1332_v63  ;;  %v6606_v7 = vld [vmem:[%s8227_s7 + $0x8] sm:$0xff]  }
 0x169   : > { %6117 = vmatprep.mubr.msk.bf16.mxu1 %vm1575_vm1, %v1502_v24  ;;  %v1471_v6 = vmax.f32 %v1341_v61, 0.0  ;;  %6323 = vmatprep.subr.bf16.mxu1 %v6606_v7 }
 0x16a   : > { %6118 = vmatmul.mubr.msk.bf16.gmra.mrb[124].mxu1 %vm1575_vm1, %v1503_v19  ;;  %v1469_v8 = vmax.f32 %v1333_v4, 0.0 }
 0x16b   : > { %6121 = vmatprep.mubr.msk.bf16.mxu1 %vm1575_vm1, %v6939_v1  ;;  %v1470_v1 = vmax.f32 %v1338_v51, 0.0  ;;  %6324 = vmatpush3.bf16.msra.mxu1 %v6606_v7 }
 0x16c   : > { %v7154_v11 = vpack.c.bf16 %v1469_v8, %v1468_v3 }
 0x16d   : > { %v7152_v10 = vpack.c.bf16 %v1471_v6, %v1470_v1 }
 0x172   : > { %6122 = vmatmul.mubr.msk.bf16.gmra.mrb[128].mxu1 %vm1575_vm1, %v6937_v62 }
 0x173   : > { %6125 = vmatprep.mubr.msk.bf16.mxu1 %vm1575_vm1, %v6953_v30 }
 0x17a   : > { %6126 = vmatmul.mubr.msk.bf16.gmra.mrb[132].mxu1 %vm1575_vm1, %v6951_v27  ;;  %v7202_v27 = vld [vmem:[%s8224_s4] ss:$0 sm:$0xff] }
 0x17b   : > { %6129 = vmatprep.mubr.msk.bf16.mxu1 %vm1575_vm1, %v6970_v59 }
 0x182   : > { %6130 = vmatmul.mubr.msk.bf16.gmra.mrb[136].mxu1 %vm1575_vm1, %v6968_v56 }
 0x183   : > { %6133 = vmatprep.mubr.msk.bf16.mxu1 %vm1575_vm1, %v6984_v26 }
 0x18a   : > { %6134 = vmatmul.mubr.msk.bf16.gmra.mrb[140].mxu1 %vm1575_vm1, %v6982_v23 }
 0x18b   : > { %6137 = vmatprep.mubr.msk.bf16.mxu1 %vm1575_vm1, %v6998_v57 }
 0x192   : > { %6138 = vmatmul.mubr.msk.bf16.gmra.mrb[144].mxu1 %vm1575_vm1, %v6996_v53 }
 0x193   : > { %6141 = vmatprep.mubr.msk.bf16.mxu1 %vm1575_vm1, %v7012_v28 }
 0x19a   : > { %6142 = vmatmul.mubr.msk.bf16.gmra.mrb[148].mxu1 %vm1575_vm1, %v7010_v22 }
 0x19b   : > { %6145 = vmatprep.mubr.msk.bf16.mxu1 %vm1575_vm1, %v7032_v0 }
 0x1a2   : > { %6146 = vmatmul.mubr.msk.bf16.gmra.mrb[152].mxu1 %vm1575_vm1, %v7030_v60 }
 0x1a3   : > { %6149 = vmatprep.mubr.msk.bf16.mxu1 %vm1575_vm1, %v7046_v36 }
 0x1aa   : > { %6150 = vmatmul.mubr.msk.bf16.gmra.mrb[156].mxu1 %vm1575_vm1, %v7044_v33 }
 0x1ab   : > { %6153 = vmatprep.mubr.msk.bf16.mxu1 %vm1575_vm1, %v7060_v9 }
 0x1b2   : > { %6154 = vmatmul.mubr.msk.bf16.gmra.mrb[160].mxu1 %vm1575_vm1, %v7058_v5 }
 0x1b3   : > { %6157 = vmatprep.mubr.msk.bf16.mxu1 %vm1575_vm1, %v7074_v45 }
 0x1ba   : > { %6158 = vmatmul.mubr.msk.bf16.gmra.mrb[164].mxu1 %vm1575_vm1, %v7072_v42 }
 0x1bb   : > { %6161 = vmatprep.mubr.msk.bf16.mxu1 %vm1575_vm1, %v7088_v20 }
 0x1c2   : > { %6162 = vmatmul.mubr.msk.bf16.gmra.mrb[168].mxu1 %vm1575_vm1, %v7086_v17 }
 0x1c3   : > { %6165 = vmatprep.mubr.msk.bf16.mxu1 %vm1575_vm1, %v7102_v2 }
 0x1c5   : > { %v6059_v62 = vpop.f32.mrb[64].mxu1 }
 0x1c6   : > { %v1802_v30 = vpop.f32.mrb[65].mxu1  ;;  %v1811_v59 = vadd.f32 %v6059_v62, %v7202_v27 }
 0x1c7   : > { %v6060_v56 = vpop.f32.mrb[66].mxu1  ;;  %v1803_v53 = vadd.f32 %v7202_v27, %v1802_v30 }
 0x1c8   : > { %v1814_v23 = vadd.f32 %v6060_v56, %v7202_v27  ;;  %v1805_v26 = vpop.f32.mrb[67].mxu1 }
 0x1c9   : > { %v1806_v57 = vadd.f32 %v7202_v27, %v1805_v26 }
 0x1ca   : > { %v2314_v22 = vpack.c.bf16 %v1814_v23, %v1811_v59  ;;  %6166 = vmatmul.mubr.msk.bf16.gmra.mrb[172].mxu1 %vm1575_vm1, %v7100_v58 }
 0x1cb   : > { %v2313_v28 = vpack.c.bf16 %v1806_v57, %v1803_v53  ;;  %6169 = vmatprep.mubr.msk.bf16.mxu1 %vm1575_vm1, %v7116_v44 }
 0x1cd   : > { %v6063_v60 = vpop.f32.mrb[68].mxu1  ;;  %6193 = vmatprep.mubr.msk.bf16.mxu0 %vm1575_vm1, %v2313_v28 }
 0x1ce   : > { %v1818_v0 = vpop.f32.mrb[69].mxu1  ;;  %6194 = vmatmul.mubr.msk.bf16.vlgmr.msra.gmra.mrb[64].mxu0 %vm1575_vm1, %v2314_v22  ;;  %v1827_v36 = vadd.f32 %v6063_v60, %v7202_v27 }
 0x1cf   : > { %v6064_v33 = vpop.f32.mrb[70].mxu1  ;;  %v1819_v42 = vadd.f32 %v7202_v27, %v1818_v0 }
 0x1d0   : > { %v1830_v5 = vadd.f32 %v6064_v33, %v7202_v27  ;;  %v1821_v9 = vpop.f32.mrb[71].mxu1 }
 0x1d1   : > { %v1822_v45 = vadd.f32 %v7202_v27, %v1821_v9 }
 0x1d2   : > { %v2316_v17 = vpack.c.bf16 %v1830_v5, %v1827_v36  ;;  %6170 = vmatmul.mubr.msk.bf16.gmra.mrb[176].mxu1 %vm1575_vm1, %v7114_v40 }
 0x1d3   : > { %v2315_v20 = vpack.c.bf16 %v1822_v45, %v1819_v42  ;;  %6173 = vmatprep.mubr.msk.bf16.mxu1 %vm1575_vm1, %v7130_v25 }
 0x1d5   : > { %v6067_v58 = vpop.f32.mrb[72].mxu1  ;;  %6197 = vmatprep.mubr.msk.bf16.mxu0 %vm1575_vm1, %v2315_v20 }
 0x1d6   : > { %v1834_v2 = vpop.f32.mrb[73].mxu1  ;;  %6198 = vmatmul.mubr.msk.bf16.gmra.mrb[68].mxu0 %vm1575_vm1, %v2316_v17  ;;  %v1843_v12 = vadd.f32 %v6067_v58, %v7202_v27 }
 0x1d7   : > { %v6068_v44 = vpop.f32.mrb[74].mxu1  ;;  %v1835_v15 = vadd.f32 %v7202_v27, %v1834_v2 }
 0x1d8   : > { %v1846_v13 = vadd.f32 %v6068_v44, %v7202_v27  ;;  %v1837_v14 = vpop.f32.mrb[75].mxu1 }
 0x1d9   : > { %v1838_v40 = vadd.f32 %v7202_v27, %v1837_v14 }
 0x1da   : > { %v2318_v16 = vpack.c.bf16 %v1846_v13, %v1843_v12  ;;  %6174 = vmatmul.mubr.msk.bf16.gmra.mrb[180].mxu1 %vm1575_vm1, %v7128_v21 }
 0x1db   : > { %v2317_v18 = vpack.c.bf16 %v1838_v40, %v1835_v15  ;;  %6177 = vmatprep.mubr.msk.bf16.mxu1 %vm1575_vm1, %v7142_v49  ;;  %v6607_v40 = vld [vmem:[%s8229_s9] sm:$0xff]  }
 0x1dc   : > { %6453 = vmatprep.subr.bf16.mxu0 %v6607_v40 }
 0x1dd   : > { %v6071_v19 = vpop.f32.mrb[76].mxu1  ;;  %6201 = vmatprep.mubr.msk.bf16.mxu0 %vm1575_vm1, %v2317_v18  ;;  %6454 = vmatpush3.bf16.msra.mxu0 %v6607_v40 }
 0x1de   : > { %v1850_v24 = vpop.f32.mrb[77].mxu1  ;;  %6202 = vmatmul.mubr.msk.bf16.gmra.mrb[72].mxu0 %vm1575_vm1, %v2318_v16  ;;  %v1859_v29 = vadd.f32 %v6071_v19, %v7202_v27 }
 0x1df   : > { %v6072_v25 = vpop.f32.mrb[78].mxu1  ;;  %v1851_v34 = vadd.f32 %v7202_v27, %v1850_v24 }
 0x1e0   : > { %v1862_v31 = vadd.f32 %v6072_v25, %v7202_v27  ;;  %v1853_v32 = vpop.f32.mrb[79].mxu1 }
 0x1e1   : > { %v1854_v21 = vadd.f32 %v7202_v27, %v1853_v32 }
 0x1e2   : > { %v2320_v35 = vpack.c.bf16 %v1862_v31, %v1859_v29  ;;  %6178 = vmatmul.mubr.msk.bf16.gmra.mrb[184].mxu1 %vm1575_vm1, %v7140_v48 }
 0x1e3   : > { %v2319_v37 = vpack.c.bf16 %v1854_v21, %v1851_v34  ;;  %6181 = vmatprep.mubr.msk.bf16.mxu1 %vm1575_vm1, %v7154_v11 }
 0x1e5   : > { %v6075_v38 = vpop.f32.mrb[80].mxu1  ;;  %6205 = vmatprep.mubr.msk.bf16.mxu0 %vm1575_vm1, %v2319_v37 }
 0x1e6   : > { %v1866_v39 = vpop.f32.mrb[81].mxu1  ;;  %6206 = vmatmul.mubr.msk.bf16.gmra.mrb[76].mxu0 %vm1575_vm1, %v2320_v35  ;;  %v1875_v43 = vadd.f32 %v6075_v38, %v7202_v27 }
 0x1e7   : > { %v6076_v41 = vpop.f32.mrb[82].mxu1  ;;  %v1867_v49 = vadd.f32 %v7202_v27, %v1866_v39 }
 0x1e8   : > { %v1878_v46 = vadd.f32 %v6076_v41, %v7202_v27  ;;  %v1869_v47 = vpop.f32.mrb[83].mxu1 }
 0x1e9   : > { %v1870_v48 = vadd.f32 %v7202_v27, %v1869_v47 }
 0x1ea   : > { %v2322_v50 = vpack.c.bf16 %v1878_v46, %v1875_v43  ;;  %6182 = vmatmul.mubr.msk.bf16.gmra.mrb[188].mxu1 %vm1575_vm1, %v7152_v10 }
 0x1eb   : > { %v2321_v51 = vpack.c.bf16 %v1870_v48, %v1867_v49 }
 0x1ed   : > { %v6079_v52 = vpop.f32.mrb[84].mxu1  ;;  %6209 = vmatprep.mubr.msk.bf16.mxu0 %vm1575_vm1, %v2321_v51 }
 0x1ee   : > { %v1882_v54 = vpop.f32.mrb[85].mxu1  ;;  %6210 = vmatmul.mubr.msk.bf16.gmra.mrb[80].mxu0 %vm1575_vm1, %v2322_v50  ;;  %v1891_v1 = vadd.f32 %v6079_v52, %v7202_v27 }
 0x1ef   : > { %v6080_v55 = vpop.f32.mrb[86].mxu1  ;;  %v1883_v3 = vadd.f32 %v7202_v27, %v1882_v54 }
 0x1f0   : > { %v1894_v61 = vadd.f32 %v6080_v55, %v7202_v27  ;;  %v1885_v63 = vpop.f32.mrb[87].mxu1 }
 0x1f1   : > { %v1886_v4 = vadd.f32 %v7202_v27, %v1885_v63 }
 0x1f2   : > { %v2324_v6 = vpack.c.bf16 %v1894_v61, %v1891_v1 }
 0x1f3   : > { %v2323_v8 = vpack.c.bf16 %v1886_v4, %v1883_v3 }
 0x1f5   : > { %v6083_v10 = vpop.f32.mrb[88].mxu1  ;;  %6213 = vmatprep.mubr.msk.bf16.mxu0 %vm1575_vm1, %v2323_v8 }
 0x1f6   : > { %v1898_v11 = vpop.f32.mrb[89].mxu1  ;;  %6214 = vmatmul.mubr.msk.bf16.gmra.mrb[84].mxu0 %vm1575_vm1, %v2324_v6  ;;  %v1907_v62 = vadd.f32 %v6083_v10, %v7202_v27 }
 0x1f7   : > { %v6084_v7 = vpop.f32.mrb[90].mxu1  ;;  %v1899_v59 = vadd.f32 %v7202_v27, %v1898_v11 }
 0x1f8   : > { %v1910_v30 = vadd.f32 %v6084_v7, %v7202_v27  ;;  %v1901_v56 = vpop.f32.mrb[91].mxu1 }
 0x1f9   : > { %v1902_v23 = vadd.f32 %v7202_v27, %v1901_v56 }
 0x1fa   : > { %v2326_v26 = vpack.c.bf16 %v1910_v30, %v1907_v62 }
 0x1fb   : > { %v2325_v53 = vpack.c.bf16 %v1902_v23, %v1899_v59 }
 0x1fd   : > { %v6087_v57 = vpop.f32.mrb[92].mxu1  ;;  %6217 = vmatprep.mubr.msk.bf16.mxu0 %vm1575_vm1, %v2325_v53 }
 0x1fe   : > { %v1914_v22 = vpop.f32.mrb[93].mxu1  ;;  %6218 = vmatmul.mubr.msk.bf16.gmra.mrb[88].mxu0 %vm1575_vm1, %v2326_v26  ;;  %v1923_v60 = vadd.f32 %v6087_v57, %v7202_v27 }
 0x1ff   : > { %v6088_v28 = vpop.f32.mrb[94].mxu1  ;;  %v1915_v36 = vadd.f32 %v7202_v27, %v1914_v22 }
 0x200   : > { %v1926_v0 = vadd.f32 %v6088_v28, %v7202_v27  ;;  %v1917_v33 = vpop.f32.mrb[95].mxu1 }
 0x201   : > { %v1918_v5 = vadd.f32 %v7202_v27, %v1917_v33 }
 0x202   : > { %v2328_v9 = vpack.c.bf16 %v1926_v0, %v1923_v60 }
 0x203   : > { %v2327_v42 = vpack.c.bf16 %v1918_v5, %v1915_v36 }
 0x205   : > { %v6091_v45 = vpop.f32.mrb[96].mxu1  ;;  %6221 = vmatprep.mubr.msk.bf16.mxu0 %vm1575_vm1, %v2327_v42 }
 0x206   : > { %v1930_v17 = vpop.f32.mrb[97].mxu1  ;;  %6222 = vmatmul.mubr.msk.bf16.gmra.mrb[92].mxu0 %vm1575_vm1, %v2328_v9  ;;  %v1939_v58 = vadd.f32 %v6091_v45, %v7202_v27 }
 0x207   : > { %v6092_v20 = vpop.f32.mrb[98].mxu1  ;;  %v1931_v12 = vadd.f32 %v7202_v27, %v1930_v17 }
 0x208   : > { %v1942_v2 = vadd.f32 %v6092_v20, %v7202_v27  ;;  %v1933_v44 = vpop.f32.mrb[99].mxu1 }
 0x209   : > { %v1934_v13 = vadd.f32 %v7202_v27, %v1933_v44 }
 0x20a   : > { %v2330_v14 = vpack.c.bf16 %v1942_v2, %v1939_v58 }
 0x20b   : > { %v2329_v15 = vpack.c.bf16 %v1934_v13, %v1931_v12 }
 0x20d   : > { %v6095_v16 = vpop.f32.mrb[100].mxu1  ;;  %6225 = vmatprep.mubr.msk.bf16.mxu0 %vm1575_vm1, %v2329_v15 }
 0x20e   : > { %v1946_v18 = vpop.f32.mrb[101].mxu1  ;;  %6226 = vmatmul.mubr.msk.bf16.gmra.mrb[96].mxu0 %vm1575_vm1, %v2330_v14  ;;  %v1955_v24 = vadd.f32 %v6095_v16, %v7202_v27 }
 0x20f   : > { %v6096_v19 = vpop.f32.mrb[102].mxu1  ;;  %v1947_v31 = vadd.f32 %v7202_v27, %v1946_v18 }
 0x210   : > { %v1958_v25 = vadd.f32 %v6096_v19, %v7202_v27  ;;  %v1949_v29 = vpop.f32.mrb[103].mxu1 }
 0x211   : > { %v1950_v32 = vadd.f32 %v7202_v27, %v1949_v29 }
 0x212   : > { %v2332_v34 = vpack.c.bf16 %v1958_v25, %v1955_v24 }
 0x213   : > { %v2331_v21 = vpack.c.bf16 %v1950_v32, %v1947_v31 }
 0x215   : > { %v6099_v35 = vpop.f32.mrb[104].mxu1  ;;  %6229 = vmatprep.mubr.msk.bf16.mxu0 %vm1575_vm1, %v2331_v21 }
 0x216   : > { %v1962_v37 = vpop.f32.mrb[105].mxu1  ;;  %6230 = vmatmul.mubr.msk.bf16.gmra.mrb[100].mxu0 %vm1575_vm1, %v2332_v34  ;;  %v1971_v39 = vadd.f32 %v6099_v35, %v7202_v27 }
 0x217   : > { %v6100_v38 = vpop.f32.mrb[106].mxu1  ;;  %v1963_v46 = vadd.f32 %v7202_v27, %v1962_v37 }
 0x218   : > { %v1974_v41 = vadd.f32 %v6100_v38, %v7202_v27  ;;  %v1965_v43 = vpop.f32.mrb[107].mxu1 }
 0x219   : > { %v1966_v47 = vadd.f32 %v7202_v27, %v1965_v43 }
 0x21a   : > { %v2334_v49 = vpack.c.bf16 %v1974_v41, %v1971_v39 }
 0x21b   : > { %v2333_v48 = vpack.c.bf16 %v1966_v47, %v1963_v46 }
 0x21d   : > { %v6103_v50 = vpop.f32.mrb[108].mxu1  ;;  %6233 = vmatprep.mubr.msk.bf16.mxu0 %vm1575_vm1, %v2333_v48 }
 0x21e   : > { %v1978_v51 = vpop.f32.mrb[109].mxu1  ;;  %6234 = vmatmul.mubr.msk.bf16.gmra.mrb[104].mxu0 %vm1575_vm1, %v2334_v49  ;;  %v1987_v54 = vadd.f32 %v6103_v50, %v7202_v27 }
 0x21f   : > { %v6104_v52 = vpop.f32.mrb[110].mxu1  ;;  %v1979_v61 = vadd.f32 %v7202_v27, %v1978_v51 }
 0x220   : > { %v1990_v55 = vadd.f32 %v6104_v52, %v7202_v27  ;;  %v1981_v1 = vpop.f32.mrb[111].mxu1 }
 0x221   : > { %v1982_v63 = vadd.f32 %v7202_v27, %v1981_v1 }
 0x222   : > { %v2336_v3 = vpack.c.bf16 %v1990_v55, %v1987_v54 }
 0x223   : > { %v2335_v4 = vpack.c.bf16 %v1982_v63, %v1979_v61 }
 0x225   : > { %v6107_v6 = vpop.f32.mrb[112].mxu1  ;;  %6237 = vmatprep.mubr.msk.bf16.mxu0 %vm1575_vm1, %v2335_v4 }
 0x226   : > { %v1994_v8 = vpop.f32.mrb[113].mxu1  ;;  %6238 = vmatmul.mubr.msk.bf16.gmra.mrb[108].mxu0 %vm1575_vm1, %v2336_v3  ;;  %v2003_v11 = vadd.f32 %v6107_v6, %v7202_v27 }
 0x227   : > { %v6108_v10 = vpop.f32.mrb[114].mxu1  ;;  %v1995_v30 = vadd.f32 %v7202_v27, %v1994_v8 }
 0x228   : > { %v2006_v7 = vadd.f32 %v6108_v10, %v7202_v27  ;;  %v1997_v62 = vpop.f32.mrb[115].mxu1 }
 0x229   : > { %v1998_v56 = vadd.f32 %v7202_v27, %v1997_v62 }
 0x22a   : > { %v2338_v59 = vpack.c.bf16 %v2006_v7, %v2003_v11 }
 0x22b   : > { %v2337_v23 = vpack.c.bf16 %v1998_v56, %v1995_v30 }
 0x22d   : > { %v6111_v26 = vpop.f32.mrb[116].mxu1  ;;  %6241 = vmatprep.mubr.msk.bf16.mxu0 %vm1575_vm1, %v2337_v23 }
 0x22e   : > { %v2010_v53 = vpop.f32.mrb[117].mxu1  ;;  %6242 = vmatmul.mubr.msk.bf16.gmra.mrb[112].mxu0 %vm1575_vm1, %v2338_v59  ;;  %v2019_v22 = vadd.f32 %v6111_v26, %v7202_v27 }
 0x22f   : > { %v6112_v57 = vpop.f32.mrb[118].mxu1  ;;  %v2011_v0 = vadd.f32 %v7202_v27, %v2010_v53 }
 0x230   : > { %v2022_v28 = vadd.f32 %v6112_v57, %v7202_v27  ;;  %v2013_v60 = vpop.f32.mrb[119].mxu1 }
 0x231   : > { %v2014_v33 = vadd.f32 %v7202_v27, %v2013_v60 }
 0x232   : > { %v2340_v36 = vpack.c.bf16 %v2022_v28, %v2019_v22 }
 0x233   : > { %v2339_v5 = vpack.c.bf16 %v2014_v33, %v2011_v0 }
 0x235   : > { %v6115_v9 = vpop.f32.mrb[120].mxu1  ;;  %6245 = vmatprep.mubr.msk.bf16.mxu0 %vm1575_vm1, %v2339_v5 }
 0x236   : > { %v2026_v42 = vpop.f32.mrb[121].mxu1  ;;  %6246 = vmatmul.mubr.msk.bf16.gmra.mrb[116].mxu0 %vm1575_vm1, %v2340_v36  ;;  %v2035_v17 = vadd.f32 %v6115_v9, %v7202_v27 }
 0x237   : > { %v6116_v45 = vpop.f32.mrb[122].mxu1  ;;  %v2027_v2 = vadd.f32 %v7202_v27, %v2026_v42 }
 0x238   : > { %v2038_v20 = vadd.f32 %v6116_v45, %v7202_v27  ;;  %v2029_v58 = vpop.f32.mrb[123].mxu1 }
 0x239   : > { %v2030_v44 = vadd.f32 %v7202_v27, %v2029_v58 }
 0x23a   : > { %v2342_v12 = vpack.c.bf16 %v2038_v20, %v2035_v17 }
 0x23b   : > { %v2341_v13 = vpack.c.bf16 %v2030_v44, %v2027_v2 }
 0x23d   : > { %v6119_v14 = vpop.f32.mrb[124].mxu1  ;;  %6249 = vmatprep.mubr.msk.bf16.mxu0 %vm1575_vm1, %v2341_v13 }
 0x23e   : > { %v2042_v15 = vpop.f32.mrb[125].mxu1  ;;  %6250 = vmatmul.mubr.msk.bf16.gmra.mrb[120].mxu0 %vm1575_vm1, %v2342_v12  ;;  %v2051_v16 = vadd.f32 %v6119_v14, %v7202_v27 }
 0x23f   : > { %v6120_v40 = vpop.f32.mrb[126].mxu1  ;;  %v2043_v24 = vadd.f32 %v7202_v27, %v2042_v15 }
 0x240   : > { %v2054_v18 = vadd.f32 %v6120_v40, %v7202_v27  ;;  %v2045_v19 = vpop.f32.mrb[127].mxu1 }
 0x241   : > { %v2046_v25 = vadd.f32 %v7202_v27, %v2045_v19 }
 0x242   : > { %v2344_v29 = vpack.c.bf16 %v2054_v18, %v2051_v16 }
 0x243   : > { %v2343_v31 = vpack.c.bf16 %v2046_v25, %v2043_v24 }
 0x245   : > { %v6123_v32 = vpop.f32.mrb[128].mxu1  ;;  %6253 = vmatprep.mubr.msk.bf16.mxu0 %vm1575_vm1, %v2343_v31 }
 0x246   : > { %v2058_v34 = vpop.f32.mrb[129].mxu1  ;;  %6254 = vmatmul.mubr.msk.bf16.gmra.mrb[124].mxu0 %vm1575_vm1, %v2344_v29  ;;  %v2067_v35 = vadd.f32 %v6123_v32, %v7202_v27 }
 0x247   : > { %v6124_v21 = vpop.f32.mrb[130].mxu1  ;;  %v2059_v39 = vadd.f32 %v7202_v27, %v2058_v34 }
 0x248   : > { %v2070_v37 = vadd.f32 %v6124_v21, %v7202_v27  ;;  %v2061_v38 = vpop.f32.mrb[131].mxu1 }
 0x249   : > { %v2062_v41 = vadd.f32 %v7202_v27, %v2061_v38 }
 0x24a   : > { %v2346_v43 = vpack.c.bf16 %v2070_v37, %v2067_v35 }
 0x24b   : > { %v2345_v46 = vpack.c.bf16 %v2062_v41, %v2059_v39 }
 0x24d   : > { %v6127_v47 = vpop.f32.mrb[132].mxu1  ;;  %6257 = vmatprep.mubr.msk.bf16.mxu0 %vm1575_vm1, %v2345_v46 }
 0x24e   : > { %v2074_v49 = vpop.f32.mrb[133].mxu1  ;;  %6258 = vmatmul.mubr.msk.bf16.gmra.mrb[128].mxu0 %vm1575_vm1, %v2346_v43  ;;  %v2083_v50 = vadd.f32 %v6127_v47, %v7202_v27 }
 0x24f   : > { %v6128_v48 = vpop.f32.mrb[134].mxu1  ;;  %v2075_v54 = vadd.f32 %v7202_v27, %v2074_v49 }
 0x250   : > { %v2086_v51 = vadd.f32 %v6128_v48, %v7202_v27  ;;  %v2077_v52 = vpop.f32.mrb[135].mxu1 }
 0x251   : > { %v2078_v55 = vadd.f32 %v7202_v27, %v2077_v52 }
 0x252   : > { %v2348_v1 = vpack.c.bf16 %v2086_v51, %v2083_v50 }
 0x253   : > { %v2347_v61 = vpack.c.bf16 %v2078_v55, %v2075_v54 }
 0x255   : > { %v6131_v63 = vpop.f32.mrb[136].mxu1  ;;  %6261 = vmatprep.mubr.msk.bf16.mxu0 %vm1575_vm1, %v2347_v61 }
 0x256   : > { %v2090_v3 = vpop.f32.mrb[137].mxu1  ;;  %6262 = vmatmul.mubr.msk.bf16.gmra.mrb[132].mxu0 %vm1575_vm1, %v2348_v1  ;;  %v2099_v6 = vadd.f32 %v6131_v63, %v7202_v27 }
 0x257   : > { %v6132_v4 = vpop.f32.mrb[138].mxu1  ;;  %v2091_v11 = vadd.f32 %v7202_v27, %v2090_v3 }
 0x258   : > { %v2102_v8 = vadd.f32 %v6132_v4, %v7202_v27  ;;  %v2093_v10 = vpop.f32.mrb[139].mxu1 }
 0x259   : > { %v2094_v7 = vadd.f32 %v7202_v27, %v2093_v10 }
 0x25a   : > { %v2350_v62 = vpack.c.bf16 %v2102_v8, %v2099_v6 }
 0x25b   : > { %v2349_v30 = vpack.c.bf16 %v2094_v7, %v2091_v11 }
 0x25d   : > { %v6135_v56 = vpop.f32.mrb[140].mxu1  ;;  %6265 = vmatprep.mubr.msk.bf16.mxu0 %vm1575_vm1, %v2349_v30 }
 0x25e   : > { %v2106_v59 = vpop.f32.mrb[141].mxu1  ;;  %6266 = vmatmul.mubr.msk.bf16.gmra.mrb[136].mxu0 %vm1575_vm1, %v2350_v62  ;;  %v2115_v26 = vadd.f32 %v6135_v56, %v7202_v27 }
 0x25f   : > { %v6136_v23 = vpop.f32.mrb[142].mxu1  ;;  %v2107_v22 = vadd.f32 %v7202_v27, %v2106_v59 }
 0x260   : > { %v2118_v53 = vadd.f32 %v6136_v23, %v7202_v27  ;;  %v2109_v57 = vpop.f32.mrb[143].mxu1 }
 0x261   : > { %v2110_v28 = vadd.f32 %v7202_v27, %v2109_v57 }
 0x262   : > { %v2352_v60 = vpack.c.bf16 %v2118_v53, %v2115_v26 }
 0x263   : > { %v2351_v0 = vpack.c.bf16 %v2110_v28, %v2107_v22 }
 0x265   : > { %v6139_v33 = vpop.f32.mrb[144].mxu1  ;;  %6269 = vmatprep.mubr.msk.bf16.mxu0 %vm1575_vm1, %v2351_v0 }
 0x266   : > { %v2122_v36 = vpop.f32.mrb[145].mxu1  ;;  %6270 = vmatmul.mubr.msk.bf16.gmra.mrb[140].mxu0 %vm1575_vm1, %v2352_v60  ;;  %v2131_v9 = vadd.f32 %v6139_v33, %v7202_v27 }
 0x267   : > { %v6140_v5 = vpop.f32.mrb[146].mxu1  ;;  %v2123_v17 = vadd.f32 %v7202_v27, %v2122_v36 }
 0x268   : > { %v2134_v42 = vadd.f32 %v6140_v5, %v7202_v27  ;;  %v2125_v45 = vpop.f32.mrb[147].mxu1 }
 0x269   : > { %v2126_v20 = vadd.f32 %v7202_v27, %v2125_v45 }
 0x26a   : > { %v2354_v58 = vpack.c.bf16 %v2134_v42, %v2131_v9 }
 0x26b   : > { %v2353_v2 = vpack.c.bf16 %v2126_v20, %v2123_v17 }
 0x26d   : > { %v6143_v44 = vpop.f32.mrb[148].mxu1  ;;  %6273 = vmatprep.mubr.msk.bf16.mxu0 %vm1575_vm1, %v2353_v2 }
 0x26e   : > { %v2138_v12 = vpop.f32.mrb[149].mxu1  ;;  %6274 = vmatmul.mubr.msk.bf16.gmra.mrb[144].mxu0 %vm1575_vm1, %v2354_v58  ;;  %v2147_v14 = vadd.f32 %v6143_v44, %v7202_v27  ;;  %v7390_v44 = vld [vmem:[%s8226_s6] ss:$0 sm:$0xff] }
 0x26f   : > { %v6144_v13 = vpop.f32.mrb[150].mxu1  ;;  %v2139_v16 = vadd.f32 %v7202_v27, %v2138_v12 }
 0x270   : > { %v2150_v15 = vadd.f32 %v6144_v13, %v7202_v27  ;;  %v2141_v40 = vpop.f32.mrb[151].mxu1 }
 0x271   : > { %v2142_v18 = vadd.f32 %v7202_v27, %v2141_v40 }
 0x272   : > { %v2356_v19 = vpack.c.bf16 %v2150_v15, %v2147_v14 }
 0x273   : > { %v2355_v24 = vpack.c.bf16 %v2142_v18, %v2139_v16 }
 0x275   : > { %v6147_v25 = vpop.f32.mrb[152].mxu1  ;;  %6277 = vmatprep.mubr.msk.bf16.mxu0 %vm1575_vm1, %v2355_v24 }
 0x276   : > { %v2154_v29 = vpop.f32.mrb[153].mxu1  ;;  %6278 = vmatmul.mubr.msk.bf16.gmra.mrb[148].mxu0 %vm1575_vm1, %v2356_v19  ;;  %v2163_v32 = vadd.f32 %v6147_v25, %v7202_v27 }
 0x277   : > { %v6148_v31 = vpop.f32.mrb[154].mxu1  ;;  %v2155_v35 = vadd.f32 %v7202_v27, %v2154_v29 }
 0x278   : > { %v2166_v34 = vadd.f32 %v6148_v31, %v7202_v27  ;;  %v2157_v21 = vpop.f32.mrb[155].mxu1 }
 0x279   : > { %v2158_v37 = vadd.f32 %v7202_v27, %v2157_v21 }
 0x27a   : > { %v2358_v38 = vpack.c.bf16 %v2166_v34, %v2163_v32 }
 0x27b   : > { %v2357_v39 = vpack.c.bf16 %v2158_v37, %v2155_v35 }
 0x27d   : > { %v6151_v41 = vpop.f32.mrb[156].mxu1  ;;  %6281 = vmatprep.mubr.msk.bf16.mxu0 %vm1575_vm1, %v2357_v39 }
 0x27e   : > { %v2170_v43 = vpop.f32.mrb[157].mxu1  ;;  %6282 = vmatmul.mubr.msk.bf16.gmra.mrb[152].mxu0 %vm1575_vm1, %v2358_v38  ;;  %v2179_v47 = vadd.f32 %v6151_v41, %v7202_v27 }
 0x27f   : > { %v6152_v46 = vpop.f32.mrb[158].mxu1  ;;  %v2171_v50 = vadd.f32 %v7202_v27, %v2170_v43 }
 0x280   : > { %v2182_v49 = vadd.f32 %v6152_v46, %v7202_v27  ;;  %v2173_v48 = vpop.f32.mrb[159].mxu1 }
 0x281   : > { %v2174_v51 = vadd.f32 %v7202_v27, %v2173_v48 }
 0x282   : > { %v2360_v52 = vpack.c.bf16 %v2182_v49, %v2179_v47 }
 0x283   : > { %v2359_v54 = vpack.c.bf16 %v2174_v51, %v2171_v50 }
 0x285   : > { %v6155_v55 = vpop.f32.mrb[160].mxu1  ;;  %6285 = vmatprep.mubr.msk.bf16.mxu0 %vm1575_vm1, %v2359_v54 }
 0x286   : > { %v2186_v1 = vpop.f32.mrb[161].mxu1  ;;  %6286 = vmatmul.mubr.msk.bf16.gmra.mrb[156].mxu0 %vm1575_vm1, %v2360_v52  ;;  %v2195_v63 = vadd.f32 %v6155_v55, %v7202_v27 }
 0x287   : > { %v6156_v61 = vpop.f32.mrb[162].mxu1  ;;  %v2187_v6 = vadd.f32 %v7202_v27, %v2186_v1 }
 0x288   : > { %v2198_v3 = vadd.f32 %v6156_v61, %v7202_v27  ;;  %v2189_v4 = vpop.f32.mrb[163].mxu1 }
 0x289   : > { %v2190_v8 = vadd.f32 %v7202_v27, %v2189_v4 }
 0x28a   : > { %v2362_v10 = vpack.c.bf16 %v2198_v3, %v2195_v63 }
 0x28b   : > { %v2361_v11 = vpack.c.bf16 %v2190_v8, %v2187_v6 }
 0x28d   : > { %v6159_v7 = vpop.f32.mrb[164].mxu1  ;;  %6289 = vmatprep.mubr.msk.bf16.mxu0 %vm1575_vm1, %v2361_v11 }
 0x28e   : > { %v2202_v62 = vpop.f32.mrb[165].mxu1  ;;  %6290 = vmatmul.mubr.msk.bf16.gmra.mrb[160].mxu0 %vm1575_vm1, %v2362_v10  ;;  %v2211_v56 = vadd.f32 %v6159_v7, %v7202_v27 }
 0x28f   : > { %v6160_v30 = vpop.f32.mrb[166].mxu1  ;;  %v2203_v26 = vadd.f32 %v7202_v27, %v2202_v62 }
 0x290   : > { %v2214_v59 = vadd.f32 %v6160_v30, %v7202_v27  ;;  %v2205_v23 = vpop.f32.mrb[167].mxu1 }
 0x291   : > { %v2206_v53 = vadd.f32 %v7202_v27, %v2205_v23 }
 0x292   : > { %v2364_v57 = vpack.c.bf16 %v2214_v59, %v2211_v56 }
 0x293   : > { %v2363_v22 = vpack.c.bf16 %v2206_v53, %v2203_v26 }
 0x295   : > { %v6163_v28 = vpop.f32.mrb[168].mxu1  ;;  %6293 = vmatprep.mubr.msk.bf16.mxu0 %vm1575_vm1, %v2363_v22 }
 0x296   : > { %v2218_v60 = vpop.f32.mrb[169].mxu1  ;;  %6294 = vmatmul.mubr.msk.bf16.gmra.mrb[164].mxu0 %vm1575_vm1, %v2364_v57  ;;  %v2227_v33 = vadd.f32 %v6163_v28, %v7202_v27 }
 0x297   : > { %v6164_v0 = vpop.f32.mrb[170].mxu1  ;;  %v2219_v9 = vadd.f32 %v7202_v27, %v2218_v60 }
 0x298   : > { %v2230_v36 = vadd.f32 %v6164_v0, %v7202_v27  ;;  %v2221_v5 = vpop.f32.mrb[171].mxu1 }
 0x299   : > { %v2222_v42 = vadd.f32 %v7202_v27, %v2221_v5 }
 0x29a   : > { %v2366_v45 = vpack.c.bf16 %v2230_v36, %v2227_v33 }
 0x29b   : > { %v2365_v17 = vpack.c.bf16 %v2222_v42, %v2219_v9 }
 0x29d   : > { %v6167_v20 = vpop.f32.mrb[172].mxu1  ;;  %6297 = vmatprep.mubr.msk.bf16.mxu0 %vm1575_vm1, %v2365_v17 }
 0x29e   : > { %v2234_v58 = vpop.f32.mrb[173].mxu1  ;;  %6298 = vmatmul.mubr.msk.bf16.gmra.mrb[168].mxu0 %vm1575_vm1, %v2366_v45  ;;  %v2243_v12 = vadd.f32 %v6167_v20, %v7202_v27 }
 0x29f   : > { %v6168_v2 = vpop.f32.mrb[174].mxu1  ;;  %v2235_v15 = vadd.f32 %v7202_v27, %v2234_v58 }
 0x2a0   : > { %v2246_v13 = vadd.f32 %v6168_v2, %v7202_v27  ;;  %v2237_v14 = vpop.f32.mrb[175].mxu1 }
 0x2a1   : > { %v2238_v40 = vadd.f32 %v7202_v27, %v2237_v14  ;;  %v6195_v16 = vpop.f32.mrb[64].mxu0 }
 0x2a2   : > { %v2368_v18 = vpack.c.bf16 %v2246_v13, %v2243_v12  ;;  %v2651_v19 = vadd.f32 %v6195_v16, %v7390_v44  ;;  %v2642_v24 = vpop.f32.mrb[65].mxu0 }
 0x2a3   : > { %v2367_v25 = vpack.c.bf16 %v2238_v40, %v2235_v15  ;;  %v2643_v29 = vadd.f32 %v7390_v44, %v2642_v24  ;;  %v6196_v31 = vpop.f32.mrb[66].mxu0 }
 0x2a4   : > { %v2654_v32 = vadd.f32 %v6196_v31, %v7390_v44  ;;  %v2645_v34 = vpop.f32.mrb[67].mxu0  ;;  %v3155_v37 = vmax.f32 %v2651_v19, 0.0 }
 0x2a5   : > { %v2646_v21 = vadd.f32 %v7390_v44, %v2645_v34  ;;  %v6171_v35 = vpop.f32.mrb[176].mxu1  ;;  %6301 = vmatprep.mubr.msk.bf16.mxu0 %vm1575_vm1, %v2367_v25  ;;  %v3153_v41 = vmax.f32 %v2643_v29, 0.0 }
 0x2a6   : > { %v3156_v38 = vmax.f32 %v2654_v32, 0.0  ;;  %v2250_v39 = vpop.f32.mrb[177].mxu1  ;;  %6302 = vmatmul.mubr.msk.bf16.gmra.mrb[172].mxu0 %vm1575_vm1, %v2368_v18  ;;  %v2259_v49 = vadd.f32 %v6171_v35, %v7202_v27 }
 0x2a7   : > { %v3154_v43 = vmax.f32 %v2646_v21, 0.0  ;;  %v6172_v46 = vpop.f32.mrb[178].mxu1  ;;  %v2251_v52 = vadd.f32 %v7202_v27, %v2250_v39 }
 0x2a8   : > { %v3282_v47 = vpack.c.bf16 %v3156_v38, %v3155_v37  ;;  %v2262_v48 = vadd.f32 %v6172_v46, %v7202_v27  ;;  %v2253_v50 = vpop.f32.mrb[179].mxu1 }
 0x2a9   : > { %v3281_v51 = vpack.c.bf16 %v3154_v43, %v3153_v41  ;;  %v2254_v54 = vadd.f32 %v7202_v27, %v2253_v50  ;;  %v6199_v55 = vpop.f32.mrb[68].mxu0 }
 0x2aa   : > { %v2370_v1 = vpack.c.bf16 %v2262_v48, %v2259_v49  ;;  %v2667_v61 = vadd.f32 %v6199_v55, %v7390_v44  ;;  %v2658_v63 = vpop.f32.mrb[69].mxu0 }
 0x2ab   : > { %v2369_v3 = vpack.c.bf16 %v2254_v54, %v2251_v52  ;;  %v2659_v4 = vadd.f32 %v7390_v44, %v2658_v63  ;;  %v6200_v6 = vpop.f32.mrb[70].mxu0  ;;  %6325 = vmatprep.mubr.msk.bf16.mxu1 %vm606_vm0, %v3281_v51 }
 0x2ac   : > { %v2670_v8 = vadd.f32 %v6200_v6, %v7390_v44  ;;  %v2661_v10 = vpop.f32.mrb[71].mxu0  ;;  %6326 = vmatmul.mubr.msk.bf16.vlgmr.msra.gmra.mrb[192].mxu1 %vm606_vm0, %v3282_v47  ;;  %v3159_v62 = vmax.f32 %v2667_v61, 0.0 }
 0x2ad   : > { %v2662_v11 = vadd.f32 %v7390_v44, %v2661_v10  ;;  %v6175_v7 = vpop.f32.mrb[180].mxu1  ;;  %6305 = vmatprep.mubr.msk.bf16.mxu0 %vm1575_vm1, %v2369_v3  ;;  %v3157_v59 = vmax.f32 %v2659_v4, 0.0 }
 0x2ae   : > { %v3160_v30 = vmax.f32 %v2670_v8, 0.0  ;;  %v2266_v56 = vpop.f32.mrb[181].mxu1  ;;  %6306 = vmatmul.mubr.msk.bf16.gmra.mrb[176].mxu0 %vm1575_vm1, %v2370_v1  ;;  %v2275_v57 = vadd.f32 %v6175_v7, %v7202_v27 }
 0x2af   : > { %v3158_v23 = vmax.f32 %v2662_v11, 0.0  ;;  %v6176_v26 = vpop.f32.mrb[182].mxu1  ;;  %v2267_v0 = vadd.f32 %v7202_v27, %v2266_v56 }
 0x2b0   : > { %v3284_v53 = vpack.c.bf16 %v3160_v30, %v3159_v62  ;;  %v2278_v22 = vadd.f32 %v6176_v26, %v7202_v27  ;;  %v2269_v28 = vpop.f32.mrb[183].mxu1 }
 0x2b1   : > { %v3283_v60 = vpack.c.bf16 %v3158_v23, %v3157_v59  ;;  %v2270_v33 = vadd.f32 %v7202_v27, %v2269_v28  ;;  %v6203_v36 = vpop.f32.mrb[72].mxu0 }
 0x2b2   : > { %v2372_v5 = vpack.c.bf16 %v2278_v22, %v2275_v57  ;;  %v2683_v9 = vadd.f32 %v6203_v36, %v7390_v44  ;;  %v2674_v42 = vpop.f32.mrb[73].mxu0 }
 0x2b3   : > { %v2371_v45 = vpack.c.bf16 %v2270_v33, %v2267_v0  ;;  %v2675_v17 = vadd.f32 %v7390_v44, %v2674_v42  ;;  %v6204_v20 = vpop.f32.mrb[74].mxu0  ;;  %6329 = vmatprep.mubr.msk.bf16.mxu1 %vm606_vm0, %v3283_v60 }
 0x2b4   : > { %v2686_v58 = vadd.f32 %v6204_v20, %v7390_v44  ;;  %v2677_v2 = vpop.f32.mrb[75].mxu0  ;;  %6330 = vmatmul.mubr.msk.bf16.gmra.mrb[196].mxu1 %vm606_vm0, %v3284_v53  ;;  %v3163_v14 = vmax.f32 %v2683_v9, 0.0 }
 0x2b5   : > { %v2678_v12 = vadd.f32 %v7390_v44, %v2677_v2  ;;  %v6179_v13 = vpop.f32.mrb[184].mxu1  ;;  %6309 = vmatprep.mubr.msk.bf16.mxu0 %vm1575_vm1, %v2371_v45  ;;  %v3161_v16 = vmax.f32 %v2675_v17, 0.0 }
 0x2b6   : > { %v3164_v15 = vmax.f32 %v2686_v58, 0.0  ;;  %v2282_v40 = vpop.f32.mrb[185].mxu1  ;;  %6310 = vmatmul.mubr.msk.bf16.gmra.mrb[180].mxu0 %vm1575_vm1, %v2372_v5  ;;  %v2291_v25 = vadd.f32 %v6179_v13, %v7202_v27 }
 0x2b7   : > { %v3162_v18 = vmax.f32 %v2678_v12, 0.0  ;;  %v6180_v19 = vpop.f32.mrb[186].mxu1  ;;  %v2283_v34 = vadd.f32 %v7202_v27, %v2282_v40 }
 0x2b8   : > { %v3286_v24 = vpack.c.bf16 %v3164_v15, %v3163_v14  ;;  %v2294_v29 = vadd.f32 %v6180_v19, %v7202_v27  ;;  %v2285_v31 = vpop.f32.mrb[187].mxu1 }
 0x2b9   : > { %v3285_v32 = vpack.c.bf16 %v3162_v18, %v3161_v16  ;;  %v2286_v21 = vadd.f32 %v7202_v27, %v2285_v31  ;;  %v6207_v35 = vpop.f32.mrb[76].mxu0 }
 0x2ba   : > { %v2374_v37 = vpack.c.bf16 %v2294_v29, %v2291_v25  ;;  %v2699_v38 = vadd.f32 %v6207_v35, %v7390_v44  ;;  %v2690_v39 = vpop.f32.mrb[77].mxu0 }
 0x2bb   : > { %v2373_v41 = vpack.c.bf16 %v2286_v21, %v2283_v34  ;;  %v2691_v43 = vadd.f32 %v7390_v44, %v2690_v39  ;;  %v6208_v46 = vpop.f32.mrb[78].mxu0  ;;  %6333 = vmatprep.mubr.msk.bf16.mxu1 %vm606_vm0, %v3285_v32 }
 0x2bc   : > { %v2702_v47 = vadd.f32 %v6208_v46, %v7390_v44  ;;  %v2693_v49 = vpop.f32.mrb[79].mxu0  ;;  %6334 = vmatmul.mubr.msk.bf16.gmra.mrb[200].mxu1 %vm606_vm0, %v3286_v24  ;;  %v3167_v51 = vmax.f32 %v2699_v38, 0.0 }
 0x2bd   : > { %v2694_v48 = vadd.f32 %v7390_v44, %v2693_v49  ;;  %v6183_v50 = vpop.f32.mrb[188].mxu1  ;;  %6313 = vmatprep.mubr.msk.bf16.mxu0 %vm1575_vm1, %v2373_v41  ;;  %v3165_v55 = vmax.f32 %v2691_v43, 0.0 }
 0x2be   : > { %v3168_v52 = vmax.f32 %v2702_v47, 0.0  ;;  %v2298_v54 = vpop.f32.mrb[189].mxu1  ;;  %6314 = vmatmul.mubr.msk.bf16.gmra.mrb[184].mxu0 %vm1575_vm1, %v2374_v37  ;;  %v2307_v3 = vadd.f32 %v6183_v50, %v7202_v27 }
 0x2bf   : > { %v3166_v1 = vmax.f32 %v2694_v48, 0.0  ;;  %v6184_v61 = vpop.f32.mrb[190].mxu1  ;;  %v2299_v10 = vadd.f32 %v7202_v27, %v2298_v54 }
 0x2c0   : > { %v3288_v63 = vpack.c.bf16 %v3168_v52, %v3167_v51  ;;  %v2310_v4 = vadd.f32 %v6184_v61, %v7202_v27  ;;  %v2301_v6 = vpop.f32.mrb[191].mxu1 }
 0x2c1   : > { %v3287_v8 = vpack.c.bf16 %v3166_v1, %v3165_v55  ;;  %v2302_v11 = vadd.f32 %v7202_v27, %v2301_v6  ;;  %v6211_v7 = vpop.f32.mrb[80].mxu0 }
 0x2c2   : > { %v2376_v62 = vpack.c.bf16 %v2310_v4, %v2307_v3  ;;  %v2715_v30 = vadd.f32 %v6211_v7, %v7390_v44  ;;  %v2706_v56 = vpop.f32.mrb[81].mxu0 }
 0x2c3   : > { %v2375_v59 = vpack.c.bf16 %v2302_v11, %v2299_v10  ;;  %v2707_v23 = vadd.f32 %v7390_v44, %v2706_v56  ;;  %v6212_v26 = vpop.f32.mrb[82].mxu0  ;;  %6337 = vmatprep.mubr.msk.bf16.mxu1 %vm606_vm0, %v3287_v8 }
 0x2c4   : > { %v2718_v53 = vadd.f32 %v6212_v26, %v7390_v44  ;;  %v2709_v57 = vpop.f32.mrb[83].mxu0  ;;  %6338 = vmatmul.mubr.msk.bf16.gmra.mrb[204].mxu1 %vm606_vm0, %v3288_v63  ;;  %v3171_v27 = vmax.f32 %v2715_v30, 0.0 }
 0x2c5   : > { %v2710_v22 = vadd.f32 %v7390_v44, %v2709_v57  ;;  %6317 = vmatprep.mubr.msk.bf16.mxu0 %vm1575_vm1, %v2375_v59  ;;  %v3169_v60 = vmax.f32 %v2707_v23, 0.0 }
 0x2c6   : > { %v3172_v28 = vmax.f32 %v2718_v53, 0.0  ;;  %6318 = vmatmul.mubr.msk.bf16.gmra.mrb[188].mxu0 %vm1575_vm1, %v2376_v62 }
 0x2c7   : > { %v3170_v0 = vmax.f32 %v2710_v22, 0.0 }
 0x2c8   : > { %v3290_v33 = vpack.c.bf16 %v3172_v28, %v3171_v27 }
 0x2c9   : > { %v3289_v36 = vpack.c.bf16 %v3170_v0, %v3169_v60  ;;  %v6215_v5 = vpop.f32.mrb[84].mxu0 }
 0x2ca   : > { %v2731_v9 = vadd.f32 %v6215_v5, %v7390_v44  ;;  %v2722_v42 = vpop.f32.mrb[85].mxu0 }
 0x2cb   : > { %v2723_v45 = vadd.f32 %v7390_v44, %v2722_v42  ;;  %v6216_v17 = vpop.f32.mrb[86].mxu0  ;;  %6341 = vmatprep.mubr.msk.bf16.mxu1 %vm606_vm0, %v3289_v36 }
 0x2cc   : > { %v2734_v20 = vadd.f32 %v6216_v17, %v7390_v44  ;;  %v2725_v58 = vpop.f32.mrb[87].mxu0  ;;  %6342 = vmatmul.mubr.msk.bf16.gmra.mrb[208].mxu1 %vm606_vm0, %v3290_v33  ;;  %v3175_v12 = vmax.f32 %v2731_v9, 0.0 }
 0x2cd   : > { %v2726_v2 = vadd.f32 %v7390_v44, %v2725_v58  ;;  %v3173_v14 = vmax.f32 %v2723_v45, 0.0 }
 0x2ce   : > { %v3176_v13 = vmax.f32 %v2734_v20, 0.0 }
 0x2cf   : > { %v3174_v15 = vmax.f32 %v2726_v2, 0.0 }
 0x2d0   : > { %v3292_v40 = vpack.c.bf16 %v3176_v13, %v3175_v12 }
 0x2d1   : > { %v3291_v16 = vpack.c.bf16 %v3174_v15, %v3173_v14  ;;  %v6219_v18 = vpop.f32.mrb[88].mxu0 }
 0x2d2   : > { %v2747_v19 = vadd.f32 %v6219_v18, %v7390_v44  ;;  %v2738_v24 = vpop.f32.mrb[89].mxu0 }
 0x2d3   : > { %v2739_v25 = vadd.f32 %v7390_v44, %v2738_v24  ;;  %v6220_v29 = vpop.f32.mrb[90].mxu0  ;;  %6345 = vmatprep.mubr.msk.bf16.mxu1 %vm606_vm0, %v3291_v16 }
 0x2d4   : > { %v2750_v31 = vadd.f32 %v6220_v29, %v7390_v44  ;;  %v2741_v32 = vpop.f32.mrb[91].mxu0  ;;  %6346 = vmatmul.mubr.msk.bf16.gmra.mrb[212].mxu1 %vm606_vm0, %v3292_v40  ;;  %v3179_v21 = vmax.f32 %v2747_v19, 0.0 }
 0x2d5   : > { %v2742_v34 = vadd.f32 %v7390_v44, %v2741_v32  ;;  %v3177_v37 = vmax.f32 %v2739_v25, 0.0 }
 0x2d6   : > { %v3180_v35 = vmax.f32 %v2750_v31, 0.0 }
 0x2d7   : > { %v3178_v38 = vmax.f32 %v2742_v34, 0.0 }
 0x2d8   : > { %v3294_v39 = vpack.c.bf16 %v3180_v35, %v3179_v21 }
 0x2d9   : > { %v3293_v41 = vpack.c.bf16 %v3178_v38, %v3177_v37  ;;  %v6223_v43 = vpop.f32.mrb[92].mxu0 }
 0x2da   : > { %v2763_v46 = vadd.f32 %v6223_v43, %v7390_v44  ;;  %v2754_v47 = vpop.f32.mrb[93].mxu0 }
 0x2db   : > { %v2755_v49 = vadd.f32 %v7390_v44, %v2754_v47  ;;  %v6224_v48 = vpop.f32.mrb[94].mxu0  ;;  %6349 = vmatprep.mubr.msk.bf16.mxu1 %vm606_vm0, %v3293_v41 }
 0x2dc   : > { %v2766_v50 = vadd.f32 %v6224_v48, %v7390_v44  ;;  %v2757_v51 = vpop.f32.mrb[95].mxu0  ;;  %6350 = vmatmul.mubr.msk.bf16.gmra.mrb[216].mxu1 %vm606_vm0, %v3294_v39  ;;  %v3183_v54 = vmax.f32 %v2763_v46, 0.0 }
 0x2dd   : > { %v2758_v52 = vadd.f32 %v7390_v44, %v2757_v51  ;;  %v3181_v1 = vmax.f32 %v2755_v49, 0.0 }
 0x2de   : > { %v3184_v55 = vmax.f32 %v2766_v50, 0.0 }
 0x2df   : > { %v3182_v61 = vmax.f32 %v2758_v52, 0.0 }
 0x2e0   : > { %v3296_v63 = vpack.c.bf16 %v3184_v55, %v3183_v54 }
 0x2e1   : > { %v3295_v3 = vpack.c.bf16 %v3182_v61, %v3181_v1  ;;  %v6227_v4 = vpop.f32.mrb[96].mxu0 }
 0x2e2   : > { %v2779_v6 = vadd.f32 %v6227_v4, %v7390_v44  ;;  %v2770_v8 = vpop.f32.mrb[97].mxu0 }
 0x2e3   : > { %v2771_v10 = vadd.f32 %v7390_v44, %v2770_v8  ;;  %v6228_v11 = vpop.f32.mrb[98].mxu0  ;;  %6353 = vmatprep.mubr.msk.bf16.mxu1 %vm606_vm0, %v3295_v3 }
 0x2e4   : > { %v2782_v7 = vadd.f32 %v6228_v11, %v7390_v44  ;;  %v2773_v62 = vpop.f32.mrb[99].mxu0  ;;  %6354 = vmatmul.mubr.msk.bf16.gmra.mrb[220].mxu1 %vm606_vm0, %v3296_v63  ;;  %v3187_v56 = vmax.f32 %v2779_v6, 0.0 }
 0x2e5   : > { %v2774_v30 = vadd.f32 %v7390_v44, %v2773_v62  ;;  %v3185_v23 = vmax.f32 %v2771_v10, 0.0 }
 0x2e6   : > { %v3188_v59 = vmax.f32 %v2782_v7, 0.0 }
 0x2e7   : > { %v3186_v26 = vmax.f32 %v2774_v30, 0.0 }
 0x2e8   : > { %v3298_v53 = vpack.c.bf16 %v3188_v59, %v3187_v56 }
 0x2e9   : > { %v3297_v57 = vpack.c.bf16 %v3186_v26, %v3185_v23  ;;  %v6231_v22 = vpop.f32.mrb[100].mxu0 }
 0x2ea   : > { %v2795_v27 = vadd.f32 %v6231_v22, %v7390_v44  ;;  %v2786_v28 = vpop.f32.mrb[101].mxu0 }
 0x2eb   : > { %v2787_v60 = vadd.f32 %v7390_v44, %v2786_v28  ;;  %v6232_v0 = vpop.f32.mrb[102].mxu0  ;;  %6357 = vmatprep.mubr.msk.bf16.mxu1 %vm606_vm0, %v3297_v57 }
 0x2ec   : > { %v2798_v33 = vadd.f32 %v6232_v0, %v7390_v44  ;;  %v2789_v36 = vpop.f32.mrb[103].mxu0  ;;  %6358 = vmatmul.mubr.msk.bf16.gmra.mrb[224].mxu1 %vm606_vm0, %v3298_v53  ;;  %v3191_v9 = vmax.f32 %v2795_v27, 0.0 }
 0x2ed   : > { %v2790_v5 = vadd.f32 %v7390_v44, %v2789_v36  ;;  %v3189_v45 = vmax.f32 %v2787_v60, 0.0 }
 0x2ee   : > { %v3192_v42 = vmax.f32 %v2798_v33, 0.0 }
 0x2ef   : > { %v3190_v17 = vmax.f32 %v2790_v5, 0.0 }
 0x2f0   : > { %v3300_v20 = vpack.c.bf16 %v3192_v42, %v3191_v9 }
 0x2f1   : > { %v3299_v58 = vpack.c.bf16 %v3190_v17, %v3189_v45  ;;  %v6235_v2 = vpop.f32.mrb[104].mxu0 }
 0x2f2   : > { %v2811_v12 = vadd.f32 %v6235_v2, %v7390_v44  ;;  %v2802_v13 = vpop.f32.mrb[105].mxu0 }
 0x2f3   : > { %v2803_v14 = vadd.f32 %v7390_v44, %v2802_v13  ;;  %v6236_v15 = vpop.f32.mrb[106].mxu0  ;;  %6361 = vmatprep.mubr.msk.bf16.mxu1 %vm606_vm0, %v3299_v58 }
 0x2f4   : > { %v2814_v40 = vadd.f32 %v6236_v15, %v7390_v44  ;;  %v2805_v16 = vpop.f32.mrb[107].mxu0  ;;  %6362 = vmatmul.mubr.msk.bf16.gmra.mrb[228].mxu1 %vm606_vm0, %v3300_v20  ;;  %v3195_v19 = vmax.f32 %v2811_v12, 0.0 }
 0x2f5   : > { %v2806_v18 = vadd.f32 %v7390_v44, %v2805_v16  ;;  %v3193_v25 = vmax.f32 %v2803_v14, 0.0 }
 0x2f6   : > { %v3196_v24 = vmax.f32 %v2814_v40, 0.0 }
 0x2f7   : > { %v3194_v29 = vmax.f32 %v2806_v18, 0.0 }
 0x2f8   : > { %v3302_v31 = vpack.c.bf16 %v3196_v24, %v3195_v19 }
 0x2f9   : > { %v3301_v32 = vpack.c.bf16 %v3194_v29, %v3193_v25  ;;  %v6239_v34 = vpop.f32.mrb[108].mxu0 }
 0x2fa   : > { %v2827_v21 = vadd.f32 %v6239_v34, %v7390_v44  ;;  %v2818_v35 = vpop.f32.mrb[109].mxu0 }
 0x2fb   : > { %v2819_v37 = vadd.f32 %v7390_v44, %v2818_v35  ;;  %v6240_v38 = vpop.f32.mrb[110].mxu0  ;;  %6365 = vmatprep.mubr.msk.bf16.mxu1 %vm606_vm0, %v3301_v32 }
 0x2fc   : > { %v2830_v39 = vadd.f32 %v6240_v38, %v7390_v44  ;;  %v2821_v41 = vpop.f32.mrb[111].mxu0  ;;  %6366 = vmatmul.mubr.msk.bf16.gmra.mrb[232].mxu1 %vm606_vm0, %v3302_v31  ;;  %v3199_v46 = vmax.f32 %v2827_v21, 0.0 }
 0x2fd   : > { %v2822_v43 = vadd.f32 %v7390_v44, %v2821_v41  ;;  %v3197_v49 = vmax.f32 %v2819_v37, 0.0 }
 0x2fe   : > { %v3200_v47 = vmax.f32 %v2830_v39, 0.0 }
 0x2ff   : > { %v3198_v48 = vmax.f32 %v2822_v43, 0.0 }
 0x300   : > { %v3304_v50 = vpack.c.bf16 %v3200_v47, %v3199_v46 }
 0x301   : > { %v3303_v51 = vpack.c.bf16 %v3198_v48, %v3197_v49  ;;  %v6243_v52 = vpop.f32.mrb[112].mxu0 }
 0x302   : > { %v2843_v54 = vadd.f32 %v6243_v52, %v7390_v44  ;;  %v2834_v55 = vpop.f32.mrb[113].mxu0 }
 0x303   : > { %v2835_v1 = vadd.f32 %v7390_v44, %v2834_v55  ;;  %v6244_v61 = vpop.f32.mrb[114].mxu0  ;;  %6369 = vmatprep.mubr.msk.bf16.mxu1 %vm606_vm0, %v3303_v51 }
 0x304   : > { %v2846_v63 = vadd.f32 %v6244_v61, %v7390_v44  ;;  %v2837_v3 = vpop.f32.mrb[115].mxu0  ;;  %6370 = vmatmul.mubr.msk.bf16.gmra.mrb[236].mxu1 %vm606_vm0, %v3304_v50  ;;  %v3203_v6 = vmax.f32 %v2843_v54, 0.0 }
 0x305   : > { %v2838_v4 = vadd.f32 %v7390_v44, %v2837_v3  ;;  %v3201_v10 = vmax.f32 %v2835_v1, 0.0 }
 0x306   : > { %v3204_v8 = vmax.f32 %v2846_v63, 0.0 }
 0x307   : > { %v3202_v11 = vmax.f32 %v2838_v4, 0.0 }
 0x308   : > { %v3306_v7 = vpack.c.bf16 %v3204_v8, %v3203_v6 }
 0x309   : > { %v3305_v62 = vpack.c.bf16 %v3202_v11, %v3201_v10  ;;  %v6247_v30 = vpop.f32.mrb[116].mxu0 }
 0x30a   : > { %v2859_v56 = vadd.f32 %v6247_v30, %v7390_v44  ;;  %v2850_v59 = vpop.f32.mrb[117].mxu0 }
 0x30b   : > { %v2851_v23 = vadd.f32 %v7390_v44, %v2850_v59  ;;  %v6248_v26 = vpop.f32.mrb[118].mxu0  ;;  %6373 = vmatprep.mubr.msk.bf16.mxu1 %vm606_vm0, %v3305_v62 }
 0x30c   : > { %v2862_v53 = vadd.f32 %v6248_v26, %v7390_v44  ;;  %v2853_v57 = vpop.f32.mrb[119].mxu0  ;;  %6374 = vmatmul.mubr.msk.bf16.gmra.mrb[240].mxu1 %vm606_vm0, %v3306_v7  ;;  %v3207_v27 = vmax.f32 %v2859_v56, 0.0 }
 0x30d   : > { %v2854_v22 = vadd.f32 %v7390_v44, %v2853_v57  ;;  %v3205_v60 = vmax.f32 %v2851_v23, 0.0 }
 0x30e   : > { %v3208_v28 = vmax.f32 %v2862_v53, 0.0 }
 0x30f   : > { %v3206_v0 = vmax.f32 %v2854_v22, 0.0 }
 0x310   : > { %v3308_v33 = vpack.c.bf16 %v3208_v28, %v3207_v27 }
 0x311   : > { %v3307_v36 = vpack.c.bf16 %v3206_v0, %v3205_v60  ;;  %v6251_v5 = vpop.f32.mrb[120].mxu0 }
 0x312   : > { %v2875_v9 = vadd.f32 %v6251_v5, %v7390_v44  ;;  %v2866_v42 = vpop.f32.mrb[121].mxu0 }
 0x313   : > { %v2867_v45 = vadd.f32 %v7390_v44, %v2866_v42  ;;  %v6252_v17 = vpop.f32.mrb[122].mxu0  ;;  %6377 = vmatprep.mubr.msk.bf16.mxu1 %vm606_vm0, %v3307_v36 }
 0x314   : > { %v2878_v20 = vadd.f32 %v6252_v17, %v7390_v44  ;;  %v2869_v58 = vpop.f32.mrb[123].mxu0  ;;  %6378 = vmatmul.mubr.msk.bf16.gmra.mrb[244].mxu1 %vm606_vm0, %v3308_v33  ;;  %v3211_v12 = vmax.f32 %v2875_v9, 0.0 }
 0x315   : > { %v2870_v2 = vadd.f32 %v7390_v44, %v2869_v58  ;;  %v3209_v14 = vmax.f32 %v2867_v45, 0.0 }
 0x316   : > { %v3212_v13 = vmax.f32 %v2878_v20, 0.0 }
 0x317   : > { %v3210_v15 = vmax.f32 %v2870_v2, 0.0 }
 0x318   : > { %v3310_v40 = vpack.c.bf16 %v3212_v13, %v3211_v12 }
 0x319   : > { %v3309_v16 = vpack.c.bf16 %v3210_v15, %v3209_v14  ;;  %v6255_v18 = vpop.f32.mrb[124].mxu0 }
 0x31a   : > { %v2891_v19 = vadd.f32 %v6255_v18, %v7390_v44  ;;  %v2882_v24 = vpop.f32.mrb[125].mxu0 }
 0x31b   : > { %v2883_v25 = vadd.f32 %v7390_v44, %v2882_v24  ;;  %v6256_v29 = vpop.f32.mrb[126].mxu0  ;;  %6381 = vmatprep.mubr.msk.bf16.mxu1 %vm606_vm0, %v3309_v16 }
 0x31c   : > { %v2894_v31 = vadd.f32 %v6256_v29, %v7390_v44  ;;  %v2885_v32 = vpop.f32.mrb[127].mxu0  ;;  %6382 = vmatmul.mubr.msk.bf16.gmra.mrb[248].mxu1 %vm606_vm0, %v3310_v40  ;;  %v3215_v21 = vmax.f32 %v2891_v19, 0.0 }
 0x31d   : > { %v2886_v34 = vadd.f32 %v7390_v44, %v2885_v32  ;;  %v3213_v37 = vmax.f32 %v2883_v25, 0.0 }
 0x31e   : > { %v3216_v35 = vmax.f32 %v2894_v31, 0.0 }
 0x31f   : > { %v3214_v38 = vmax.f32 %v2886_v34, 0.0 }
 0x320   : > { %v3312_v39 = vpack.c.bf16 %v3216_v35, %v3215_v21 }
 0x321   : > { %v3311_v41 = vpack.c.bf16 %v3214_v38, %v3213_v37  ;;  %v6259_v43 = vpop.f32.mrb[128].mxu0 }
 0x322   : > { %v2907_v46 = vadd.f32 %v6259_v43, %v7390_v44  ;;  %v2898_v47 = vpop.f32.mrb[129].mxu0 }
 0x323   : > { %v2899_v49 = vadd.f32 %v7390_v44, %v2898_v47  ;;  %v6260_v48 = vpop.f32.mrb[130].mxu0  ;;  %6385 = vmatprep.mubr.msk.bf16.mxu1 %vm606_vm0, %v3311_v41 }
 0x324   : > { %v2910_v50 = vadd.f32 %v6260_v48, %v7390_v44  ;;  %v2901_v51 = vpop.f32.mrb[131].mxu0  ;;  %6386 = vmatmul.mubr.msk.bf16.gmra.mrb[252].mxu1 %vm606_vm0, %v3312_v39  ;;  %v3219_v54 = vmax.f32 %v2907_v46, 0.0 }
 0x325   : > { %v2902_v52 = vadd.f32 %v7390_v44, %v2901_v51  ;;  %v3217_v1 = vmax.f32 %v2899_v49, 0.0 }
 0x326   : > { %v3220_v55 = vmax.f32 %v2910_v50, 0.0 }
 0x327   : > { %v3218_v61 = vmax.f32 %v2902_v52, 0.0 }
 0x328   : > { %v3314_v63 = vpack.c.bf16 %v3220_v55, %v3219_v54 }
 0x329   : > { %v3313_v3 = vpack.c.bf16 %v3218_v61, %v3217_v1  ;;  %v6263_v4 = vpop.f32.mrb[132].mxu0 }
 0x32a   : > { %v2923_v6 = vadd.f32 %v6263_v4, %v7390_v44  ;;  %v2914_v8 = vpop.f32.mrb[133].mxu0 }
 0x32b   : > { %v2915_v10 = vadd.f32 %v7390_v44, %v2914_v8  ;;  %v6264_v11 = vpop.f32.mrb[134].mxu0  ;;  %6389 = vmatprep.mubr.msk.bf16.mxu1 %vm606_vm0, %v3313_v3 }
 0x32c   : > { %v2926_v7 = vadd.f32 %v6264_v11, %v7390_v44  ;;  %v2917_v62 = vpop.f32.mrb[135].mxu0  ;;  %6390 = vmatmul.mubr.msk.bf16.gmra.mrb[0].mxu1 %vm606_vm0, %v3314_v63  ;;  %v3223_v56 = vmax.f32 %v2923_v6, 0.0 }
 0x32d   : > { %v2918_v30 = vadd.f32 %v7390_v44, %v2917_v62  ;;  %v3221_v23 = vmax.f32 %v2915_v10, 0.0 }
 0x32e   : > { %v3224_v59 = vmax.f32 %v2926_v7, 0.0 }
 0x32f   : > { %v3222_v26 = vmax.f32 %v2918_v30, 0.0 }
 0x330   : > { %v3316_v53 = vpack.c.bf16 %v3224_v59, %v3223_v56 }
 0x331   : > { %v3315_v57 = vpack.c.bf16 %v3222_v26, %v3221_v23  ;;  %v6267_v22 = vpop.f32.mrb[136].mxu0 }
 0x332   : > { %v2939_v27 = vadd.f32 %v6267_v22, %v7390_v44  ;;  %v2930_v28 = vpop.f32.mrb[137].mxu0 }
 0x333   : > { %v2931_v60 = vadd.f32 %v7390_v44, %v2930_v28  ;;  %v6268_v0 = vpop.f32.mrb[138].mxu0  ;;  %6393 = vmatprep.mubr.msk.bf16.mxu1 %vm606_vm0, %v3315_v57 }
 0x334   : > { %v2942_v33 = vadd.f32 %v6268_v0, %v7390_v44  ;;  %v2933_v36 = vpop.f32.mrb[139].mxu0  ;;  %6394 = vmatmul.mubr.msk.bf16.gmra.mrb[4].mxu1 %vm606_vm0, %v3316_v53  ;;  %v3227_v9 = vmax.f32 %v2939_v27, 0.0 }
 0x335   : > { %v2934_v5 = vadd.f32 %v7390_v44, %v2933_v36  ;;  %v3225_v45 = vmax.f32 %v2931_v60, 0.0 }
 0x336   : > { %v3228_v42 = vmax.f32 %v2942_v33, 0.0 }
 0x337   : > { %v3226_v17 = vmax.f32 %v2934_v5, 0.0 }
 0x338   : > { %v3318_v20 = vpack.c.bf16 %v3228_v42, %v3227_v9 }
 0x339   : > { %v3317_v58 = vpack.c.bf16 %v3226_v17, %v3225_v45  ;;  %v6271_v2 = vpop.f32.mrb[140].mxu0 }
 0x33a   : > { %v2955_v12 = vadd.f32 %v6271_v2, %v7390_v44  ;;  %v2946_v13 = vpop.f32.mrb[141].mxu0 }
 0x33b   : > { %v2947_v14 = vadd.f32 %v7390_v44, %v2946_v13  ;;  %v6272_v15 = vpop.f32.mrb[142].mxu0  ;;  %6397 = vmatprep.mubr.msk.bf16.mxu1 %vm606_vm0, %v3317_v58 }
 0x33c   : > { %v2958_v40 = vadd.f32 %v6272_v15, %v7390_v44  ;;  %v2949_v16 = vpop.f32.mrb[143].mxu0  ;;  %6398 = vmatmul.mubr.msk.bf16.gmra.mrb[8].mxu1 %vm606_vm0, %v3318_v20  ;;  %v3231_v19 = vmax.f32 %v2955_v12, 0.0 }
 0x33d   : > { %v2950_v18 = vadd.f32 %v7390_v44, %v2949_v16  ;;  %v3229_v25 = vmax.f32 %v2947_v14, 0.0 }
 0x33e   : > { %v3232_v24 = vmax.f32 %v2958_v40, 0.0 }
 0x33f   : > { %v3230_v29 = vmax.f32 %v2950_v18, 0.0 }
 0x340   : > { %v3320_v31 = vpack.c.bf16 %v3232_v24, %v3231_v19 }
 0x341   : > { %v3319_v32 = vpack.c.bf16 %v3230_v29, %v3229_v25  ;;  %v6275_v34 = vpop.f32.mrb[144].mxu0 }
 0x342   : > { %v2971_v21 = vadd.f32 %v6275_v34, %v7390_v44  ;;  %v2962_v35 = vpop.f32.mrb[145].mxu0 }
 0x343   : > { %v2963_v37 = vadd.f32 %v7390_v44, %v2962_v35  ;;  %v6276_v38 = vpop.f32.mrb[146].mxu0  ;;  %6401 = vmatprep.mubr.msk.bf16.mxu1 %vm606_vm0, %v3319_v32 }
 0x344   : > { %v2974_v39 = vadd.f32 %v6276_v38, %v7390_v44  ;;  %v2965_v41 = vpop.f32.mrb[147].mxu0  ;;  %6402 = vmatmul.mubr.msk.bf16.gmra.mrb[12].mxu1 %vm606_vm0, %v3320_v31  ;;  %v3235_v46 = vmax.f32 %v2971_v21, 0.0 }
 0x345   : > { %v2966_v43 = vadd.f32 %v7390_v44, %v2965_v41  ;;  %v3233_v49 = vmax.f32 %v2963_v37, 0.0 }
 0x346   : > { %v3236_v47 = vmax.f32 %v2974_v39, 0.0 }
 0x347   : > { %v3234_v48 = vmax.f32 %v2966_v43, 0.0 }
 0x348   : > { %v3322_v50 = vpack.c.bf16 %v3236_v47, %v3235_v46 }
 0x349   : > { %v3321_v51 = vpack.c.bf16 %v3234_v48, %v3233_v49  ;;  %v6279_v52 = vpop.f32.mrb[148].mxu0 }
 0x34a   : > { %v2987_v54 = vadd.f32 %v6279_v52, %v7390_v44  ;;  %v2978_v55 = vpop.f32.mrb[149].mxu0 }
 0x34b   : > { %v2979_v1 = vadd.f32 %v7390_v44, %v2978_v55  ;;  %v6280_v61 = vpop.f32.mrb[150].mxu0  ;;  %6405 = vmatprep.mubr.msk.bf16.mxu1 %vm606_vm0, %v3321_v51 }
 0x34c   : > { %v2990_v63 = vadd.f32 %v6280_v61, %v7390_v44  ;;  %v2981_v3 = vpop.f32.mrb[151].mxu0  ;;  %6406 = vmatmul.mubr.msk.bf16.gmra.mrb[16].mxu1 %vm606_vm0, %v3322_v50  ;;  %v3239_v6 = vmax.f32 %v2987_v54, 0.0 }
 0x34d   : > { %v2982_v4 = vadd.f32 %v7390_v44, %v2981_v3  ;;  %v3237_v10 = vmax.f32 %v2979_v1, 0.0 }
 0x34e   : > { %v3240_v8 = vmax.f32 %v2990_v63, 0.0 }
 0x34f   : > { %v3238_v11 = vmax.f32 %v2982_v4, 0.0 }
 0x350   : > { %v3324_v7 = vpack.c.bf16 %v3240_v8, %v3239_v6 }
 0x351   : > { %v3323_v62 = vpack.c.bf16 %v3238_v11, %v3237_v10  ;;  %v6283_v30 = vpop.f32.mrb[152].mxu0 }
 0x352   : > { %v3003_v56 = vadd.f32 %v6283_v30, %v7390_v44  ;;  %v2994_v59 = vpop.f32.mrb[153].mxu0 }
 0x353   : > { %v2995_v23 = vadd.f32 %v7390_v44, %v2994_v59  ;;  %v6284_v26 = vpop.f32.mrb[154].mxu0  ;;  %6409 = vmatprep.mubr.msk.bf16.mxu1 %vm606_vm0, %v3323_v62 }
 0x354   : > { %v3006_v53 = vadd.f32 %v6284_v26, %v7390_v44  ;;  %v2997_v57 = vpop.f32.mrb[155].mxu0  ;;  %6410 = vmatmul.mubr.msk.bf16.gmra.mrb[20].mxu1 %vm606_vm0, %v3324_v7  ;;  %v3243_v27 = vmax.f32 %v3003_v56, 0.0 }
 0x355   : > { %v2998_v22 = vadd.f32 %v7390_v44, %v2997_v57  ;;  %v3241_v60 = vmax.f32 %v2995_v23, 0.0 }
 0x356   : > { %v3244_v28 = vmax.f32 %v3006_v53, 0.0 }
 0x357   : > { %v3242_v0 = vmax.f32 %v2998_v22, 0.0 }
 0x358   : > { %v3326_v33 = vpack.c.bf16 %v3244_v28, %v3243_v27 }
 0x359   : > { %v3325_v36 = vpack.c.bf16 %v3242_v0, %v3241_v60  ;;  %v6287_v5 = vpop.f32.mrb[156].mxu0 }
 0x35a   : > { %v3019_v9 = vadd.f32 %v6287_v5, %v7390_v44  ;;  %v3010_v42 = vpop.f32.mrb[157].mxu0 }
 0x35b   : > { %v3011_v45 = vadd.f32 %v7390_v44, %v3010_v42  ;;  %v6288_v17 = vpop.f32.mrb[158].mxu0  ;;  %6413 = vmatprep.mubr.msk.bf16.mxu1 %vm606_vm0, %v3325_v36 }
 0x35c   : > { %v3022_v20 = vadd.f32 %v6288_v17, %v7390_v44  ;;  %v3013_v58 = vpop.f32.mrb[159].mxu0  ;;  %6414 = vmatmul.mubr.msk.bf16.gmra.mrb[24].mxu1 %vm606_vm0, %v3326_v33  ;;  %v3247_v12 = vmax.f32 %v3019_v9, 0.0  ;;  %v7591_v9 = vld [vmem:[%s8228_s8] ss:$0 sm:$0xff] }
 0x35d   : > { %v3014_v2 = vadd.f32 %v7390_v44, %v3013_v58  ;;  %v3245_v14 = vmax.f32 %v3011_v45, 0.0 }
 0x35e   : > { %v3248_v13 = vmax.f32 %v3022_v20, 0.0 }
 0x35f   : > { %v3246_v15 = vmax.f32 %v3014_v2, 0.0 }
 0x360   : > { %v3328_v40 = vpack.c.bf16 %v3248_v13, %v3247_v12 }
 0x361   : > { %v3327_v16 = vpack.c.bf16 %v3246_v15, %v3245_v14  ;;  %v6291_v18 = vpop.f32.mrb[160].mxu0 }
 0x362   : > { %v3035_v19 = vadd.f32 %v6291_v18, %v7390_v44  ;;  %v3026_v24 = vpop.f32.mrb[161].mxu0 }
 0x363   : > { %v3027_v25 = vadd.f32 %v7390_v44, %v3026_v24  ;;  %v6292_v29 = vpop.f32.mrb[162].mxu0  ;;  %6417 = vmatprep.mubr.msk.bf16.mxu1 %vm606_vm0, %v3327_v16 }
 0x364   : > { %v3038_v31 = vadd.f32 %v6292_v29, %v7390_v44  ;;  %v3029_v32 = vpop.f32.mrb[163].mxu0  ;;  %6418 = vmatmul.mubr.msk.bf16.gmra.mrb[28].mxu1 %vm606_vm0, %v3328_v40  ;;  %v3251_v21 = vmax.f32 %v3035_v19, 0.0  ;;  %v7600_v29 = vld [vmem:[%s8226_s6] ss:$0 sm:$0xff] }
 0x365   : > { %v3030_v34 = vadd.f32 %v7390_v44, %v3029_v32  ;;  %v3249_v37 = vmax.f32 %v3027_v25, 0.0 }
 0x366   : > { %v3252_v35 = vmax.f32 %v3038_v31, 0.0 }
 0x367   : > { %v3250_v38 = vmax.f32 %v3030_v34, 0.0 }
 0x368   : > { %v3330_v39 = vpack.c.bf16 %v3252_v35, %v3251_v21 }
 0x369   : > { %v3329_v41 = vpack.c.bf16 %v3250_v38, %v3249_v37  ;;  %v6295_v43 = vpop.f32.mrb[164].mxu0 }
 0x36a   : > { %v3051_v46 = vadd.f32 %v6295_v43, %v7390_v44  ;;  %v3042_v47 = vpop.f32.mrb[165].mxu0 }
 0x36b   : > { %v3043_v49 = vadd.f32 %v7390_v44, %v3042_v47  ;;  %v6296_v48 = vpop.f32.mrb[166].mxu0  ;;  %6421 = vmatprep.mubr.msk.bf16.mxu1 %vm606_vm0, %v3329_v41 }
 0x36c   : > { %v3054_v50 = vadd.f32 %v6296_v48, %v7390_v44  ;;  %v3045_v51 = vpop.f32.mrb[167].mxu0  ;;  %6422 = vmatmul.mubr.msk.bf16.gmra.mrb[32].mxu1 %vm606_vm0, %v3330_v39  ;;  %v3255_v54 = vmax.f32 %v3051_v46, 0.0 }
 0x36d   : > { %v3046_v52 = vadd.f32 %v7390_v44, %v3045_v51  ;;  %v3253_v1 = vmax.f32 %v3043_v49, 0.0 }
 0x36e   : > { %v3256_v55 = vmax.f32 %v3054_v50, 0.0 }
 0x36f   : > { %v3254_v61 = vmax.f32 %v3046_v52, 0.0 }
 0x370   : > { %v3332_v63 = vpack.c.bf16 %v3256_v55, %v3255_v54 }
 0x371   : > { %v3331_v3 = vpack.c.bf16 %v3254_v61, %v3253_v1  ;;  %v6299_v4 = vpop.f32.mrb[168].mxu0 }
 0x372   : > { %v3067_v6 = vadd.f32 %v6299_v4, %v7390_v44  ;;  %v3058_v8 = vpop.f32.mrb[169].mxu0 }
 0x373   : > { %v3059_v10 = vadd.f32 %v7390_v44, %v3058_v8  ;;  %v6300_v11 = vpop.f32.mrb[170].mxu0  ;;  %6425 = vmatprep.mubr.msk.bf16.mxu1 %vm606_vm0, %v3331_v3 }
 0x374   : > { %v3070_v7 = vadd.f32 %v6300_v11, %v7390_v44  ;;  %v3061_v62 = vpop.f32.mrb[171].mxu0  ;;  %6426 = vmatmul.mubr.msk.bf16.gmra.mrb[36].mxu1 %vm606_vm0, %v3332_v63  ;;  %v3259_v56 = vmax.f32 %v3067_v6, 0.0 }
 0x375   : > { %v3062_v30 = vadd.f32 %v7390_v44, %v3061_v62  ;;  %v3257_v23 = vmax.f32 %v3059_v10, 0.0 }
 0x376   : > { %v3260_v59 = vmax.f32 %v3070_v7, 0.0 }
 0x377   : > { %v3258_v26 = vmax.f32 %v3062_v30, 0.0 }
 0x378   : > { %v3334_v53 = vpack.c.bf16 %v3260_v59, %v3259_v56 }
 0x379   : > { %v3333_v57 = vpack.c.bf16 %v3258_v26, %v3257_v23  ;;  %v6303_v22 = vpop.f32.mrb[172].mxu0 }
 0x37a   : > { %v3083_v27 = vadd.f32 %v6303_v22, %v7390_v44  ;;  %v3074_v28 = vpop.f32.mrb[173].mxu0 }
 0x37b   : > { %v3075_v60 = vadd.f32 %v7390_v44, %v3074_v28  ;;  %v6304_v0 = vpop.f32.mrb[174].mxu0  ;;  %6429 = vmatprep.mubr.msk.bf16.mxu1 %vm606_vm0, %v3333_v57 }
 0x37c   : > { %v3086_v33 = vadd.f32 %v6304_v0, %v7390_v44  ;;  %v3077_v36 = vpop.f32.mrb[175].mxu0  ;;  %6430 = vmatmul.mubr.msk.bf16.gmra.mrb[40].mxu1 %vm606_vm0, %v3334_v53  ;;  %v3263_v42 = vmax.f32 %v3083_v27, 0.0 }
 0x37d   : > { %v3078_v5 = vadd.f32 %v7390_v44, %v3077_v36  ;;  %v3261_v17 = vmax.f32 %v3075_v60, 0.0 }
 0x37e   : > { %v3264_v45 = vmax.f32 %v3086_v33, 0.0 }
 0x37f   : > { %v3262_v20 = vmax.f32 %v3078_v5, 0.0  ;;  %v6327_v58 = vpop.f32.mrb[192].mxu1 }
 0x380   : > { %v3336_v2 = vpack.c.bf16 %v3264_v45, %v3263_v42  ;;  %v3603_v12 = vadd.f32 %v6327_v58, %v7591_v9  ;;  %v3594_v13 = vpop.f32.mrb[193].mxu1 }
 0x381   : > { %v3335_v14 = vpack.c.bf16 %v3262_v20, %v3261_v17  ;;  %v3595_v15 = vadd.f32 %v7591_v9, %v3594_v13  ;;  %v6307_v40 = vpop.f32.mrb[176].mxu0  ;;  %v6328_v16 = vpop.f32.mrb[194].mxu1 }
 0x382   : > { %v3099_v18 = vadd.f32 %v6307_v40, %v7390_v44  ;;  %v3606_v19 = vadd.f32 %v6328_v16, %v7591_v9  ;;  %v3090_v24 = vpop.f32.mrb[177].mxu0  ;;  %v3597_v25 = vpop.f32.mrb[195].mxu1  ;;  %v4107_v21 = vmax.f32 %v3603_v12, 0.0 }
 0x383   : > { %v3091_v31 = vadd.f32 %v7600_v29, %v3090_v24  ;;  %v3598_v32 = vadd.f32 %v7591_v9, %v3597_v25  ;;  %v6308_v34 = vpop.f32.mrb[178].mxu0  ;;  %6433 = vmatprep.mubr.msk.bf16.mxu1 %vm606_vm0, %v3335_v14  ;;  %v4105_v38 = vmax.f32 %v3595_v15, 0.0 }
 0x384   : > { %v4108_v35 = vmax.f32 %v3606_v19, 0.0  ;;  %v3102_v44 = vadd.f32 %v7600_v29, %v6308_v34  ;;  %v3093_v37 = vpop.f32.mrb[179].mxu0  ;;  %6434 = vmatmul.mubr.msk.bf16.gmra.mrb[44].mxu1 %vm606_vm0, %v3336_v2  ;;  %v3267_v43 = vmax.f32 %v3099_v18, 0.0 }
 0x385   : > { %v4106_v39 = vmax.f32 %v3598_v32, 0.0  ;;  %v3094_v41 = vadd.f32 %v7600_v29, %v3093_v37  ;;  %v3265_v49 = vmax.f32 %v3091_v31, 0.0 }
 0x386   : > { %v4234_v46 = vpack.c.bf16 %v4108_v35, %v4107_v21  ;;  %v3268_v47 = vmax.f32 %v3102_v44, 0.0 }
 0x387   : > { %v4233_v48 = vpack.c.bf16 %v4106_v39, %v4105_v38  ;;  %v3266_v50 = vmax.f32 %v3094_v41, 0.0  ;;  %v6331_v51 = vpop.f32.mrb[196].mxu1 }
 0x388   : > { %v3338_v52 = vpack.c.bf16 %v3268_v47, %v3267_v43  ;;  %v3619_v54 = vadd.f32 %v6331_v51, %v7591_v9  ;;  %v3610_v55 = vpop.f32.mrb[197].mxu1 }
 0x389   : > { %v3337_v1 = vpack.c.bf16 %v3266_v50, %v3265_v49  ;;  %v3611_v61 = vadd.f32 %v7591_v9, %v3610_v55  ;;  %v6311_v63 = vpop.f32.mrb[180].mxu0  ;;  %v6332_v3 = vpop.f32.mrb[198].mxu1  ;;  %6455 = vmatprep.mubr.msk.bf16.mxu0 %vm4312_vm2, %v4233_v48 }
 0x38a   : > { %v3115_v4 = vadd.f32 %v7600_v29, %v6311_v63  ;;  %v3622_v6 = vadd.f32 %v6332_v3, %v7591_v9  ;;  %v3106_v8 = vpop.f32.mrb[181].mxu0  ;;  %v3613_v10 = vpop.f32.mrb[199].mxu1  ;;  %6456 = vmatmul.mubr.msk.bf16.vlgmr.msra.gmra.mrb[192].mxu0 %vm4312_vm2, %v4234_v46  ;;  %v4111_v30 = vmax.f32 %v3619_v54, 0.0 }
 0x38b   : > { %v3107_v11 = vadd.f32 %v7600_v29, %v3106_v8  ;;  %v3614_v7 = vadd.f32 %v7591_v9, %v3613_v10  ;;  %v6312_v62 = vpop.f32.mrb[182].mxu0  ;;  %6437 = vmatprep.mubr.msk.bf16.mxu1 %vm606_vm0, %v3337_v1  ;;  %v4109_v26 = vmax.f32 %v3611_v61, 0.0 }
 0x38c   : > { %v4112_v56 = vmax.f32 %v3622_v6, 0.0  ;;  %v3118_v59 = vadd.f32 %v7600_v29, %v6312_v62  ;;  %v3109_v23 = vpop.f32.mrb[183].mxu0  ;;  %6438 = vmatmul.mubr.msk.bf16.gmra.mrb[48].mxu1 %vm606_vm0, %v3338_v52  ;;  %v3271_v22 = vmax.f32 %v3115_v4, 0.0 }
 0x38d   : > { %v4110_v53 = vmax.f32 %v3614_v7, 0.0  ;;  %v3110_v57 = vadd.f32 %v7600_v29, %v3109_v23  ;;  %v3269_v60 = vmax.f32 %v3107_v11, 0.0 }
 0x38e   : > { %v4236_v27 = vpack.c.bf16 %v4112_v56, %v4111_v30  ;;  %v3272_v28 = vmax.f32 %v3118_v59, 0.0 }
 0x38f   : > { %v4235_v0 = vpack.c.bf16 %v4110_v53, %v4109_v26  ;;  %v3270_v33 = vmax.f32 %v3110_v57, 0.0  ;;  %v6335_v36 = vpop.f32.mrb[200].mxu1 }
 0x390   : > { %v3340_v5 = vpack.c.bf16 %v3272_v28, %v3271_v22  ;;  %v3635_v42 = vadd.f32 %v6335_v36, %v7591_v9  ;;  %v3626_v45 = vpop.f32.mrb[201].mxu1 }
 0x391   : > { %v3339_v17 = vpack.c.bf16 %v3270_v33, %v3269_v60  ;;  %v3627_v20 = vadd.f32 %v7591_v9, %v3626_v45  ;;  %v6315_v58 = vpop.f32.mrb[184].mxu0  ;;  %v6336_v2 = vpop.f32.mrb[202].mxu1  ;;  %6459 = vmatprep.mubr.msk.bf16.mxu0 %vm4312_vm2, %v4235_v0 }
 0x392   : > { %v3131_v12 = vadd.f32 %v7600_v29, %v6315_v58  ;;  %v3638_v13 = vadd.f32 %v6336_v2, %v7591_v9  ;;  %v3122_v14 = vpop.f32.mrb[185].mxu0  ;;  %v3629_v15 = vpop.f32.mrb[203].mxu1  ;;  %6460 = vmatmul.mubr.msk.bf16.gmra.mrb[196].mxu0 %vm4312_vm2, %v4236_v27  ;;  %v4115_v19 = vmax.f32 %v3635_v42, 0.0 }
 0x393   : > { %v3123_v40 = vadd.f32 %v7600_v29, %v3122_v14  ;;  %v3630_v16 = vadd.f32 %v7591_v9, %v3629_v15  ;;  %v6316_v18 = vpop.f32.mrb[186].mxu0  ;;  %6441 = vmatprep.mubr.msk.bf16.mxu1 %vm606_vm0, %v3339_v17  ;;  %v4113_v32 = vmax.f32 %v3627_v20, 0.0 }
 0x394   : > { %v4116_v24 = vmax.f32 %v3638_v13, 0.0  ;;  %v3134_v25 = vadd.f32 %v7600_v29, %v6316_v18  ;;  %v3125_v31 = vpop.f32.mrb[187].mxu0  ;;  %6442 = vmatmul.mubr.msk.bf16.gmra.mrb[52].mxu1 %vm606_vm0, %v3340_v5  ;;  %v3275_v35 = vmax.f32 %v3131_v12, 0.0 }
 0x395   : > { %v4114_v34 = vmax.f32 %v3630_v16, 0.0  ;;  %v3126_v21 = vadd.f32 %v7600_v29, %v3125_v31  ;;  %v3273_v38 = vmax.f32 %v3123_v40, 0.0 }
 0x396   : > { %v4238_v44 = vpack.c.bf16 %v4116_v24, %v4115_v19  ;;  %v3276_v37 = vmax.f32 %v3134_v25, 0.0 }
 0x397   : > { %v4237_v39 = vpack.c.bf16 %v4114_v34, %v4113_v32  ;;  %v3274_v41 = vmax.f32 %v3126_v21, 0.0  ;;  %v6339_v43 = vpop.f32.mrb[204].mxu1 }
 0x398   : > { %v3342_v46 = vpack.c.bf16 %v3276_v37, %v3275_v35  ;;  %v3651_v47 = vadd.f32 %v6339_v43, %v7591_v9  ;;  %v3642_v49 = vpop.f32.mrb[205].mxu1 }
 0x399   : > { %v3341_v48 = vpack.c.bf16 %v3274_v41, %v3273_v38  ;;  %v3643_v50 = vadd.f32 %v7591_v9, %v3642_v49  ;;  %v6319_v51 = vpop.f32.mrb[188].mxu0  ;;  %v6340_v52 = vpop.f32.mrb[206].mxu1  ;;  %6463 = vmatprep.mubr.msk.bf16.mxu0 %vm4312_vm2, %v4237_v39 }
 0x39a   : > { %v3147_v54 = vadd.f32 %v7600_v29, %v6319_v51  ;;  %v3654_v55 = vadd.f32 %v6340_v52, %v7591_v9  ;;  %v3138_v1 = vpop.f32.mrb[189].mxu0  ;;  %v3645_v61 = vpop.f32.mrb[207].mxu1  ;;  %6464 = vmatmul.mubr.msk.bf16.gmra.mrb[200].mxu0 %vm4312_vm2, %v4238_v44  ;;  %v4119_v6 = vmax.f32 %v3651_v47, 0.0 }
 0x39b   : > { %v3139_v63 = vadd.f32 %v7600_v29, %v3138_v1  ;;  %v3646_v3 = vadd.f32 %v7591_v9, %v3645_v61  ;;  %v6320_v4 = vpop.f32.mrb[190].mxu0  ;;  %6445 = vmatprep.mubr.msk.bf16.mxu1 %vm606_vm0, %v3341_v48  ;;  %v4117_v7 = vmax.f32 %v3643_v50, 0.0 }
 0x39c   : > { %v4120_v8 = vmax.f32 %v3654_v55, 0.0  ;;  %v3150_v10 = vadd.f32 %v7600_v29, %v6320_v4  ;;  %v3141_v11 = vpop.f32.mrb[191].mxu0  ;;  %6446 = vmatmul.mubr.msk.bf16.gmra.mrb[56].mxu1 %vm606_vm0, %v3342_v46  ;;  %v3279_v56 = vmax.f32 %v3147_v54, 0.0 }
 0x39d   : > { %v4118_v62 = vmax.f32 %v3646_v3, 0.0  ;;  %v3142_v30 = vadd.f32 %v7600_v29, %v3141_v11  ;;  %v3277_v26 = vmax.f32 %v3139_v63, 0.0 }
 0x39e   : > { %v4240_v59 = vpack.c.bf16 %v4120_v8, %v4119_v6  ;;  %v3280_v23 = vmax.f32 %v3150_v10, 0.0 }
 0x39f   : > { %v4239_v53 = vpack.c.bf16 %v4118_v62, %v4117_v7  ;;  %v3278_v57 = vmax.f32 %v3142_v30, 0.0  ;;  %v6343_v22 = vpop.f32.mrb[208].mxu1 }
 0x3a0   : > { %v3344_v27 = vpack.c.bf16 %v3280_v23, %v3279_v56  ;;  %v3667_v28 = vadd.f32 %v6343_v22, %v7591_v9  ;;  %v3658_v60 = vpop.f32.mrb[209].mxu1 }
 0x3a1   : > { %v3343_v0 = vpack.c.bf16 %v3278_v57, %v3277_v26  ;;  %v3659_v33 = vadd.f32 %v7591_v9, %v3658_v60  ;;  %v6344_v36 = vpop.f32.mrb[210].mxu1  ;;  %6467 = vmatprep.mubr.msk.bf16.mxu0 %vm4312_vm2, %v4239_v53 }
 0x3a2   : > { %v3670_v5 = vadd.f32 %v6344_v36, %v7591_v9  ;;  %v3661_v29 = vpop.f32.mrb[211].mxu1  ;;  %6468 = vmatmul.mubr.msk.bf16.gmra.mrb[204].mxu0 %vm4312_vm2, %v4240_v59  ;;  %v4123_v45 = vmax.f32 %v3667_v28, 0.0 }
 0x3a3   : > { %v3662_v42 = vadd.f32 %v7591_v9, %v3661_v29  ;;  %6449 = vmatprep.mubr.msk.bf16.mxu1 %vm606_vm0, %v3343_v0  ;;  %v4121_v20 = vmax.f32 %v3659_v33, 0.0 }
 0x3a4   : > { %v4124_v17 = vmax.f32 %v3670_v5, 0.0  ;;  %6450 = vmatmul.mubr.msk.bf16.gmra.mrb[60].mxu1 %vm606_vm0, %v3344_v27 }
 0x3a5   : > { %v4122_v58 = vmax.f32 %v3662_v42, 0.0 }
 0x3a6   : > { %v4242_v2 = vpack.c.bf16 %v4124_v17, %v4123_v45 }
 0x3a7   : > { %v4241_v12 = vpack.c.bf16 %v4122_v58, %v4121_v20  ;;  %v6347_v13 = vpop.f32.mrb[212].mxu1 }
 0x3a8   : > { %v3683_v14 = vadd.f32 %v6347_v13, %v7591_v9  ;;  %v3674_v15 = vpop.f32.mrb[213].mxu1 }
 0x3a9   : > { %v3675_v40 = vadd.f32 %v7591_v9, %v3674_v15  ;;  %v6348_v16 = vpop.f32.mrb[214].mxu1  ;;  %6471 = vmatprep.mubr.msk.bf16.mxu0 %vm4312_vm2, %v4241_v12 }
 0x3aa   : > { %v3686_v18 = vadd.f32 %v6348_v16, %v7591_v9  ;;  %v3677_v19 = vpop.f32.mrb[215].mxu1  ;;  %6472 = vmatmul.mubr.msk.bf16.gmra.mrb[208].mxu0 %vm4312_vm2, %v4242_v2  ;;  %v4127_v25 = vmax.f32 %v3683_v14, 0.0 }
 0x3ab   : > { %v3678_v24 = vadd.f32 %v7591_v9, %v3677_v19  ;;  %v4125_v32 = vmax.f32 %v3675_v40, 0.0 }
 0x3ac   : > { %v4128_v31 = vmax.f32 %v3686_v18, 0.0 }
 0x3ad   : > { %v4126_v34 = vmax.f32 %v3678_v24, 0.0 }
 0x3ae   : > { %v4244_v21 = vpack.c.bf16 %v4128_v31, %v4127_v25 }
 0x3af   : > { %v4243_v35 = vpack.c.bf16 %v4126_v34, %v4125_v32  ;;  %v6351_v44 = vpop.f32.mrb[216].mxu1 }
 0x3b0   : > { %v3699_v37 = vadd.f32 %v6351_v44, %v7591_v9  ;;  %v3690_v38 = vpop.f32.mrb[217].mxu1 }
 0x3b1   : > { %v3691_v39 = vadd.f32 %v7591_v9, %v3690_v38  ;;  %v6352_v41 = vpop.f32.mrb[218].mxu1  ;;  %6475 = vmatprep.mubr.msk.bf16.mxu0 %vm4312_vm2, %v4243_v35 }
 0x3b2   : > { %v3702_v43 = vadd.f32 %v6352_v41, %v7591_v9  ;;  %v3693_v46 = vpop.f32.mrb[219].mxu1  ;;  %6476 = vmatmul.mubr.msk.bf16.gmra.mrb[212].mxu0 %vm4312_vm2, %v4244_v21  ;;  %v4131_v49 = vmax.f32 %v3699_v37, 0.0 }
 0x3b3   : > { %v3694_v47 = vadd.f32 %v7591_v9, %v3693_v46  ;;  %v4129_v50 = vmax.f32 %v3691_v39, 0.0 }
 0x3b4   : > { %v4132_v48 = vmax.f32 %v3702_v43, 0.0 }
 0x3b5   : > { %v4130_v51 = vmax.f32 %v3694_v47, 0.0 }
 0x3b6   : > { %v4246_v52 = vpack.c.bf16 %v4132_v48, %v4131_v49 }
 0x3b7   : > { %v4245_v54 = vpack.c.bf16 %v4130_v51, %v4129_v50  ;;  %v6355_v55 = vpop.f32.mrb[220].mxu1 }
 0x3b8   : > { %v3715_v1 = vadd.f32 %v6355_v55, %v7591_v9  ;;  %v3706_v61 = vpop.f32.mrb[221].mxu1 }
 0x3b9   : > { %v3707_v63 = vadd.f32 %v7591_v9, %v3706_v61  ;;  %v6356_v3 = vpop.f32.mrb[222].mxu1  ;;  %6479 = vmatprep.mubr.msk.bf16.mxu0 %vm4312_vm2, %v4245_v54 }
 0x3ba   : > { %v3718_v4 = vadd.f32 %v6356_v3, %v7591_v9  ;;  %v3709_v6 = vpop.f32.mrb[223].mxu1  ;;  %6480 = vmatmul.mubr.msk.bf16.gmra.mrb[216].mxu0 %vm4312_vm2, %v4246_v52  ;;  %v4135_v10 = vmax.f32 %v3715_v1, 0.0 }
 0x3bb   : > { %v3710_v8 = vadd.f32 %v7591_v9, %v3709_v6  ;;  %v4133_v7 = vmax.f32 %v3707_v63, 0.0 }
 0x3bc   : > { %v4136_v11 = vmax.f32 %v3718_v4, 0.0 }
 0x3bd   : > { %v4134_v62 = vmax.f32 %v3710_v8, 0.0 }
 0x3be   : > { %v4248_v30 = vpack.c.bf16 %v4136_v11, %v4135_v10 }
 0x3bf   : > { %v4247_v56 = vpack.c.bf16 %v4134_v62, %v4133_v7  ;;  %v6359_v59 = vpop.f32.mrb[224].mxu1 }
 0x3c0   : > { %v3731_v23 = vadd.f32 %v6359_v59, %v7591_v9  ;;  %v3722_v26 = vpop.f32.mrb[225].mxu1 }
 0x3c1   : > { %v3723_v53 = vadd.f32 %v7591_v9, %v3722_v26  ;;  %v6360_v57 = vpop.f32.mrb[226].mxu1  ;;  %6483 = vmatprep.mubr.msk.bf16.mxu0 %vm4312_vm2, %v4247_v56 }
 0x3c2   : > { %v3734_v22 = vadd.f32 %v6360_v57, %v7591_v9  ;;  %v3725_v27 = vpop.f32.mrb[227].mxu1  ;;  %6484 = vmatmul.mubr.msk.bf16.gmra.mrb[220].mxu0 %vm4312_vm2, %v4248_v30  ;;  %v4139_v60 = vmax.f32 %v3731_v23, 0.0 }
 0x3c3   : > { %v3726_v28 = vadd.f32 %v7591_v9, %v3725_v27  ;;  %v4137_v33 = vmax.f32 %v3723_v53, 0.0 }
 0x3c4   : > { %v4140_v0 = vmax.f32 %v3734_v22, 0.0 }
 0x3c5   : > { %v4138_v36 = vmax.f32 %v3726_v28, 0.0 }
 0x3c6   : > { %v4250_v5 = vpack.c.bf16 %v4140_v0, %v4139_v60 }
 0x3c7   : > { %v4249_v29 = vpack.c.bf16 %v4138_v36, %v4137_v33  ;;  %v6363_v42 = vpop.f32.mrb[228].mxu1 }
 0x3c8   : > { %v3747_v45 = vadd.f32 %v6363_v42, %v7591_v9  ;;  %v3738_v17 = vpop.f32.mrb[229].mxu1 }
 0x3c9   : > { %v3739_v20 = vadd.f32 %v7591_v9, %v3738_v17  ;;  %v6364_v58 = vpop.f32.mrb[230].mxu1  ;;  %6487 = vmatprep.mubr.msk.bf16.mxu0 %vm4312_vm2, %v4249_v29 }
 0x3ca   : > { %v3750_v2 = vadd.f32 %v6364_v58, %v7591_v9  ;;  %v3741_v12 = vpop.f32.mrb[231].mxu1  ;;  %6488 = vmatmul.mubr.msk.bf16.gmra.mrb[224].mxu0 %vm4312_vm2, %v4250_v5  ;;  %v4143_v14 = vmax.f32 %v3747_v45, 0.0 }
 0x3cb   : > { %v3742_v13 = vadd.f32 %v7591_v9, %v3741_v12  ;;  %v4141_v40 = vmax.f32 %v3739_v20, 0.0 }
 0x3cc   : > { %v4144_v15 = vmax.f32 %v3750_v2, 0.0 }
 0x3cd   : > { %v4142_v16 = vmax.f32 %v3742_v13, 0.0 }
 0x3ce   : > { %v4252_v18 = vpack.c.bf16 %v4144_v15, %v4143_v14 }
 0x3cf   : > { %v4251_v19 = vpack.c.bf16 %v4142_v16, %v4141_v40  ;;  %v6367_v24 = vpop.f32.mrb[232].mxu1 }
 0x3d0   : > { %v3763_v25 = vadd.f32 %v6367_v24, %v7591_v9  ;;  %v3754_v31 = vpop.f32.mrb[233].mxu1 }
 0x3d1   : > { %v3755_v32 = vadd.f32 %v7591_v9, %v3754_v31  ;;  %v6368_v34 = vpop.f32.mrb[234].mxu1  ;;  %6491 = vmatprep.mubr.msk.bf16.mxu0 %vm4312_vm2, %v4251_v19 }
 0x3d2   : > { %v3766_v21 = vadd.f32 %v6368_v34, %v7591_v9  ;;  %v3757_v35 = vpop.f32.mrb[235].mxu1  ;;  %6492 = vmatmul.mubr.msk.bf16.gmra.mrb[228].mxu0 %vm4312_vm2, %v4252_v18  ;;  %v4147_v37 = vmax.f32 %v3763_v25, 0.0 }
 0x3d3   : > { %v3758_v44 = vadd.f32 %v7591_v9, %v3757_v35  ;;  %v4145_v39 = vmax.f32 %v3755_v32, 0.0 }
 0x3d4   : > { %v4148_v38 = vmax.f32 %v3766_v21, 0.0 }
 0x3d5   : > { %v4146_v41 = vmax.f32 %v3758_v44, 0.0 }
 0x3d6   : > { %v4254_v43 = vpack.c.bf16 %v4148_v38, %v4147_v37 }
 0x3d7   : > { %v4253_v46 = vpack.c.bf16 %v4146_v41, %v4145_v39  ;;  %v6371_v47 = vpop.f32.mrb[236].mxu1 }
 0x3d8   : > { %v3779_v49 = vadd.f32 %v6371_v47, %v7591_v9  ;;  %v3770_v48 = vpop.f32.mrb[237].mxu1 }
 0x3d9   : > { %v3771_v50 = vadd.f32 %v7591_v9, %v3770_v48  ;;  %v6372_v51 = vpop.f32.mrb[238].mxu1  ;;  %6495 = vmatprep.mubr.msk.bf16.mxu0 %vm4312_vm2, %v4253_v46 }
 0x3da   : > { %v3782_v52 = vadd.f32 %v6372_v51, %v7591_v9  ;;  %v3773_v54 = vpop.f32.mrb[239].mxu1  ;;  %6496 = vmatmul.mubr.msk.bf16.gmra.mrb[232].mxu0 %vm4312_vm2, %v4254_v43  ;;  %v4151_v1 = vmax.f32 %v3779_v49, 0.0 }
 0x3db   : > { %v3774_v55 = vadd.f32 %v7591_v9, %v3773_v54  ;;  %v4149_v63 = vmax.f32 %v3771_v50, 0.0 }
 0x3dc   : > { %v4152_v61 = vmax.f32 %v3782_v52, 0.0 }
 0x3dd   : > { %v4150_v3 = vmax.f32 %v3774_v55, 0.0 }
 0x3de   : > { %v4256_v4 = vpack.c.bf16 %v4152_v61, %v4151_v1 }
 0x3df   : > { %v4255_v6 = vpack.c.bf16 %v4150_v3, %v4149_v63  ;;  %v6375_v8 = vpop.f32.mrb[240].mxu1 }
 0x3e0   : > { %v3795_v10 = vadd.f32 %v6375_v8, %v7591_v9  ;;  %v3786_v11 = vpop.f32.mrb[241].mxu1 }
 0x3e1   : > { %v3787_v7 = vadd.f32 %v7591_v9, %v3786_v11  ;;  %v6376_v62 = vpop.f32.mrb[242].mxu1  ;;  %6499 = vmatprep.mubr.msk.bf16.mxu0 %vm4312_vm2, %v4255_v6 }
 0x3e2   : > { %v3798_v30 = vadd.f32 %v6376_v62, %v7591_v9  ;;  %v3789_v56 = vpop.f32.mrb[243].mxu1  ;;  %6500 = vmatmul.mubr.msk.bf16.gmra.mrb[236].mxu0 %vm4312_vm2, %v4256_v4  ;;  %v4155_v23 = vmax.f32 %v3795_v10, 0.0 }
 0x3e3   : > { %v3790_v59 = vadd.f32 %v7591_v9, %v3789_v56  ;;  %v4153_v53 = vmax.f32 %v3787_v7, 0.0 }
 0x3e4   : > { %v4156_v26 = vmax.f32 %v3798_v30, 0.0 }
 0x3e5   : > { %v4154_v57 = vmax.f32 %v3790_v59, 0.0 }
 0x3e6   : > { %v4258_v22 = vpack.c.bf16 %v4156_v26, %v4155_v23 }
 0x3e7   : > { %v4257_v27 = vpack.c.bf16 %v4154_v57, %v4153_v53  ;;  %v6379_v28 = vpop.f32.mrb[244].mxu1 }
 0x3e8   : > { %v3811_v60 = vadd.f32 %v6379_v28, %v7591_v9  ;;  %v3802_v0 = vpop.f32.mrb[245].mxu1 }
 0x3e9   : > { %v3803_v33 = vadd.f32 %v7591_v9, %v3802_v0  ;;  %v6380_v36 = vpop.f32.mrb[246].mxu1  ;;  %6503 = vmatprep.mubr.msk.bf16.mxu0 %vm4312_vm2, %v4257_v27 }
 0x3ea   : > { %v3814_v5 = vadd.f32 %v6380_v36, %v7591_v9  ;;  %v3805_v29 = vpop.f32.mrb[247].mxu1  ;;  %6504 = vmatmul.mubr.msk.bf16.gmra.mrb[240].mxu0 %vm4312_vm2, %v4258_v22  ;;  %v4159_v45 = vmax.f32 %v3811_v60, 0.0 }
 0x3eb   : > { %v3806_v42 = vadd.f32 %v7591_v9, %v3805_v29  ;;  %v4157_v20 = vmax.f32 %v3803_v33, 0.0 }
 0x3ec   : > { %v4160_v17 = vmax.f32 %v3814_v5, 0.0 }
 0x3ed   : > { %v4158_v58 = vmax.f32 %v3806_v42, 0.0 }
 0x3ee   : > { %v4260_v2 = vpack.c.bf16 %v4160_v17, %v4159_v45 }
 0x3ef   : > { %v4259_v12 = vpack.c.bf16 %v4158_v58, %v4157_v20  ;;  %v6383_v13 = vpop.f32.mrb[248].mxu1 }
 0x3f0   : > { %v3827_v14 = vadd.f32 %v6383_v13, %v7591_v9  ;;  %v3818_v15 = vpop.f32.mrb[249].mxu1 }
 0x3f1   : > { %v3819_v40 = vadd.f32 %v7591_v9, %v3818_v15  ;;  %v6384_v16 = vpop.f32.mrb[250].mxu1  ;;  %6507 = vmatprep.mubr.msk.bf16.mxu0 %vm4312_vm2, %v4259_v12 }
 0x3f2   : > { %v3830_v18 = vadd.f32 %v6384_v16, %v7591_v9  ;;  %v3821_v19 = vpop.f32.mrb[251].mxu1  ;;  %6508 = vmatmul.mubr.msk.bf16.gmra.mrb[244].mxu0 %vm4312_vm2, %v4260_v2  ;;  %v4163_v25 = vmax.f32 %v3827_v14, 0.0 }
 0x3f3   : > { %v3822_v24 = vadd.f32 %v7591_v9, %v3821_v19  ;;  %v4161_v32 = vmax.f32 %v3819_v40, 0.0 }
 0x3f4   : > { %v4164_v31 = vmax.f32 %v3830_v18, 0.0 }
 0x3f5   : > { %v4162_v34 = vmax.f32 %v3822_v24, 0.0 }
 0x3f6   : > { %v4262_v21 = vpack.c.bf16 %v4164_v31, %v4163_v25 }
 0x3f7   : > { %v4261_v35 = vpack.c.bf16 %v4162_v34, %v4161_v32  ;;  %v6387_v44 = vpop.f32.mrb[252].mxu1 }
 0x3f8   : > { %v3843_v37 = vadd.f32 %v6387_v44, %v7591_v9  ;;  %v3834_v38 = vpop.f32.mrb[253].mxu1 }
 0x3f9   : > { %v3835_v39 = vadd.f32 %v7591_v9, %v3834_v38  ;;  %v6388_v41 = vpop.f32.mrb[254].mxu1  ;;  %6511 = vmatprep.mubr.msk.bf16.mxu0 %vm4312_vm2, %v4261_v35 }
 0x3fa   : > { %v3846_v43 = vadd.f32 %v6388_v41, %v7591_v9  ;;  %v3837_v46 = vpop.f32.mrb[255].mxu1  ;;  %6512 = vmatmul.mubr.msk.bf16.gmra.mrb[248].mxu0 %vm4312_vm2, %v4262_v21  ;;  %v4167_v49 = vmax.f32 %v3843_v37, 0.0 }
 0x3fb   : > { %v3838_v47 = vadd.f32 %v7591_v9, %v3837_v46  ;;  %v4165_v50 = vmax.f32 %v3835_v39, 0.0 }
 0x3fc   : > { %v4168_v48 = vmax.f32 %v3846_v43, 0.0 }
 0x3fd   : > { %v4166_v51 = vmax.f32 %v3838_v47, 0.0 }
 0x3fe   : > { %v4264_v52 = vpack.c.bf16 %v4168_v48, %v4167_v49 }
 0x3ff   : > { %v4263_v54 = vpack.c.bf16 %v4166_v51, %v4165_v50  ;;  %v6391_v55 = vpop.f32.mrb[0].mxu1 }
 0x400   : > { %v3859_v1 = vadd.f32 %v6391_v55, %v7591_v9  ;;  %v3850_v61 = vpop.f32.mrb[1].mxu1 }
 0x401   : > { %v3851_v63 = vadd.f32 %v7591_v9, %v3850_v61  ;;  %v6392_v3 = vpop.f32.mrb[2].mxu1  ;;  %6515 = vmatprep.mubr.msk.bf16.mxu0 %vm4312_vm2, %v4263_v54 }
 0x402   : > { %v3862_v4 = vadd.f32 %v6392_v3, %v7591_v9  ;;  %v3853_v6 = vpop.f32.mrb[3].mxu1  ;;  %6516 = vmatmul.mubr.msk.bf16.gmra.mrb[252].mxu0 %vm4312_vm2, %v4264_v52  ;;  %v4171_v10 = vmax.f32 %v3859_v1, 0.0 }
 0x403   : > { %v3854_v8 = vadd.f32 %v7591_v9, %v3853_v6  ;;  %v4169_v7 = vmax.f32 %v3851_v63, 0.0 }
 0x404   : > { %v4172_v11 = vmax.f32 %v3862_v4, 0.0 }
 0x405   : > { %v4170_v62 = vmax.f32 %v3854_v8, 0.0 }
 0x406   : > { %v4266_v30 = vpack.c.bf16 %v4172_v11, %v4171_v10 }
 0x407   : > { %v4265_v56 = vpack.c.bf16 %v4170_v62, %v4169_v7  ;;  %v6395_v59 = vpop.f32.mrb[4].mxu1 }
 0x408   : > { %v3875_v23 = vadd.f32 %v6395_v59, %v7591_v9  ;;  %v3866_v26 = vpop.f32.mrb[5].mxu1 }
 0x409   : > { %v3867_v53 = vadd.f32 %v7591_v9, %v3866_v26  ;;  %v6396_v57 = vpop.f32.mrb[6].mxu1  ;;  %6519 = vmatprep.mubr.msk.bf16.mxu0 %vm4312_vm2, %v4265_v56 }
 0x40a   : > { %v3878_v22 = vadd.f32 %v6396_v57, %v7591_v9  ;;  %v3869_v27 = vpop.f32.mrb[7].mxu1  ;;  %6520 = vmatmul.mubr.msk.bf16.gmra.mrb[0].mxu0 %vm4312_vm2, %v4266_v30  ;;  %v4175_v60 = vmax.f32 %v3875_v23, 0.0 }
 0x40b   : > { %v3870_v28 = vadd.f32 %v7591_v9, %v3869_v27  ;;  %v4173_v33 = vmax.f32 %v3867_v53, 0.0 }
 0x40c   : > { %v4176_v0 = vmax.f32 %v3878_v22, 0.0 }
 0x40d   : > { %v4174_v36 = vmax.f32 %v3870_v28, 0.0 }
 0x40e   : > { %v4268_v5 = vpack.c.bf16 %v4176_v0, %v4175_v60 }
 0x40f   : > { %v4267_v29 = vpack.c.bf16 %v4174_v36, %v4173_v33  ;;  %v6399_v42 = vpop.f32.mrb[8].mxu1 }
 0x410   : > { %v3891_v45 = vadd.f32 %v6399_v42, %v7591_v9  ;;  %v3882_v17 = vpop.f32.mrb[9].mxu1 }
 0x411   : > { %v3883_v20 = vadd.f32 %v7591_v9, %v3882_v17  ;;  %v6400_v58 = vpop.f32.mrb[10].mxu1  ;;  %6523 = vmatprep.mubr.msk.bf16.mxu0 %vm4312_vm2, %v4267_v29 }
 0x412   : > { %v3894_v2 = vadd.f32 %v6400_v58, %v7591_v9  ;;  %v3885_v12 = vpop.f32.mrb[11].mxu1  ;;  %6524 = vmatmul.mubr.msk.bf16.gmra.mrb[4].mxu0 %vm4312_vm2, %v4268_v5  ;;  %v4179_v14 = vmax.f32 %v3891_v45, 0.0 }
 0x413   : > { %v3886_v13 = vadd.f32 %v7591_v9, %v3885_v12  ;;  %v4177_v40 = vmax.f32 %v3883_v20, 0.0 }
 0x414   : > { %v4180_v15 = vmax.f32 %v3894_v2, 0.0 }
 0x415   : > { %v4178_v16 = vmax.f32 %v3886_v13, 0.0 }
 0x416   : > { %v4270_v18 = vpack.c.bf16 %v4180_v15, %v4179_v14 }
 0x417   : > { %v4269_v19 = vpack.c.bf16 %v4178_v16, %v4177_v40  ;;  %v6403_v24 = vpop.f32.mrb[12].mxu1 }
 0x418   : > { %v3907_v25 = vadd.f32 %v6403_v24, %v7591_v9  ;;  %v3898_v31 = vpop.f32.mrb[13].mxu1 }
 0x419   : > { %v3899_v32 = vadd.f32 %v7591_v9, %v3898_v31  ;;  %v6404_v34 = vpop.f32.mrb[14].mxu1  ;;  %6527 = vmatprep.mubr.msk.bf16.mxu0 %vm4312_vm2, %v4269_v19 }
 0x41a   : > { %v3910_v21 = vadd.f32 %v6404_v34, %v7591_v9  ;;  %v3901_v35 = vpop.f32.mrb[15].mxu1  ;;  %6528 = vmatmul.mubr.msk.bf16.gmra.mrb[8].mxu0 %vm4312_vm2, %v4270_v18  ;;  %v4183_v37 = vmax.f32 %v3907_v25, 0.0 }
 0x41b   : > { %v3902_v44 = vadd.f32 %v7591_v9, %v3901_v35  ;;  %v4181_v39 = vmax.f32 %v3899_v32, 0.0 }
 0x41c   : > { %v4184_v38 = vmax.f32 %v3910_v21, 0.0 }
 0x41d   : > { %v4182_v41 = vmax.f32 %v3902_v44, 0.0 }
 0x41e   : > { %v4272_v43 = vpack.c.bf16 %v4184_v38, %v4183_v37 }
 0x41f   : > { %v4271_v46 = vpack.c.bf16 %v4182_v41, %v4181_v39  ;;  %v6407_v47 = vpop.f32.mrb[16].mxu1 }
 0x420   : > { %v3923_v49 = vadd.f32 %v6407_v47, %v7591_v9  ;;  %v3914_v48 = vpop.f32.mrb[17].mxu1 }
 0x421   : > { %v3915_v50 = vadd.f32 %v7591_v9, %v3914_v48  ;;  %v6408_v51 = vpop.f32.mrb[18].mxu1  ;;  %6531 = vmatprep.mubr.msk.bf16.mxu0 %vm4312_vm2, %v4271_v46 }
 0x422   : > { %v3926_v52 = vadd.f32 %v6408_v51, %v7591_v9  ;;  %v3917_v54 = vpop.f32.mrb[19].mxu1  ;;  %6532 = vmatmul.mubr.msk.bf16.gmra.mrb[12].mxu0 %vm4312_vm2, %v4272_v43  ;;  %v4187_v1 = vmax.f32 %v3923_v49, 0.0 }
 0x423   : > { %v3918_v55 = vadd.f32 %v7591_v9, %v3917_v54  ;;  %v4185_v63 = vmax.f32 %v3915_v50, 0.0 }
 0x424   : > { %v4188_v61 = vmax.f32 %v3926_v52, 0.0 }
 0x425   : > { %v4186_v3 = vmax.f32 %v3918_v55, 0.0 }
 0x426   : > { %v4274_v4 = vpack.c.bf16 %v4188_v61, %v4187_v1 }
 0x427   : > { %v4273_v6 = vpack.c.bf16 %v4186_v3, %v4185_v63  ;;  %v6411_v8 = vpop.f32.mrb[20].mxu1 }
 0x428   : > { %v3939_v10 = vadd.f32 %v6411_v8, %v7591_v9  ;;  %v3930_v11 = vpop.f32.mrb[21].mxu1 }
 0x429   : > { %v3931_v7 = vadd.f32 %v7591_v9, %v3930_v11  ;;  %v6412_v62 = vpop.f32.mrb[22].mxu1  ;;  %6535 = vmatprep.mubr.msk.bf16.mxu0 %vm4312_vm2, %v4273_v6 }
 0x42a   : > { %v3942_v30 = vadd.f32 %v6412_v62, %v7591_v9  ;;  %v3933_v56 = vpop.f32.mrb[23].mxu1  ;;  %6536 = vmatmul.mubr.msk.bf16.gmra.mrb[16].mxu0 %vm4312_vm2, %v4274_v4  ;;  %v4191_v23 = vmax.f32 %v3939_v10, 0.0 }
 0x42b   : > { %v3934_v59 = vadd.f32 %v7591_v9, %v3933_v56  ;;  %v4189_v53 = vmax.f32 %v3931_v7, 0.0 }
 0x42c   : > { %v4192_v26 = vmax.f32 %v3942_v30, 0.0 }
 0x42d   : > { %v4190_v57 = vmax.f32 %v3934_v59, 0.0 }
 0x42e   : > { %v4276_v22 = vpack.c.bf16 %v4192_v26, %v4191_v23 }
 0x42f   : > { %v4275_v27 = vpack.c.bf16 %v4190_v57, %v4189_v53  ;;  %v6415_v28 = vpop.f32.mrb[24].mxu1 }
 0x430   : > { %v3955_v60 = vadd.f32 %v6415_v28, %v7591_v9  ;;  %v3946_v0 = vpop.f32.mrb[25].mxu1 }
 0x431   : > { %v3947_v33 = vadd.f32 %v7591_v9, %v3946_v0  ;;  %v6416_v36 = vpop.f32.mrb[26].mxu1  ;;  %6539 = vmatprep.mubr.msk.bf16.mxu0 %vm4312_vm2, %v4275_v27 }
 0x432   : > { %v3958_v5 = vadd.f32 %v6416_v36, %v7591_v9  ;;  %v3949_v29 = vpop.f32.mrb[27].mxu1  ;;  %6540 = vmatmul.mubr.msk.bf16.gmra.mrb[20].mxu0 %vm4312_vm2, %v4276_v22  ;;  %v4195_v45 = vmax.f32 %v3955_v60, 0.0 }
 0x433   : > { %v3950_v42 = vadd.f32 %v7591_v9, %v3949_v29  ;;  %v4193_v20 = vmax.f32 %v3947_v33, 0.0 }
 0x434   : > { %v4196_v17 = vmax.f32 %v3958_v5, 0.0 }
 0x435   : > { %v4194_v58 = vmax.f32 %v3950_v42, 0.0 }
 0x436   : > { %v4278_v2 = vpack.c.bf16 %v4196_v17, %v4195_v45 }
 0x437   : > { %v4277_v12 = vpack.c.bf16 %v4194_v58, %v4193_v20  ;;  %v6419_v13 = vpop.f32.mrb[28].mxu1 }
 0x438   : > { %v3971_v14 = vadd.f32 %v6419_v13, %v7591_v9  ;;  %v3962_v15 = vpop.f32.mrb[29].mxu1  ;;  %v7792_v13 = vld [vmem:[%s8228_s8] ss:$0 sm:$0xff] }
 0x439   : > { %v3963_v40 = vadd.f32 %v7591_v9, %v3962_v15  ;;  %v6420_v16 = vpop.f32.mrb[30].mxu1  ;;  %6543 = vmatprep.mubr.msk.bf16.mxu0 %vm4312_vm2, %v4277_v12  ;;  %v7798_v15 = vld [vmem:[%s8230_s10] ss:$0 sm:$0xff] }
 0x43a   : > { %v3974_v18 = vadd.f32 %v6420_v16, %v7591_v9  ;;  %v3965_v19 = vpop.f32.mrb[31].mxu1  ;;  %6544 = vmatmul.mubr.msk.bf16.gmra.mrb[24].mxu0 %vm4312_vm2, %v4278_v2  ;;  %v4199_v25 = vmax.f32 %v3971_v14, 0.0 }
 0x43b   : > { %v3966_v24 = vadd.f32 %v7591_v9, %v3965_v19  ;;  %v4197_v32 = vmax.f32 %v3963_v40, 0.0 }
 0x43c   : > { %v4200_v31 = vmax.f32 %v3974_v18, 0.0 }
 0x43d   : > { %v4198_v34 = vmax.f32 %v3966_v24, 0.0 }
 0x43e   : > { %v4280_v21 = vpack.c.bf16 %v4200_v31, %v4199_v25 }
 0x43f   : > { %v4279_v35 = vpack.c.bf16 %v4198_v34, %v4197_v32  ;;  %v6423_v44 = vpop.f32.mrb[32].mxu1 }
 0x440   : > { %v3987_v37 = vadd.f32 %v6423_v44, %v7591_v9  ;;  %v3978_v38 = vpop.f32.mrb[33].mxu1 }
 0x441   : > { %v3979_v39 = vadd.f32 %v7591_v9, %v3978_v38  ;;  %v6424_v41 = vpop.f32.mrb[34].mxu1  ;;  %6547 = vmatprep.mubr.msk.bf16.mxu0 %vm4312_vm2, %v4279_v35 }
 0x442   : > { %v3990_v43 = vadd.f32 %v6424_v41, %v7591_v9  ;;  %v3981_v46 = vpop.f32.mrb[35].mxu1  ;;  %6548 = vmatmul.mubr.msk.bf16.gmra.mrb[28].mxu0 %vm4312_vm2, %v4280_v21  ;;  %v4203_v49 = vmax.f32 %v3987_v37, 0.0 }
 0x443   : > { %v3982_v47 = vadd.f32 %v7591_v9, %v3981_v46  ;;  %v4201_v50 = vmax.f32 %v3979_v39, 0.0 }
 0x444   : > { %v4204_v48 = vmax.f32 %v3990_v43, 0.0 }
 0x445   : > { %v4202_v51 = vmax.f32 %v3982_v47, 0.0 }
 0x446   : > { %v4282_v52 = vpack.c.bf16 %v4204_v48, %v4203_v49 }
 0x447   : > { %v4281_v54 = vpack.c.bf16 %v4202_v51, %v4201_v50  ;;  %v6427_v55 = vpop.f32.mrb[36].mxu1 }
 0x448   : > { %v4003_v1 = vadd.f32 %v6427_v55, %v7591_v9  ;;  %v3994_v61 = vpop.f32.mrb[37].mxu1 }
 0x449   : > { %v3995_v63 = vadd.f32 %v7591_v9, %v3994_v61  ;;  %v6428_v3 = vpop.f32.mrb[38].mxu1  ;;  %6551 = vmatprep.mubr.msk.bf16.mxu0 %vm4312_vm2, %v4281_v54 }
 0x44a   : > { %v4006_v4 = vadd.f32 %v6428_v3, %v7591_v9  ;;  %v3997_v6 = vpop.f32.mrb[39].mxu1  ;;  %6552 = vmatmul.mubr.msk.bf16.gmra.mrb[32].mxu0 %vm4312_vm2, %v4282_v52  ;;  %v4207_v10 = vmax.f32 %v4003_v1, 0.0 }
 0x44b   : > { %v3998_v8 = vadd.f32 %v7591_v9, %v3997_v6  ;;  %v4205_v7 = vmax.f32 %v3995_v63, 0.0 }
 0x44c   : > { %v4208_v11 = vmax.f32 %v4006_v4, 0.0 }
 0x44d   : > { %v4206_v62 = vmax.f32 %v3998_v8, 0.0 }
 0x44e   : > { %v4284_v30 = vpack.c.bf16 %v4208_v11, %v4207_v10 }
 0x44f   : > { %v4283_v56 = vpack.c.bf16 %v4206_v62, %v4205_v7  ;;  %v6431_v59 = vpop.f32.mrb[40].mxu1 }
 0x450   : > { %v4019_v23 = vadd.f32 %v6431_v59, %v7591_v9  ;;  %v4010_v26 = vpop.f32.mrb[41].mxu1 }
 0x451   : > { %v4011_v53 = vadd.f32 %v7591_v9, %v4010_v26  ;;  %v6432_v57 = vpop.f32.mrb[42].mxu1  ;;  %6555 = vmatprep.mubr.msk.bf16.mxu0 %vm4312_vm2, %v4283_v56 }
 0x452   : > { %v4022_v22 = vadd.f32 %v6432_v57, %v7591_v9  ;;  %v4013_v27 = vpop.f32.mrb[43].mxu1  ;;  %6556 = vmatmul.mubr.msk.bf16.gmra.mrb[36].mxu0 %vm4312_vm2, %v4284_v30  ;;  %v4211_v60 = vmax.f32 %v4019_v23, 0.0 }
 0x453   : > { %v4014_v28 = vadd.f32 %v7591_v9, %v4013_v27  ;;  %v4209_v33 = vmax.f32 %v4011_v53, 0.0 }
 0x454   : > { %v4212_v0 = vmax.f32 %v4022_v22, 0.0 }
 0x455   : > { %v4210_v36 = vmax.f32 %v4014_v28, 0.0 }
 0x456   : > { %v4286_v5 = vpack.c.bf16 %v4212_v0, %v4211_v60 }
 0x457   : > { %v4285_v29 = vpack.c.bf16 %v4210_v36, %v4209_v33  ;;  %v6435_v42 = vpop.f32.mrb[44].mxu1 }
 0x458   : > { %v4035_v45 = vadd.f32 %v6435_v42, %v7591_v9  ;;  %v4026_v17 = vpop.f32.mrb[45].mxu1 }
 0x459   : > { %v4027_v20 = vadd.f32 %v7591_v9, %v4026_v17  ;;  %v6436_v58 = vpop.f32.mrb[46].mxu1  ;;  %6559 = vmatprep.mubr.msk.bf16.mxu0 %vm4312_vm2, %v4285_v29 }
 0x45a   : > { %v4038_v2 = vadd.f32 %v6436_v58, %v7591_v9  ;;  %v4029_v12 = vpop.f32.mrb[47].mxu1  ;;  %6560 = vmatmul.mubr.msk.bf16.gmra.mrb[40].mxu0 %vm4312_vm2, %v4286_v5  ;;  %v4215_v40 = vmax.f32 %v4035_v45, 0.0 }
 0x45b   : > { %v4030_v14 = vadd.f32 %v7792_v13, %v4029_v12  ;;  %v4213_v9 = vmax.f32 %v4027_v20, 0.0 }
 0x45c   : > { %v4216_v16 = vmax.f32 %v4038_v2, 0.0 }
 0x45d   : > { %v4214_v18 = vmax.f32 %v4030_v14, 0.0  ;;  %v6457_v19 = vpop.f32.mrb[192].mxu0 }
 0x45e   : > { %v4288_v24 = vpack.c.bf16 %v4216_v16, %v4215_v40  ;;  %v4548_v25 = vadd.f32 %v6457_v19, %v7798_v15  ;;  %v4539_v31 = vpop.f32.mrb[193].mxu0 }
 0x45f   : > { %v4287_v32 = vpack.c.bf16 %v4214_v18, %v4213_v9  ;;  %v4540_v34 = vadd.f32 %v7798_v15, %v4539_v31  ;;  %v6439_v21 = vpop.f32.mrb[48].mxu1  ;;  %v6458_v35 = vpop.f32.mrb[194].mxu0 }
 0x460   : > { %5053 = vst.msk [vmem:[%s7805_s15 + $0x10] sm:$0xff] %vm5050_vm3, %v4548_v25  ;;  %v4051_v44 = vadd.f32 %v7792_v13, %v6439_v21  ;;  %v4551_v37 = vadd.f32 %v6458_v35, %v7798_v15  ;;  %v4042_v38 = vpop.f32.mrb[49].mxu1  ;;  %v4542_v39 = vpop.f32.mrb[195].mxu0 }
 0x461   : > { %5051 = vst.msk [vmem:[%s7805_s15] sm:$0xff] %vm5050_vm3, %v4540_v34  ;;  %v4043_v41 = vadd.f32 %v7792_v13, %v4042_v38  ;;  %v4543_v43 = vadd.f32 %v7798_v15, %v4542_v39  ;;  %v6440_v46 = vpop.f32.mrb[50].mxu1  ;;  %6563 = vmatprep.mubr.msk.bf16.mxu0 %vm4312_vm2, %v4287_v32 }
 0x462   : > { %5054 = vst.msk [vmem:[%s7805_s15 + $0x18] sm:$0xff] %vm5050_vm3, %v4551_v37  ;;  %v4054_v47 = vadd.f32 %v7792_v13, %v6440_v46  ;;  %v4045_v49 = vpop.f32.mrb[51].mxu1  ;;  %6564 = vmatmul.mubr.msk.bf16.gmra.mrb[44].mxu0 %vm4312_vm2, %v4288_v24  ;;  %v4219_v50 = vmax.f32 %v4051_v44, 0.0 }
 0x463   : > { %5052 = vst.msk [vmem:[%s7805_s15 + $0x8] sm:$0xff] %vm5050_vm3, %v4543_v43  ;;  %v4046_v48 = vadd.f32 %v7792_v13, %v4045_v49  ;;  %v4217_v52 = vmax.f32 %v4043_v41, 0.0 }
 0x464   : > { %v4220_v51 = vmax.f32 %v4054_v47, 0.0 }
 0x465   : > { %v4218_v54 = vmax.f32 %v4046_v48, 0.0  ;;  %v6461_v55 = vpop.f32.mrb[196].mxu0 }
 0x466   : > { %v4290_v1 = vpack.c.bf16 %v4220_v51, %v4219_v50  ;;  %v4564_v61 = vadd.f32 %v6461_v55, %v7798_v15  ;;  %v4555_v63 = vpop.f32.mrb[197].mxu0 }
 0x467   : > { %v4289_v3 = vpack.c.bf16 %v4218_v54, %v4217_v52  ;;  %v4556_v4 = vadd.f32 %v7798_v15, %v4555_v63  ;;  %v6443_v6 = vpop.f32.mrb[52].mxu1  ;;  %v6462_v8 = vpop.f32.mrb[198].mxu0 }
 0x468   : > { %5057 = vst.msk [vmem:[%s7805_s15 + $0x30] sm:$0xff] %vm5050_vm3, %v4564_v61  ;;  %v4067_v10 = vadd.f32 %v7792_v13, %v6443_v6  ;;  %v4567_v11 = vadd.f32 %v6462_v8, %v7798_v15  ;;  %v4058_v7 = vpop.f32.mrb[53].mxu1  ;;  %v4558_v62 = vpop.f32.mrb[199].mxu0 }
 0x469   : > { %5055 = vst.msk [vmem:[%s7805_s15 + $0x20] sm:$0xff] %vm5050_vm3, %v4556_v4  ;;  %v4059_v30 = vadd.f32 %v7792_v13, %v4058_v7  ;;  %v4559_v56 = vadd.f32 %v7798_v15, %v4558_v62  ;;  %v6444_v59 = vpop.f32.mrb[54].mxu1  ;;  %6567 = vmatprep.mubr.msk.bf16.mxu0 %vm4312_vm2, %v4289_v3 }
 0x46a   : > { %5058 = vst.msk [vmem:[%s7805_s15 + $0x38] sm:$0xff] %vm5050_vm3, %v4567_v11  ;;  %v4070_v23 = vadd.f32 %v7792_v13, %v6444_v59  ;;  %v4061_v26 = vpop.f32.mrb[55].mxu1  ;;  %6568 = vmatmul.mubr.msk.bf16.gmra.mrb[48].mxu0 %vm4312_vm2, %v4290_v1  ;;  %v4223_v57 = vmax.f32 %v4067_v10, 0.0 }
 0x46b   : > { %5056 = vst.msk [vmem:[%s7805_s15 + $0x28] sm:$0xff] %vm5050_vm3, %v4559_v56  ;;  %v4062_v53 = vadd.f32 %v7792_v13, %v4061_v26  ;;  %v4221_v27 = vmax.f32 %v4059_v30, 0.0 }
 0x46c   : > { %v4224_v22 = vmax.f32 %v4070_v23, 0.0 }
 0x46d   : > { %v4222_v28 = vmax.f32 %v4062_v53, 0.0  ;;  %v6465_v60 = vpop.f32.mrb[200].mxu0 }
 0x46e   : > { %v4292_v0 = vpack.c.bf16 %v4224_v22, %v4223_v57  ;;  %v4580_v33 = vadd.f32 %v6465_v60, %v7798_v15  ;;  %v4571_v36 = vpop.f32.mrb[201].mxu0 }
 0x46f   : > { %v4291_v5 = vpack.c.bf16 %v4222_v28, %v4221_v27  ;;  %v4572_v29 = vadd.f32 %v7798_v15, %v4571_v36  ;;  %v6447_v42 = vpop.f32.mrb[56].mxu1  ;;  %v6466_v45 = vpop.f32.mrb[202].mxu0 }
 0x470   : > { %5061 = vst.msk [vmem:[%s7805_s15 + $0x50] sm:$0xff] %vm5050_vm3, %v4580_v33  ;;  %v4083_v17 = vadd.f32 %v7792_v13, %v6447_v42  ;;  %v4583_v20 = vadd.f32 %v6466_v45, %v7798_v15  ;;  %v4074_v58 = vpop.f32.mrb[57].mxu1  ;;  %v4574_v2 = vpop.f32.mrb[203].mxu0 }
 0x471   : > { %5059 = vst.msk [vmem:[%s7805_s15 + $0x40] sm:$0xff] %vm5050_vm3, %v4572_v29  ;;  %v4075_v12 = vadd.f32 %v7792_v13, %v4074_v58  ;;  %v4575_v14 = vadd.f32 %v7798_v15, %v4574_v2  ;;  %v6448_v40 = vpop.f32.mrb[58].mxu1  ;;  %6571 = vmatprep.mubr.msk.bf16.mxu0 %vm4312_vm2, %v4291_v5 }
 0x472   : > { %5062 = vst.msk [vmem:[%s7805_s15 + $0x58] sm:$0xff] %vm5050_vm3, %v4583_v20  ;;  %v4086_v16 = vadd.f32 %v7792_v13, %v6448_v40  ;;  %v4077_v9 = vpop.f32.mrb[59].mxu1  ;;  %6572 = vmatmul.mubr.msk.bf16.gmra.mrb[52].mxu0 %vm4312_vm2, %v4292_v0  ;;  %v4227_v19 = vmax.f32 %v4083_v17, 0.0 }
 0x473   : > { %5060 = vst.msk [vmem:[%s7805_s15 + $0x48] sm:$0xff] %vm5050_vm3, %v4575_v14  ;;  %v4078_v18 = vadd.f32 %v7792_v13, %v4077_v9  ;;  %v4225_v25 = vmax.f32 %v4075_v12, 0.0 }
 0x474   : > { %v4228_v24 = vmax.f32 %v4086_v16, 0.0 }
 0x475   : > { %v4226_v31 = vmax.f32 %v4078_v18, 0.0  ;;  %v6469_v32 = vpop.f32.mrb[204].mxu0 }
 0x476   : > { %v4294_v34 = vpack.c.bf16 %v4228_v24, %v4227_v19  ;;  %v4596_v21 = vadd.f32 %v6469_v32, %v7798_v15  ;;  %v4587_v35 = vpop.f32.mrb[205].mxu0 }
 0x477   : > { %v4293_v44 = vpack.c.bf16 %v4226_v31, %v4225_v25  ;;  %v4588_v37 = vadd.f32 %v7798_v15, %v4587_v35  ;;  %v6451_v38 = vpop.f32.mrb[60].mxu1  ;;  %v6470_v39 = vpop.f32.mrb[206].mxu0 }
 0x478   : > { %5065 = vst.msk [vmem:[%s7805_s15 + $0x70] sm:$0xff] %vm5050_vm3, %v4596_v21  ;;  %v4099_v41 = vadd.f32 %v7792_v13, %v6451_v38  ;;  %v4599_v43 = vadd.f32 %v6470_v39, %v7798_v15  ;;  %v4090_v46 = vpop.f32.mrb[61].mxu1  ;;  %v4590_v47 = vpop.f32.mrb[207].mxu0 }
 0x479   : > { %5063 = vst.msk [vmem:[%s7805_s15 + $0x60] sm:$0xff] %vm5050_vm3, %v4588_v37  ;;  %v4091_v49 = vadd.f32 %v7792_v13, %v4090_v46  ;;  %v4591_v48 = vadd.f32 %v7798_v15, %v4590_v47  ;;  %v6452_v50 = vpop.f32.mrb[62].mxu1  ;;  %6575 = vmatprep.mubr.msk.bf16.mxu0 %vm4312_vm2, %v4293_v44 }
 0x47a   : > { %5066 = vst.msk [vmem:[%s7805_s15 + $0x78] sm:$0xff] %vm5050_vm3, %v4599_v43  ;;  %v4102_v51 = vadd.f32 %v7792_v13, %v6452_v50  ;;  %v4093_v52 = vpop.f32.mrb[63].mxu1  ;;  %6576 = vmatmul.mubr.msk.bf16.gmra.mrb[56].mxu0 %vm4312_vm2, %v4294_v34  ;;  %v4231_v55 = vmax.f32 %v4099_v41, 0.0 }
 0x47b   : > { %5064 = vst.msk [vmem:[%s7805_s15 + $0x68] sm:$0xff] %vm5050_vm3, %v4591_v48  ;;  %v4094_v54 = vadd.f32 %v7792_v13, %v4093_v52  ;;  %v4229_v61 = vmax.f32 %v4091_v49, 0.0 }
 0x47c   : > { %v4232_v1 = vmax.f32 %v4102_v51, 0.0 }
 0x47d   : > { %v4230_v63 = vmax.f32 %v4094_v54, 0.0  ;;  %v6473_v3 = vpop.f32.mrb[208].mxu0 }
 0x47e   : > { %v4296_v4 = vpack.c.bf16 %v4232_v1, %v4231_v55  ;;  %v4612_v6 = vadd.f32 %v6473_v3, %v7798_v15  ;;  %v4603_v8 = vpop.f32.mrb[209].mxu0 }
 0x47f   : > { %v4295_v10 = vpack.c.bf16 %v4230_v63, %v4229_v61  ;;  %v4604_v11 = vadd.f32 %v7798_v15, %v4603_v8  ;;  %v6474_v7 = vpop.f32.mrb[210].mxu0 }
 0x480   : > { %5069 = vst.msk [vmem:[%s7805_s15 + $0x90] sm:$0xff] %vm5050_vm3, %v4612_v6  ;;  %v4615_v13 = vadd.f32 %v6474_v7, %v7798_v15  ;;  %v4606_v62 = vpop.f32.mrb[211].mxu0 }
 0x481   : > { %5067 = vst.msk [vmem:[%s7805_s15 + $0x80] sm:$0xff] %vm5050_vm3, %v4604_v11  ;;  %v4607_v30 = vadd.f32 %v7798_v15, %v4606_v62  ;;  %6579 = vmatprep.mubr.msk.bf16.mxu0 %vm4312_vm2, %v4295_v10 }
 0x482   : > { %5070 = vst.msk [vmem:[%s7805_s15 + $0x98] sm:$0xff] %vm5050_vm3, %v4615_v13  ;;  %6580 = vmatmul.mubr.msk.bf16.gmra.mrb[60].mxu0 %vm4312_vm2, %v4296_v4 }
 0x483   : > { %5068 = vst.msk [vmem:[%s7805_s15 + $0x88] sm:$0xff] %vm5050_vm3, %v4607_v30 }
 0x485   : > { %v6477_v56 = vpop.f32.mrb[212].mxu0 }
 0x486   : > { %v4628_v59 = vadd.f32 %v6477_v56, %v7798_v15  ;;  %v4619_v23 = vpop.f32.mrb[213].mxu0 }
 0x487   : > { %v4620_v26 = vadd.f32 %v7798_v15, %v4619_v23  ;;  %v6478_v53 = vpop.f32.mrb[214].mxu0 }
 0x488   : > { %5073 = vst.msk [vmem:[%s7805_s15 + $0xb0] sm:$0xff] %vm5050_vm3, %v4628_v59  ;;  %v4631_v57 = vadd.f32 %v6478_v53, %v7798_v15  ;;  %v4622_v22 = vpop.f32.mrb[215].mxu0 }
 0x489   : > { %5071 = vst.msk [vmem:[%s7805_s15 + $0xa0] sm:$0xff] %vm5050_vm3, %v4620_v26  ;;  %v4623_v27 = vadd.f32 %v7798_v15, %v4622_v22 }
 0x48a   : > { %5074 = vst.msk [vmem:[%s7805_s15 + $0xb8] sm:$0xff] %vm5050_vm3, %v4631_v57 }
 0x48b   : > { %5072 = vst.msk [vmem:[%s7805_s15 + $0xa8] sm:$0xff] %vm5050_vm3, %v4623_v27 }
 0x48d   : > { %v6481_v28 = vpop.f32.mrb[216].mxu0 }
 0x48e   : > { %v4644_v60 = vadd.f32 %v6481_v28, %v7798_v15  ;;  %v4635_v0 = vpop.f32.mrb[217].mxu0 }
 0x48f   : > { %v4636_v33 = vadd.f32 %v7798_v15, %v4635_v0  ;;  %v6482_v36 = vpop.f32.mrb[218].mxu0 }
 0x490   : > { %5077 = vst.msk [vmem:[%s7805_s15 + $0xd0] sm:$0xff] %vm5050_vm3, %v4644_v60  ;;  %v4647_v5 = vadd.f32 %v6482_v36, %v7798_v15  ;;  %v4638_v29 = vpop.f32.mrb[219].mxu0 }
 0x491   : > { %5075 = vst.msk [vmem:[%s7805_s15 + $0xc0] sm:$0xff] %vm5050_vm3, %v4636_v33  ;;  %v4639_v42 = vadd.f32 %v7798_v15, %v4638_v29 }
 0x492   : > { %5078 = vst.msk [vmem:[%s7805_s15 + $0xd8] sm:$0xff] %vm5050_vm3, %v4647_v5 }
 0x493   : > { %5076 = vst.msk [vmem:[%s7805_s15 + $0xc8] sm:$0xff] %vm5050_vm3, %v4639_v42 }
 0x495   : > { %v6485_v45 = vpop.f32.mrb[220].mxu0 }
 0x496   : > { %v4660_v17 = vadd.f32 %v6485_v45, %v7798_v15  ;;  %v4651_v20 = vpop.f32.mrb[221].mxu0 }
 0x497   : > { %v4652_v58 = vadd.f32 %v7798_v15, %v4651_v20  ;;  %v6486_v2 = vpop.f32.mrb[222].mxu0 }
 0x498   : > { %5081 = vst.msk [vmem:[%s7805_s15 + $0xf0] sm:$0xff] %vm5050_vm3, %v4660_v17  ;;  %v4663_v12 = vadd.f32 %v6486_v2, %v7798_v15  ;;  %v4654_v14 = vpop.f32.mrb[223].mxu0 }
 0x499   : > { %5079 = vst.msk [vmem:[%s7805_s15 + $0xe0] sm:$0xff] %vm5050_vm3, %v4652_v58  ;;  %v4655_v40 = vadd.f32 %v7798_v15, %v4654_v14 }
 0x49a   : > { %5082 = vst.msk [vmem:[%s7805_s15 + $0xf8] sm:$0xff] %vm5050_vm3, %v4663_v12 }
 0x49b   : > { %5080 = vst.msk [vmem:[%s7805_s15 + $0xe8] sm:$0xff] %vm5050_vm3, %v4655_v40 }
 0x49d   : > { %v6489_v16 = vpop.f32.mrb[224].mxu0 }
 0x49e   : > { %v4676_v9 = vadd.f32 %v6489_v16, %v7798_v15  ;;  %v4667_v18 = vpop.f32.mrb[225].mxu0 }
 0x49f   : > { %v4668_v19 = vadd.f32 %v7798_v15, %v4667_v18  ;;  %v6490_v24 = vpop.f32.mrb[226].mxu0 }
 0x4a0   : > { %5085 = vst.msk [vmem:[%s7805_s15 + $0x110] sm:$0xff] %vm5050_vm3, %v4676_v9  ;;  %v4679_v25 = vadd.f32 %v6490_v24, %v7798_v15  ;;  %v4670_v31 = vpop.f32.mrb[227].mxu0 }
 0x4a1   : > { %5083 = vst.msk [vmem:[%s7805_s15 + $0x100] sm:$0xff] %vm5050_vm3, %v4668_v19  ;;  %v4671_v32 = vadd.f32 %v7798_v15, %v4670_v31 }
 0x4a2   : > { %5086 = vst.msk [vmem:[%s7805_s15 + $0x118] sm:$0xff] %vm5050_vm3, %v4679_v25 }
 0x4a3   : > { %5084 = vst.msk [vmem:[%s7805_s15 + $0x108] sm:$0xff] %vm5050_vm3, %v4671_v32 }
 0x4a5   : > { %v6493_v34 = vpop.f32.mrb[228].mxu0 }
 0x4a6   : > { %v4692_v21 = vadd.f32 %v6493_v34, %v7798_v15  ;;  %v4683_v35 = vpop.f32.mrb[229].mxu0 }
 0x4a7   : > { %v4684_v44 = vadd.f32 %v7798_v15, %v4683_v35  ;;  %v6494_v37 = vpop.f32.mrb[230].mxu0 }
 0x4a8   : > { %5089 = vst.msk [vmem:[%s7805_s15 + $0x130] sm:$0xff] %vm5050_vm3, %v4692_v21  ;;  %v4695_v38 = vadd.f32 %v6494_v37, %v7798_v15  ;;  %v4686_v39 = vpop.f32.mrb[231].mxu0 }
 0x4a9   : > { %5087 = vst.msk [vmem:[%s7805_s15 + $0x120] sm:$0xff] %vm5050_vm3, %v4684_v44  ;;  %v4687_v41 = vadd.f32 %v7798_v15, %v4686_v39 }
 0x4aa   : > { %5090 = vst.msk [vmem:[%s7805_s15 + $0x138] sm:$0xff] %vm5050_vm3, %v4695_v38 }
 0x4ab   : > { %5088 = vst.msk [vmem:[%s7805_s15 + $0x128] sm:$0xff] %vm5050_vm3, %v4687_v41 }
 0x4ad   : > { %v6497_v43 = vpop.f32.mrb[232].mxu0 }
 0x4ae   : > { %v4708_v46 = vadd.f32 %v6497_v43, %v7798_v15  ;;  %v4699_v47 = vpop.f32.mrb[233].mxu0 }
 0x4af   : > { %v4700_v49 = vadd.f32 %v7798_v15, %v4699_v47  ;;  %v6498_v48 = vpop.f32.mrb[234].mxu0 }
 0x4b0   : > { %5093 = vst.msk [vmem:[%s7805_s15 + $0x150] sm:$0xff] %vm5050_vm3, %v4708_v46  ;;  %v4711_v50 = vadd.f32 %v6498_v48, %v7798_v15  ;;  %v4702_v51 = vpop.f32.mrb[235].mxu0 }
 0x4b1   : > { %5091 = vst.msk [vmem:[%s7805_s15 + $0x140] sm:$0xff] %vm5050_vm3, %v4700_v49  ;;  %v4703_v52 = vadd.f32 %v7798_v15, %v4702_v51 }
 0x4b2   : > { %5094 = vst.msk [vmem:[%s7805_s15 + $0x158] sm:$0xff] %vm5050_vm3, %v4711_v50 }
 0x4b3   : > { %5092 = vst.msk [vmem:[%s7805_s15 + $0x148] sm:$0xff] %vm5050_vm3, %v4703_v52 }
 0x4b5   : > { %v6501_v54 = vpop.f32.mrb[236].mxu0 }
 0x4b6   : > { %v4724_v55 = vadd.f32 %v6501_v54, %v7798_v15  ;;  %v4715_v1 = vpop.f32.mrb[237].mxu0 }
 0x4b7   : > { %v4716_v61 = vadd.f32 %v7798_v15, %v4715_v1  ;;  %v6502_v63 = vpop.f32.mrb[238].mxu0 }
 0x4b8   : > { %5097 = vst.msk [vmem:[%s7805_s15 + $0x170] sm:$0xff] %vm5050_vm3, %v4724_v55  ;;  %v4727_v3 = vadd.f32 %v6502_v63, %v7798_v15  ;;  %v4718_v4 = vpop.f32.mrb[239].mxu0 }
 0x4b9   : > { %5095 = vst.msk [vmem:[%s7805_s15 + $0x160] sm:$0xff] %vm5050_vm3, %v4716_v61  ;;  %v4719_v6 = vadd.f32 %v7798_v15, %v4718_v4 }
 0x4ba   : > { %5098 = vst.msk [vmem:[%s7805_s15 + $0x178] sm:$0xff] %vm5050_vm3, %v4727_v3 }
 0x4bb   : > { %5096 = vst.msk [vmem:[%s7805_s15 + $0x168] sm:$0xff] %vm5050_vm3, %v4719_v6 }
 0x4bd   : > { %v6505_v8 = vpop.f32.mrb[240].mxu0 }
 0x4be   : > { %v4740_v10 = vadd.f32 %v6505_v8, %v7798_v15  ;;  %v4731_v11 = vpop.f32.mrb[241].mxu0 }
 0x4bf   : > { %v4732_v7 = vadd.f32 %v7798_v15, %v4731_v11  ;;  %v6506_v13 = vpop.f32.mrb[242].mxu0 }
 0x4c0   : > { %5101 = vst.msk [vmem:[%s7805_s15 + $0x190] sm:$0xff] %vm5050_vm3, %v4740_v10  ;;  %v4743_v62 = vadd.f32 %v6506_v13, %v7798_v15  ;;  %v4734_v30 = vpop.f32.mrb[243].mxu0 }
 0x4c1   : > { %5099 = vst.msk [vmem:[%s7805_s15 + $0x180] sm:$0xff] %vm5050_vm3, %v4732_v7  ;;  %v4735_v56 = vadd.f32 %v7798_v15, %v4734_v30 }
 0x4c2   : > { %5102 = vst.msk [vmem:[%s7805_s15 + $0x198] sm:$0xff] %vm5050_vm3, %v4743_v62 }
 0x4c3   : > { %5100 = vst.msk [vmem:[%s7805_s15 + $0x188] sm:$0xff] %vm5050_vm3, %v4735_v56 }
 0x4c5   : > { %v6509_v59 = vpop.f32.mrb[244].mxu0 }
 0x4c6   : > { %v4756_v23 = vadd.f32 %v6509_v59, %v7798_v15  ;;  %v4747_v26 = vpop.f32.mrb[245].mxu0 }
 0x4c7   : > { %v4748_v53 = vadd.f32 %v7798_v15, %v4747_v26  ;;  %v6510_v57 = vpop.f32.mrb[246].mxu0 }
 0x4c8   : > { %5105 = vst.msk [vmem:[%s7805_s15 + $0x1b0] sm:$0xff] %vm5050_vm3, %v4756_v23  ;;  %v4759_v22 = vadd.f32 %v6510_v57, %v7798_v15  ;;  %v4750_v27 = vpop.f32.mrb[247].mxu0 }
 0x4c9   : > { %5103 = vst.msk [vmem:[%s7805_s15 + $0x1a0] sm:$0xff] %vm5050_vm3, %v4748_v53  ;;  %v4751_v28 = vadd.f32 %v7798_v15, %v4750_v27 }
 0x4ca   : > { %5106 = vst.msk [vmem:[%s7805_s15 + $0x1b8] sm:$0xff] %vm5050_vm3, %v4759_v22 }
 0x4cb   : > { %5104 = vst.msk [vmem:[%s7805_s15 + $0x1a8] sm:$0xff] %vm5050_vm3, %v4751_v28 }
 0x4cd   : > { %v6513_v60 = vpop.f32.mrb[248].mxu0 }
 0x4ce   : > { %v4772_v0 = vadd.f32 %v6513_v60, %v7798_v15  ;;  %v4763_v33 = vpop.f32.mrb[249].mxu0 }
 0x4cf   : > { %v4764_v36 = vadd.f32 %v7798_v15, %v4763_v33  ;;  %v6514_v5 = vpop.f32.mrb[250].mxu0 }
 0x4d0   : > { %5109 = vst.msk [vmem:[%s7805_s15 + $0x1d0] sm:$0xff] %vm5050_vm3, %v4772_v0  ;;  %v4775_v29 = vadd.f32 %v6514_v5, %v7798_v15  ;;  %v4766_v42 = vpop.f32.mrb[251].mxu0 }
 0x4d1   : > { %5107 = vst.msk [vmem:[%s7805_s15 + $0x1c0] sm:$0xff] %vm5050_vm3, %v4764_v36  ;;  %v4767_v45 = vadd.f32 %v7798_v15, %v4766_v42 }
 0x4d2   : > { %5110 = vst.msk [vmem:[%s7805_s15 + $0x1d8] sm:$0xff] %vm5050_vm3, %v4775_v29 }
 0x4d3   : > { %5108 = vst.msk [vmem:[%s7805_s15 + $0x1c8] sm:$0xff] %vm5050_vm3, %v4767_v45 }
 0x4d5   : > { %v6517_v17 = vpop.f32.mrb[252].mxu0 }
 0x4d6   : > { %v4788_v20 = vadd.f32 %v6517_v17, %v7798_v15  ;;  %v4779_v58 = vpop.f32.mrb[253].mxu0 }
 0x4d7   : > { %v4780_v2 = vadd.f32 %v7798_v15, %v4779_v58  ;;  %v6518_v12 = vpop.f32.mrb[254].mxu0 }
 0x4d8   : > { %5113 = vst.msk [vmem:[%s7805_s15 + $0x1f0] sm:$0xff] %vm5050_vm3, %v4788_v20  ;;  %v4791_v14 = vadd.f32 %v6518_v12, %v7798_v15  ;;  %v4782_v40 = vpop.f32.mrb[255].mxu0 }
 0x4d9   : > { %5111 = vst.msk [vmem:[%s7805_s15 + $0x1e0] sm:$0xff] %vm5050_vm3, %v4780_v2  ;;  %v4783_v16 = vadd.f32 %v7798_v15, %v4782_v40 }
 0x4da   : > { %5114 = vst.msk [vmem:[%s7805_s15 + $0x1f8] sm:$0xff] %vm5050_vm3, %v4791_v14 }
 0x4db   : > { %5112 = vst.msk [vmem:[%s7805_s15 + $0x1e8] sm:$0xff] %vm5050_vm3, %v4783_v16 }
 0x4dd   : > { %v6521_v9 = vpop.f32.mrb[0].mxu0 }
 0x4de   : > { %v4804_v18 = vadd.f32 %v6521_v9, %v7798_v15  ;;  %v4795_v19 = vpop.f32.mrb[1].mxu0 }
 0x4df   : > { %v4796_v24 = vadd.f32 %v7798_v15, %v4795_v19  ;;  %v6522_v25 = vpop.f32.mrb[2].mxu0 }
 0x4e0   : > { %5117 = vst.msk [vmem:[%s7805_s15 + $0x210] sm:$0xff] %vm5050_vm3, %v4804_v18  ;;  %v4807_v31 = vadd.f32 %v6522_v25, %v7798_v15  ;;  %v4798_v32 = vpop.f32.mrb[3].mxu0 }
 0x4e1   : > { %5115 = vst.msk [vmem:[%s7805_s15 + $0x200] sm:$0xff] %vm5050_vm3, %v4796_v24  ;;  %v4799_v34 = vadd.f32 %v7798_v15, %v4798_v32 }
 0x4e2   : > { %5118 = vst.msk [vmem:[%s7805_s15 + $0x218] sm:$0xff] %vm5050_vm3, %v4807_v31 }
 0x4e3   : > { %5116 = vst.msk [vmem:[%s7805_s15 + $0x208] sm:$0xff] %vm5050_vm3, %v4799_v34 }
 0x4e5   : > { %v6525_v21 = vpop.f32.mrb[4].mxu0 }
 0x4e6   : > { %v4820_v35 = vadd.f32 %v6525_v21, %v7798_v15  ;;  %v4811_v44 = vpop.f32.mrb[5].mxu0 }
 0x4e7   : > { %v4812_v37 = vadd.f32 %v7798_v15, %v4811_v44  ;;  %v6526_v38 = vpop.f32.mrb[6].mxu0 }
 0x4e8   : > { %5121 = vst.msk [vmem:[%s7805_s15 + $0x230] sm:$0xff] %vm5050_vm3, %v4820_v35  ;;  %v4823_v39 = vadd.f32 %v6526_v38, %v7798_v15  ;;  %v4814_v41 = vpop.f32.mrb[7].mxu0 }
 0x4e9   : > { %5119 = vst.msk [vmem:[%s7805_s15 + $0x220] sm:$0xff] %vm5050_vm3, %v4812_v37  ;;  %v4815_v43 = vadd.f32 %v7798_v15, %v4814_v41 }
 0x4ea   : > { %5122 = vst.msk [vmem:[%s7805_s15 + $0x238] sm:$0xff] %vm5050_vm3, %v4823_v39 }
 0x4eb   : > { %5120 = vst.msk [vmem:[%s7805_s15 + $0x228] sm:$0xff] %vm5050_vm3, %v4815_v43 }
 0x4ed   : > { %v6529_v46 = vpop.f32.mrb[8].mxu0 }
 0x4ee   : > { %v4836_v47 = vadd.f32 %v6529_v46, %v7798_v15  ;;  %v4827_v49 = vpop.f32.mrb[9].mxu0 }
 0x4ef   : > { %v4828_v48 = vadd.f32 %v7798_v15, %v4827_v49  ;;  %v6530_v50 = vpop.f32.mrb[10].mxu0 }
 0x4f0   : > { %5125 = vst.msk [vmem:[%s7805_s15 + $0x250] sm:$0xff] %vm5050_vm3, %v4836_v47  ;;  %v4839_v51 = vadd.f32 %v6530_v50, %v7798_v15  ;;  %v4830_v52 = vpop.f32.mrb[11].mxu0 }
 0x4f1   : > { %5123 = vst.msk [vmem:[%s7805_s15 + $0x240] sm:$0xff] %vm5050_vm3, %v4828_v48  ;;  %v4831_v54 = vadd.f32 %v7798_v15, %v4830_v52 }
 0x4f2   : > { %5126 = vst.msk [vmem:[%s7805_s15 + $0x258] sm:$0xff] %vm5050_vm3, %v4839_v51 }
 0x4f3   : > { %5124 = vst.msk [vmem:[%s7805_s15 + $0x248] sm:$0xff] %vm5050_vm3, %v4831_v54 }
 0x4f5   : > { %v6533_v55 = vpop.f32.mrb[12].mxu0 }
 0x4f6   : > { %v4852_v1 = vadd.f32 %v6533_v55, %v7798_v15  ;;  %v4843_v61 = vpop.f32.mrb[13].mxu0 }
 0x4f7   : > { %v4844_v63 = vadd.f32 %v7798_v15, %v4843_v61  ;;  %v6534_v3 = vpop.f32.mrb[14].mxu0 }
 0x4f8   : > { %5129 = vst.msk [vmem:[%s7805_s15 + $0x270] sm:$0xff] %vm5050_vm3, %v4852_v1  ;;  %v4855_v4 = vadd.f32 %v6534_v3, %v7798_v15  ;;  %v4846_v6 = vpop.f32.mrb[15].mxu0 }
 0x4f9   : > { %5127 = vst.msk [vmem:[%s7805_s15 + $0x260] sm:$0xff] %vm5050_vm3, %v4844_v63  ;;  %v4847_v8 = vadd.f32 %v7798_v15, %v4846_v6 }
 0x4fa   : > { %5130 = vst.msk [vmem:[%s7805_s15 + $0x278] sm:$0xff] %vm5050_vm3, %v4855_v4 }
 0x4fb   : > { %5128 = vst.msk [vmem:[%s7805_s15 + $0x268] sm:$0xff] %vm5050_vm3, %v4847_v8 }
 0x4fd   : > { %v6537_v10 = vpop.f32.mrb[16].mxu0 }
 0x4fe   : > { %v4868_v11 = vadd.f32 %v6537_v10, %v7798_v15  ;;  %v4859_v7 = vpop.f32.mrb[17].mxu0 }
 0x4ff   : > { %v4860_v13 = vadd.f32 %v7798_v15, %v4859_v7  ;;  %v6538_v62 = vpop.f32.mrb[18].mxu0 }
 0x500   : > { %5133 = vst.msk [vmem:[%s7805_s15 + $0x290] sm:$0xff] %vm5050_vm3, %v4868_v11  ;;  %v4871_v30 = vadd.f32 %v6538_v62, %v7798_v15  ;;  %v4862_v56 = vpop.f32.mrb[19].mxu0 }
 0x501   : > { %5131 = vst.msk [vmem:[%s7805_s15 + $0x280] sm:$0xff] %vm5050_vm3, %v4860_v13  ;;  %v4863_v59 = vadd.f32 %v7798_v15, %v4862_v56 }
 0x502   : > { %5134 = vst.msk [vmem:[%s7805_s15 + $0x298] sm:$0xff] %vm5050_vm3, %v4871_v30 }
 0x503   : > { %5132 = vst.msk [vmem:[%s7805_s15 + $0x288] sm:$0xff] %vm5050_vm3, %v4863_v59 }
 0x505   : > { %v6541_v23 = vpop.f32.mrb[20].mxu0 }
 0x506   : > { %v4884_v26 = vadd.f32 %v6541_v23, %v7798_v15  ;;  %v4875_v53 = vpop.f32.mrb[21].mxu0 }
 0x507   : > { %v4876_v57 = vadd.f32 %v7798_v15, %v4875_v53  ;;  %v6542_v22 = vpop.f32.mrb[22].mxu0 }
 0x508   : > { %5137 = vst.msk [vmem:[%s7805_s15 + $0x2b0] sm:$0xff] %vm5050_vm3, %v4884_v26  ;;  %v4887_v27 = vadd.f32 %v6542_v22, %v7798_v15  ;;  %v4878_v28 = vpop.f32.mrb[23].mxu0 }
 0x509   : > { %5135 = vst.msk [vmem:[%s7805_s15 + $0x2a0] sm:$0xff] %vm5050_vm3, %v4876_v57  ;;  %v4879_v60 = vadd.f32 %v7798_v15, %v4878_v28 }
 0x50a   : > { %5138 = vst.msk [vmem:[%s7805_s15 + $0x2b8] sm:$0xff] %vm5050_vm3, %v4887_v27 }
 0x50b   : > { %5136 = vst.msk [vmem:[%s7805_s15 + $0x2a8] sm:$0xff] %vm5050_vm3, %v4879_v60 }
 0x50d   : > { %v6545_v0 = vpop.f32.mrb[24].mxu0 }
 0x50e   : > { %v4900_v33 = vadd.f32 %v6545_v0, %v7798_v15  ;;  %v4891_v36 = vpop.f32.mrb[25].mxu0 }
 0x50f   : > { %v4892_v5 = vadd.f32 %v7798_v15, %v4891_v36  ;;  %v6546_v29 = vpop.f32.mrb[26].mxu0 }
 0x510   : > { %5141 = vst.msk [vmem:[%s7805_s15 + $0x2d0] sm:$0xff] %vm5050_vm3, %v4900_v33  ;;  %v4903_v42 = vadd.f32 %v6546_v29, %v7798_v15  ;;  %v4894_v45 = vpop.f32.mrb[27].mxu0 }
 0x511   : > { %5139 = vst.msk [vmem:[%s7805_s15 + $0x2c0] sm:$0xff] %vm5050_vm3, %v4892_v5  ;;  %v4895_v17 = vadd.f32 %v7798_v15, %v4894_v45 }
 0x512   : > { %5142 = vst.msk [vmem:[%s7805_s15 + $0x2d8] sm:$0xff] %vm5050_vm3, %v4903_v42 }
 0x513   : > { %5140 = vst.msk [vmem:[%s7805_s15 + $0x2c8] sm:$0xff] %vm5050_vm3, %v4895_v17 }
 0x515   : > { %v6549_v20 = vpop.f32.mrb[28].mxu0 }
 0x516   : > { %v4916_v58 = vadd.f32 %v6549_v20, %v7798_v15  ;;  %v4907_v2 = vpop.f32.mrb[29].mxu0 }
 0x517   : > { %v4908_v12 = vadd.f32 %v7798_v15, %v4907_v2  ;;  %v6550_v14 = vpop.f32.mrb[30].mxu0 }
 0x518   : > { %5145 = vst.msk [vmem:[%s7805_s15 + $0x2f0] sm:$0xff] %vm5050_vm3, %v4916_v58  ;;  %v4919_v40 = vadd.f32 %v6550_v14, %v7798_v15  ;;  %v4910_v16 = vpop.f32.mrb[31].mxu0 }
 0x519   : > { %5143 = vst.msk [vmem:[%s7805_s15 + $0x2e0] sm:$0xff] %vm5050_vm3, %v4908_v12  ;;  %v4911_v9 = vadd.f32 %v7798_v15, %v4910_v16 }
 0x51a   : > { %5146 = vst.msk [vmem:[%s7805_s15 + $0x2f8] sm:$0xff] %vm5050_vm3, %v4919_v40 }
 0x51b   : > { %5144 = vst.msk [vmem:[%s7805_s15 + $0x2e8] sm:$0xff] %vm5050_vm3, %v4911_v9 }
 0x51d   : > { %v6553_v18 = vpop.f32.mrb[32].mxu0 }
 0x51e   : > { %v4932_v19 = vadd.f32 %v6553_v18, %v7798_v15  ;;  %v4923_v24 = vpop.f32.mrb[33].mxu0 }
 0x51f   : > { %v4924_v25 = vadd.f32 %v7798_v15, %v4923_v24  ;;  %v6554_v31 = vpop.f32.mrb[34].mxu0 }
 0x520   : > { %5149 = vst.msk [vmem:[%s7805_s15 + $0x310] sm:$0xff] %vm5050_vm3, %v4932_v19  ;;  %v4935_v32 = vadd.f32 %v6554_v31, %v7798_v15  ;;  %v4926_v34 = vpop.f32.mrb[35].mxu0 }
 0x521   : > { %5147 = vst.msk [vmem:[%s7805_s15 + $0x300] sm:$0xff] %vm5050_vm3, %v4924_v25  ;;  %v4927_v21 = vadd.f32 %v7798_v15, %v4926_v34 }
 0x522   : > { %5150 = vst.msk [vmem:[%s7805_s15 + $0x318] sm:$0xff] %vm5050_vm3, %v4935_v32 }
 0x523   : > { %5148 = vst.msk [vmem:[%s7805_s15 + $0x308] sm:$0xff] %vm5050_vm3, %v4927_v21 }
 0x525   : > { %v6557_v35 = vpop.f32.mrb[36].mxu0 }
 0x526   : > { %v4948_v44 = vadd.f32 %v6557_v35, %v7798_v15  ;;  %v4939_v37 = vpop.f32.mrb[37].mxu0 }
 0x527   : > { %v4940_v38 = vadd.f32 %v7798_v15, %v4939_v37  ;;  %v6558_v39 = vpop.f32.mrb[38].mxu0 }
 0x528   : > { %5153 = vst.msk [vmem:[%s7805_s15 + $0x330] sm:$0xff] %vm5050_vm3, %v4948_v44  ;;  %v4951_v41 = vadd.f32 %v6558_v39, %v7798_v15  ;;  %v4942_v43 = vpop.f32.mrb[39].mxu0 }
 0x529   : > { %5151 = vst.msk [vmem:[%s7805_s15 + $0x320] sm:$0xff] %vm5050_vm3, %v4940_v38  ;;  %v4943_v46 = vadd.f32 %v7798_v15, %v4942_v43 }
 0x52a   : > { %5154 = vst.msk [vmem:[%s7805_s15 + $0x338] sm:$0xff] %vm5050_vm3, %v4951_v41 }
 0x52b   : > { %5152 = vst.msk [vmem:[%s7805_s15 + $0x328] sm:$0xff] %vm5050_vm3, %v4943_v46 }
 0x52d   : > { %v6561_v47 = vpop.f32.mrb[40].mxu0 }
 0x52e   : > { %v4964_v49 = vadd.f32 %v6561_v47, %v7798_v15  ;;  %v4955_v48 = vpop.f32.mrb[41].mxu0 }
 0x52f   : > { %v4956_v50 = vadd.f32 %v7798_v15, %v4955_v48  ;;  %v6562_v51 = vpop.f32.mrb[42].mxu0 }
 0x530   : > { %5157 = vst.msk [vmem:[%s7805_s15 + $0x350] sm:$0xff] %vm5050_vm3, %v4964_v49  ;;  %v4967_v52 = vadd.f32 %v6562_v51, %v7798_v15  ;;  %v4958_v54 = vpop.f32.mrb[43].mxu0 }
 0x531   : > { %5155 = vst.msk [vmem:[%s7805_s15 + $0x340] sm:$0xff] %vm5050_vm3, %v4956_v50  ;;  %v4959_v55 = vadd.f32 %v7798_v15, %v4958_v54 }
 0x532   : > { %5158 = vst.msk [vmem:[%s7805_s15 + $0x358] sm:$0xff] %vm5050_vm3, %v4967_v52 }
 0x533   : > { %5156 = vst.msk [vmem:[%s7805_s15 + $0x348] sm:$0xff] %vm5050_vm3, %v4959_v55 }
 0x535   : > { %v6565_v1 = vpop.f32.mrb[44].mxu0 }
 0x536   : > { %v4980_v61 = vadd.f32 %v6565_v1, %v7798_v15  ;;  %v4971_v63 = vpop.f32.mrb[45].mxu0 }
 0x537   : > { %v4972_v3 = vadd.f32 %v7798_v15, %v4971_v63  ;;  %v6566_v4 = vpop.f32.mrb[46].mxu0 }
 0x538   : > { %5161 = vst.msk [vmem:[%s7805_s15 + $0x370] sm:$0xff] %vm5050_vm3, %v4980_v61  ;;  %v4983_v6 = vadd.f32 %v6566_v4, %v7798_v15  ;;  %v4974_v8 = vpop.f32.mrb[47].mxu0 }
 0x539   : > { %5159 = vst.msk [vmem:[%s7805_s15 + $0x360] sm:$0xff] %vm5050_vm3, %v4972_v3  ;;  %v4975_v10 = vadd.f32 %v7798_v15, %v4974_v8 }
 0x53a   : > { %5162 = vst.msk [vmem:[%s7805_s15 + $0x378] sm:$0xff] %vm5050_vm3, %v4983_v6 }
 0x53b   : > { %5160 = vst.msk [vmem:[%s7805_s15 + $0x368] sm:$0xff] %vm5050_vm3, %v4975_v10 }
 0x53d   : > { %v6569_v11 = vpop.f32.mrb[48].mxu0 }
 0x53e   : > { %v4996_v7 = vadd.f32 %v6569_v11, %v7798_v15  ;;  %v4987_v13 = vpop.f32.mrb[49].mxu0 }
 0x53f   : > { %v4988_v62 = vadd.f32 %v7798_v15, %v4987_v13  ;;  %v6570_v30 = vpop.f32.mrb[50].mxu0 }
 0x540   : > { %5165 = vst.msk [vmem:[%s7805_s15 + $0x390] sm:$0xff] %vm5050_vm3, %v4996_v7  ;;  %v4999_v56 = vadd.f32 %v6570_v30, %v7798_v15  ;;  %v4990_v59 = vpop.f32.mrb[51].mxu0 }
 0x541   : > { %5163 = vst.msk [vmem:[%s7805_s15 + $0x380] sm:$0xff] %vm5050_vm3, %v4988_v62  ;;  %v4991_v23 = vadd.f32 %v7798_v15, %v4990_v59 }
 0x542   : > { %5166 = vst.msk [vmem:[%s7805_s15 + $0x398] sm:$0xff] %vm5050_vm3, %v4999_v56 }
 0x543   : > { %5164 = vst.msk [vmem:[%s7805_s15 + $0x388] sm:$0xff] %vm5050_vm3, %v4991_v23 }
 0x545   : > { %v6573_v26 = vpop.f32.mrb[52].mxu0 }
 0x546   : > { %v5012_v53 = vadd.f32 %v6573_v26, %v7798_v15  ;;  %v5003_v57 = vpop.f32.mrb[53].mxu0 }
 0x547   : > { %v5004_v22 = vadd.f32 %v7798_v15, %v5003_v57  ;;  %v6574_v27 = vpop.f32.mrb[54].mxu0 }
 0x548   : > { %5169 = vst.msk [vmem:[%s7805_s15 + $0x3b0] sm:$0xff] %vm5050_vm3, %v5012_v53  ;;  %v5015_v28 = vadd.f32 %v6574_v27, %v7798_v15  ;;  %v5006_v60 = vpop.f32.mrb[55].mxu0 }
 0x549   : > { %5167 = vst.msk [vmem:[%s7805_s15 + $0x3a0] sm:$0xff] %vm5050_vm3, %v5004_v22  ;;  %v5007_v0 = vadd.f32 %v7798_v15, %v5006_v60 }
 0x54a   : > { %5170 = vst.msk [vmem:[%s7805_s15 + $0x3b8] sm:$0xff] %vm5050_vm3, %v5015_v28 }
 0x54b   : > { %5168 = vst.msk [vmem:[%s7805_s15 + $0x3a8] sm:$0xff] %vm5050_vm3, %v5007_v0 }
 0x54d   : > { %v6577_v33 = vpop.f32.mrb[56].mxu0 }
 0x54e   : > { %v5028_v36 = vadd.f32 %v6577_v33, %v7798_v15  ;;  %v5019_v5 = vpop.f32.mrb[57].mxu0 }
 0x54f   : > { %v5020_v29 = vadd.f32 %v7798_v15, %v5019_v5  ;;  %v6578_v42 = vpop.f32.mrb[58].mxu0 }
 0x550   : > { %5173 = vst.msk [vmem:[%s7805_s15 + $0x3d0] sm:$0xff] %vm5050_vm3, %v5028_v36  ;;  %v5031_v45 = vadd.f32 %v6578_v42, %v7798_v15  ;;  %v5022_v17 = vpop.f32.mrb[59].mxu0 }
 0x551   : > { %5171 = vst.msk [vmem:[%s7805_s15 + $0x3c0] sm:$0xff] %vm5050_vm3, %v5020_v29  ;;  %v5023_v20 = vadd.f32 %v7798_v15, %v5022_v17 }
 0x552   : > { %5174 = vst.msk [vmem:[%s7805_s15 + $0x3d8] sm:$0xff] %vm5050_vm3, %v5031_v45 }
 0x553   : > { %5172 = vst.msk [vmem:[%s7805_s15 + $0x3c8] sm:$0xff] %vm5050_vm3, %v5023_v20 }
 0x555   : > { %v6581_v58 = vpop.f32.mrb[60].mxu0 }
 0x556   : > { %v5044_v2 = vadd.f32 %v6581_v58, %v7798_v15  ;;  %v5035_v12 = vpop.f32.mrb[61].mxu0 }
 0x557   : > { %v5036_v14 = vadd.f32 %v7798_v15, %v5035_v12  ;;  %v6582_v40 = vpop.f32.mrb[62].mxu0 }
 0x558   : > { %5177 = vst.msk [vmem:[%s7805_s15 + $0x3f0] sm:$0xff] %vm5050_vm3, %v5044_v2  ;;  %v5047_v16 = vadd.f32 %v6582_v40, %v7798_v15  ;;  %v5038_v9 = vpop.f32.mrb[63].mxu0 }
 0x559   : > { %5175 = vst.msk [vmem:[%s7805_s15 + $0x3e0] sm:$0xff] %vm5050_vm3, %v5036_v14  ;;  %v5039_v18 = vadd.f32 %v7798_v15, %v5038_v9 }
 0x55a   : > { %5178 = vst.msk [vmem:[%s7805_s15 + $0x3f8] sm:$0xff] %vm5050_vm3, %v5047_v16 }
 0x55b   : > { %5176 = vst.msk [vmem:[%s7805_s15 + $0x3e8] sm:$0xff] %vm5050_vm3, %v5039_v18 }
 0x55c PF: > { %s21_s17 = sadd.s32 1, %s6616_s17  }
 0x55d   : > { %p18_p4 = scmp.ge.s32.totalorder %s21_s17, 4  }
 0x55f   :  { %20 = sbr.rel (!%p18_p4) target bundleno = 1 (0x1), region = 94 }

</bundles_post_ra>
